<compile_context>
chip_gen: v6e
topology: v6e:2x2x1
jax: 0.10.0
libtpu: 0.0.40
codegen_flags: <defaults>
</compile_context>

<pallas_src>
import numpy as np
import jax
import jax.numpy as jnp
from jax.experimental import pallas as pl
from jax.experimental.pallas import tpu as pltpu


# ---------------------------------------------------------------------------
# Bilinear (align_corners=False) resampling matrix: out = M @ in  (1-D axis).
# Matches PyTorch F.interpolate semantics (half-pixel centers + clamp).
# ---------------------------------------------------------------------------
def bilinear_matrix(n_in, n_out):
    m = np.zeros((n_out, n_in), np.float32)
    for o in range(n_out):
        src = (o + 0.5) * n_in / n_out - 0.5
        i0 = int(np.floor(src))
        frac = src - i0
        i0c = min(max(i0, 0), n_in - 1)
        i1c = min(max(i0 + 1, 0), n_in - 1)
        m[o, i0c] += 1.0 - frac
        m[o, i1c] += frac
    return m


# ---------------------------------------------------------------------------
# Fused kernel: one image per grid step.
#   x_ref     : (Cin, H, W)        bf16   input image (NCHW slice)
#   uhp_ref   : (H2+2, H)          bf16   H-upsample matrix w/ zero pad rows
#   uwpT_ref  : (W, W2+2)          bf16   W-upsample matrix (transposed) w/ pad
#   w_ref     : (9, Cout, Cin)     bf16   conv taps, tap = ky*3+kx
#   scale_ref : (Cout, 1)          f32    folded BN scale
#   shift_ref : (Cout, 1)          f32    folded BN shift (conv bias included)
#   alpha_ref : (1,)               f32    PReLU alpha (SMEM)
#   o_ref     : (Cout, H2*W2)      f32    NCHW output, lane-dense slab
# ---------------------------------------------------------------------------
def upsample_conv_bn_prelu_kernel(x_ref, uhp_ref, uwpT_ref, w_ref,
                                  scale_ref, shift_ref, alpha_ref, o_ref):
    Cin, H, W = x_ref.shape
    Hp = uhp_ref.shape[0]
    Wp = uwpT_ref.shape[1]
    H2, W2 = Hp - 2, Wp - 2
    Cout = o_ref.shape[0]

    # ---- bilinear 2x upsample with the conv's zero pad folded in -----------
    # W direction (+ left/right zero pad) as one big GEMM over all channels.
    x = x_ref[...]                                           # (Cin, H, W) bf16
    t = jnp.dot(x.reshape(Cin * H, W), uwpT_ref[...],
                preferred_element_type=jnp.float32)          # (Cin*H, Wp) f32
    t = t.astype(jnp.bfloat16).reshape(Cin, H, Wp)

    # H direction (+ top/bottom zero pad) as one batched-channel GEMM.
    # (Broadcast hoisted out of any loop; per-channel matmul keeps the data
    #  channel-major so the conv below needs no transposes.)
    uhp_b = jnp.broadcast_to(uhp_ref[...][None, :, :], (Cin, Hp, H))
    p = jnp.einsum('cph,chw->cpw', uhp_b, t,
                   preferred_element_type=jnp.float32)       # (Cin, Hp, Wp)
    p = p.astype(jnp.bfloat16)                               # padded, upsampled

    # ---- 3x3 SAME conv: 9 channel-mixing GEMMs, NCHW output ----------------
    # TODO(synk): each shifted window materializes one VMEM relayout copy; an
    # aligned-roll / im2col scheme could relieve vld/vst pressure further.
    acc = None
    for ky in range(3):
        for kx in range(3):
            win = p[:, ky:ky + H2, kx:kx + W2].reshape(Cin, H2 * W2)
            part = jnp.dot(w_ref[ky * 3 + kx], win,
                           preferred_element_type=jnp.float32)
            acc = part if acc is None else acc + part        # (Cout, H2*W2)

    # ---- folded BatchNorm (inference affine) + PReLU ------------------------
    y = acc * scale_ref[...] + shift_ref[...]                # (Cout, H2*W2)
    a = alpha_ref[0]
    o_ref[...] = jnp.where(y >= 0.0, y, a * y)


# ---------------------------------------------------------------------------
# Wrapper (NCHW in / NCHW out)
# ---------------------------------------------------------------------------
def upsample_forward(x, params):
    N, Cin, H, W = x.shape
    H2, W2 = 2 * H, 2 * W
    Hp, Wp = H2 + 2, W2 + 2
    Cout = params["conv_w"].shape[0]

    # Constant resampling matrices with the conv's 1-px zero pad folded in.
    uh = np.zeros((Hp, H), np.float32)
    uh[1:1 + H2] = bilinear_matrix(H, H2)
    uwT = np.zeros((W, Wp), np.float32)
    uwT[:, 1:1 + W2] = bilinear_matrix(W, W2).T
    uh = jnp.asarray(uh, jnp.bfloat16)
    uwT = jnp.asarray(uwT, jnp.bfloat16)

    # Conv weights as 9 taps of (Cout, Cin), bf16 for the MXU.
    wT = jnp.transpose(params["conv_w"], (2, 3, 0, 1)).reshape(
        9, Cout, Cin).astype(jnp.bfloat16)

    # Fold conv bias + BN running stats into a per-channel affine (f32).
    inv = 1.0 / jnp.sqrt(params["bn_var"] + 1e-5)
    scale = (params["bn_gamma"] * inv).reshape(Cout, 1).astype(jnp.float32)
    shift = ((params["conv_b"] - params["bn_mean"]) * params["bn_gamma"] * inv
             + params["bn_beta"]).reshape(Cout, 1).astype(jnp.float32)
    alpha = params["prelu_a"].reshape(1).astype(jnp.float32)

    x_bf16 = x.astype(jnp.bfloat16)

    # Advisory cost estimate so XLA schedules around the fused call sensibly.
    flops_per_img = (2 * Cin * H * W * Wp              # W-direction GEMM
                     + 2 * Cin * Hp * H * Wp           # H-direction GEMMs
                     + 2 * 9 * Cout * Cin * H2 * W2)   # 3x3 conv GEMMs
    cost = pl.CostEstimate(
        flops=N * flops_per_img,
        transcendentals=0,
        bytes_accessed=(x_bf16.size * 2 + N * Cout * H2 * W2 * 4
                        + wT.size * 2 + uh.size * 2 + uwT.size * 2))

    y_flat = pl.pallas_call(
        upsample_conv_bn_prelu_kernel,
        grid=(N,),
        in_specs=[
            pl.BlockSpec((None, Cin, H, W), lambda n: (n, 0, 0, 0)),
            pl.BlockSpec((Hp, H), lambda n: (0, 0)),
            pl.BlockSpec((W, Wp), lambda n: (0, 0)),
            pl.BlockSpec((9, Cout, Cin), lambda n: (0, 0, 0)),
            pl.BlockSpec((Cout, 1), lambda n: (0, 0)),
            pl.BlockSpec((Cout, 1), lambda n: (0, 0)),
            pl.BlockSpec(memory_space=pltpu.MemorySpace.SMEM),
        ],
        out_specs=pl.BlockSpec((None, Cout, H2 * W2), lambda n: (n, 0, 0)),
        out_shape=jax.ShapeDtypeStruct((N, Cout, H2 * W2), jnp.float32),
        compiler_params=pltpu.CompilerParams(
            dimension_semantics=("parallel",)),
        cost_estimate=cost,
    )(x_bf16, uh, uwT, wT, scale, shift, alpha)

    # Free reshape (no transpose / extra HBM pass): output is already NCHW.
    return y_flat.reshape(N, Cout, H2, W2)


# ---------------------------------------------------------------------------
# Pure-JAX reference (f32, HIGHEST precision) for validation
# ---------------------------------------------------------------------------
def reference_forward(x, params):
    N, C, H, W = x.shape
    H2, W2 = 2 * H, 2 * W
    UH = jnp.asarray(bilinear_matrix(H, H2))
    UW = jnp.asarray(bilinear_matrix(W, W2))
    p = jnp.einsum("ph,nchw,qw->ncpq", UH, x, UW,
                   precision=jax.lax.Precision.HIGHEST)
    y = jax.lax.conv_general_dilated(
        p, params["conv_w"], window_strides=(1, 1), padding=((1, 1), (1, 1)),
        dimension_numbers=("NCHW", "OIHW", "NCHW"),
        precision=jax.lax.Precision.HIGHEST)
    y = y + params["conv_b"][None, :, None, None]
    inv = 1.0 / jnp.sqrt(params["bn_var"] + 1e-5)
    y = ((y - params["bn_mean"][None, :, None, None])
         * (params["bn_gamma"] * inv)[None, :, None, None]
         + params["bn_beta"][None, :, None, None])
    return jnp.where(y >= 0.0, y, params["prelu_a"][0] * y)


def init_params(key, cin, cout):
    ks = jax.random.split(key, 6)
    return dict(
        conv_w=0.1 * jax.random.normal(ks[0], (cout, cin, 3, 3), jnp.float32),
        conv_b=0.1 * jax.random.normal(ks[1], (cout,), jnp.float32),
        bn_gamma=1.0 + 0.1 * jax.random.normal(ks[2], (cout,), jnp.float32),
        bn_beta=0.1 * jax.random.normal(ks[3], (cout,), jnp.float32),
        bn_mean=0.1 * jax.random.normal(ks[4], (cout,), jnp.float32),
        bn_var=jax.random.uniform(ks[5], (cout,), jnp.float32, 0.5, 1.5),
        prelu_a=jnp.full((1,), 0.25, jnp.float32),   # nn.PReLU() default init
    )


if __name__ == "__main__":
    key = jax.random.PRNGKey(0)
    kx, kp = jax.random.split(key)

    N, Cin, H, W = 2, 4, 16, 16
    Cout = 8

    x = jax.random.normal(kx, (N, Cin, H, W), jnp.float32)
    params = init_params(kp, Cin, Cout)

    y = jax.block_until_ready(upsample_forward(x, params))
    y_ref = jax.block_until_ready(reference_forward(x, params))

    assert y.shape == (N, Cout, 2 * H, 2 * W), y.shape
    # bf16 MXU operands with f32 accumulation vs. f32-HIGHEST reference.
    np.testing.assert_allclose(np.asarray(y), np.asarray(y_ref),
                               rtol=2e-2, atol=2e-2)
    print("KERNEL_OK")
</pallas_src>

<mosaic_0001>
module attributes {stable_mosaic.version = 11 : i64} {
  func.func @upsample_conv_bn_prelu_kernel(%arg0: i32, %arg1: memref<1x4x16x16xbf16, #tpu.memory_space<vmem>>, %arg2: memref<34x16xbf16, #tpu.memory_space<vmem>>, %arg3: memref<16x34xbf16, #tpu.memory_space<vmem>>, %arg4: memref<9x8x4xbf16, #tpu.memory_space<vmem>>, %arg5: memref<8x1xf32, #tpu.memory_space<vmem>>, %arg6: memref<8x1xf32, #tpu.memory_space<vmem>>, %arg7: memref<1xf32, #tpu.memory_space<smem>>, %arg8: memref<1x8x1024xf32, #tpu.memory_space<vmem>>) attributes {dimension_semantics = [#tpu.dimension_semantics<parallel>], iteration_bounds = array<i64: 2>, scalar_prefetch = 0 : i64, scratch_operands = 0 : i64, tpu.core_type = #tpu.core_type<tc>, window_params = [{transform_indices = @transform_0, window_bounds = array<i64: 1, 4, 16, 16>}, {pipeline_mode = #tpu.pipeline_mode<synchronous>, transform_indices = @transform_1, window_bounds = array<i64: 34, 16>}, {pipeline_mode = #tpu.pipeline_mode<synchronous>, transform_indices = @transform_2, window_bounds = array<i64: 16, 34>}, {pipeline_mode = #tpu.pipeline_mode<synchronous>, transform_indices = @transform_3, window_bounds = array<i64: 9, 8, 4>}, {pipeline_mode = #tpu.pipeline_mode<synchronous>, transform_indices = @transform_4, window_bounds = array<i64: 8, 1>}, {pipeline_mode = #tpu.pipeline_mode<synchronous>, transform_indices = @transform_5, window_bounds = array<i64: 8, 1>}, {transform_indices = @transform_6, window_bounds = array<i64: 1>}, {transform_indices = @transform_7, window_bounds = array<i64: 1, 8, 1024>}]} {
    %c0 = arith.constant 0 : index
    %c0_0 = arith.constant 0 : index
    %c0_1 = arith.constant 0 : index
    %c0_2 = arith.constant 0 : index
    %0 = vector.load %arg1[%c0, %c0_0, %c0_1, %c0_2] : memref<1x4x16x16xbf16, #tpu.memory_space<vmem>>, vector<1x4x16x16xbf16>
    %1 = vector.shape_cast %0 : vector<1x4x16x16xbf16> to vector<4x16x16xbf16>
    %2 = vector.shape_cast %1 : vector<4x16x16xbf16> to vector<64x16xbf16>
    %c0_3 = arith.constant 0 : index
    %c0_4 = arith.constant 0 : index
    %3 = vector.load %arg3[%c0_3, %c0_4] : memref<16x34xbf16, #tpu.memory_space<vmem>>, vector<16x34xbf16>
    %cst = arith.constant dense<0.000000e+00> : vector<64x34xf32>
    %4 = tpu.matmul %2, %3, %cst {dimension_numbers = #tpu.dot_dimension_numbers<[1], [0], [0], [1], [0, 0, 1, 1], [], []>} : vector<64x16xbf16>, vector<16x34xbf16>, vector<64x34xf32> -> vector<64x34xf32>
    %5 = arith.truncf %4 : vector<64x34xf32> to vector<64x34xbf16>
    %6 = vector.shape_cast %5 : vector<64x34xbf16> to vector<4x16x34xbf16>
    %c0_5 = arith.constant 0 : index
    %c0_6 = arith.constant 0 : index
    %7 = vector.load %arg2[%c0_5, %c0_6] : memref<34x16xbf16, #tpu.memory_space<vmem>>, vector<34x16xbf16>
    %8 = vector.shape_cast %7 : vector<34x16xbf16> to vector<1x34x16xbf16>
    %9 = vector.shape_cast %8 : vector<1x34x16xbf16> to vector<1x34x16xbf16>
    %10 = vector.broadcast %9 : vector<1x34x16xbf16> to vector<4x34x16xbf16>
    "tpu.trace_start"() <{level = 10 : i32, message = "cph,chw->cpw"}> : () -> ()
    %cst_7 = arith.constant dense<0.000000e+00> : vector<4x34x34xf32>
    %11 = tpu.matmul %10, %6, %cst_7 {dimension_numbers = #tpu.dot_dimension_numbers<[2], [1], [1], [2], [0, 0, 0, 1, 1, 2], [0], [0]>} : vector<4x34x16xbf16>, vector<4x16x34xbf16>, vector<4x34x34xf32> -> vector<4x34x34xf32>
    "tpu.trace_stop"() : () -> ()
    %12 = arith.truncf %11 : vector<4x34x34xf32> to vector<4x34x34xbf16>
    %13 = vector.extract_strided_slice %12 {offsets = [0, 0, 0], sizes = [4, 32, 32], strides = [1, 1, 1]} : vector<4x34x34xbf16> to vector<4x32x32xbf16>
    %14 = vector.shape_cast %13 : vector<4x32x32xbf16> to vector<4x1024xbf16>
    %c0_8 = arith.constant 0 : index
    %c0_9 = arith.constant 0 : index
    %c0_10 = arith.constant 0 : index
    %15 = vector.load %arg4[%c0_8, %c0_9, %c0_10] : memref<9x8x4xbf16, #tpu.memory_space<vmem>>, vector<1x8x4xbf16>
    %16 = vector.shape_cast %15 : vector<1x8x4xbf16> to vector<8x4xbf16>
    %cst_11 = arith.constant dense<0.000000e+00> : vector<8x1024xf32>
    %17 = tpu.matmul %16, %14, %cst_11 {dimension_numbers = #tpu.dot_dimension_numbers<[1], [0], [0], [1], [0, 0, 1, 1], [], []>} : vector<8x4xbf16>, vector<4x1024xbf16>, vector<8x1024xf32> -> vector<8x1024xf32>
    %18 = vector.extract_strided_slice %12 {offsets = [0, 0, 1], sizes = [4, 32, 32], strides = [1, 1, 1]} : vector<4x34x34xbf16> to vector<4x32x32xbf16>
    %19 = vector.shape_cast %18 : vector<4x32x32xbf16> to vector<4x1024xbf16>
    %c1 = arith.constant 1 : index
    %c0_12 = arith.constant 0 : index
    %c0_13 = arith.constant 0 : index
    %20 = vector.load %arg4[%c1, %c0_12, %c0_13] : memref<9x8x4xbf16, #tpu.memory_space<vmem>>, vector<1x8x4xbf16>
    %21 = vector.shape_cast %20 : vector<1x8x4xbf16> to vector<8x4xbf16>
    %cst_14 = arith.constant dense<0.000000e+00> : vector<8x1024xf32>
    %22 = tpu.matmul %21, %19, %cst_14 {dimension_numbers = #tpu.dot_dimension_numbers<[1], [0], [0], [1], [0, 0, 1, 1], [], []>} : vector<8x4xbf16>, vector<4x1024xbf16>, vector<8x1024xf32> -> vector<8x1024xf32>
    %23 = arith.addf %17, %22 : vector<8x1024xf32>
    %24 = vector.extract_strided_slice %12 {offsets = [0, 0, 2], sizes = [4, 32, 32], strides = [1, 1, 1]} : vector<4x34x34xbf16> to vector<4x32x32xbf16>
    %25 = vector.shape_cast %24 : vector<4x32x32xbf16> to vector<4x1024xbf16>
    %c2 = arith.constant 2 : index
    %c0_15 = arith.constant 0 : index
    %c0_16 = arith.constant 0 : index
    %26 = vector.load %arg4[%c2, %c0_15, %c0_16] : memref<9x8x4xbf16, #tpu.memory_space<vmem>>, vector<1x8x4xbf16>
    %27 = vector.shape_cast %26 : vector<1x8x4xbf16> to vector<8x4xbf16>
    %cst_17 = arith.constant dense<0.000000e+00> : vector<8x1024xf32>
    %28 = tpu.matmul %27, %25, %cst_17 {dimension_numbers = #tpu.dot_dimension_numbers<[1], [0], [0], [1], [0, 0, 1, 1], [], []>} : vector<8x4xbf16>, vector<4x1024xbf16>, vector<8x1024xf32> -> vector<8x1024xf32>
    %29 = arith.addf %23, %28 : vector<8x1024xf32>
    %30 = vector.extract_strided_slice %12 {offsets = [0, 1, 0], sizes = [4, 32, 32], strides = [1, 1, 1]} : vector<4x34x34xbf16> to vector<4x32x32xbf16>
    %31 = vector.shape_cast %30 : vector<4x32x32xbf16> to vector<4x1024xbf16>
    %c3 = arith.constant 3 : index
    %c0_18 = arith.constant 0 : index
    %c0_19 = arith.constant 0 : index
    %32 = vector.load %arg4[%c3, %c0_18, %c0_19] : memref<9x8x4xbf16, #tpu.memory_space<vmem>>, vector<1x8x4xbf16>
    %33 = vector.shape_cast %32 : vector<1x8x4xbf16> to vector<8x4xbf16>
    %cst_20 = arith.constant dense<0.000000e+00> : vector<8x1024xf32>
    %34 = tpu.matmul %33, %31, %cst_20 {dimension_numbers = #tpu.dot_dimension_numbers<[1], [0], [0], [1], [0, 0, 1, 1], [], []>} : vector<8x4xbf16>, vector<4x1024xbf16>, vector<8x1024xf32> -> vector<8x1024xf32>
    %35 = arith.addf %29, %34 : vector<8x1024xf32>
    %36 = vector.extract_strided_slice %12 {offsets = [0, 1, 1], sizes = [4, 32, 32], strides = [1, 1, 1]} : vector<4x34x34xbf16> to vector<4x32x32xbf16>
    %37 = vector.shape_cast %36 : vector<4x32x32xbf16> to vector<4x1024xbf16>
    %c4 = arith.constant 4 : index
    %c0_21 = arith.constant 0 : index
    %c0_22 = arith.constant 0 : index
    %38 = vector.load %arg4[%c4, %c0_21, %c0_22] : memref<9x8x4xbf16, #tpu.memory_space<vmem>>, vector<1x8x4xbf16>
    %39 = vector.shape_cast %38 : vector<1x8x4xbf16> to vector<8x4xbf16>
    %cst_23 = arith.constant dense<0.000000e+00> : vector<8x1024xf32>
    %40 = tpu.matmul %39, %37, %cst_23 {dimension_numbers = #tpu.dot_dimension_numbers<[1], [0], [0], [1], [0, 0, 1, 1], [], []>} : vector<8x4xbf16>, vector<4x1024xbf16>, vector<8x1024xf32> -> vector<8x1024xf32>
    %41 = arith.addf %35, %40 : vector<8x1024xf32>
    %42 = vector.extract_strided_slice %12 {offsets = [0, 1, 2], sizes = [4, 32, 32], strides = [1, 1, 1]} : vector<4x34x34xbf16> to vector<4x32x32xbf16>
    %43 = vector.shape_cast %42 : vector<4x32x32xbf16> to vector<4x1024xbf16>
    %c5 = arith.constant 5 : index
    %c0_24 = arith.constant 0 : index
    %c0_25 = arith.constant 0 : index
    %44 = vector.load %arg4[%c5, %c0_24, %c0_25] : memref<9x8x4xbf16, #tpu.memory_space<vmem>>, vector<1x8x4xbf16>
    %45 = vector.shape_cast %44 : vector<1x8x4xbf16> to vector<8x4xbf16>
    %cst_26 = arith.constant dense<0.000000e+00> : vector<8x1024xf32>
    %46 = tpu.matmul %45, %43, %cst_26 {dimension_numbers = #tpu.dot_dimension_numbers<[1], [0], [0], [1], [0, 0, 1, 1], [], []>} : vector<8x4xbf16>, vector<4x1024xbf16>, vector<8x1024xf32> -> vector<8x1024xf32>
    %47 = arith.addf %41, %46 : vector<8x1024xf32>
    %48 = vector.extract_strided_slice %12 {offsets = [0, 2, 0], sizes = [4, 32, 32], strides = [1, 1, 1]} : vector<4x34x34xbf16> to vector<4x32x32xbf16>
    %49 = vector.shape_cast %48 : vector<4x32x32xbf16> to vector<4x1024xbf16>
    %c6 = arith.constant 6 : index
    %c0_27 = arith.constant 0 : index
    %c0_28 = arith.constant 0 : index
    %50 = vector.load %arg4[%c6, %c0_27, %c0_28] : memref<9x8x4xbf16, #tpu.memory_space<vmem>>, vector<1x8x4xbf16>
    %51 = vector.shape_cast %50 : vector<1x8x4xbf16> to vector<8x4xbf16>
    %cst_29 = arith.constant dense<0.000000e+00> : vector<8x1024xf32>
    %52 = tpu.matmul %51, %49, %cst_29 {dimension_numbers = #tpu.dot_dimension_numbers<[1], [0], [0], [1], [0, 0, 1, 1], [], []>} : vector<8x4xbf16>, vector<4x1024xbf16>, vector<8x1024xf32> -> vector<8x1024xf32>
    %53 = arith.addf %47, %52 : vector<8x1024xf32>
    %54 = vector.extract_strided_slice %12 {offsets = [0, 2, 1], sizes = [4, 32, 32], strides = [1, 1, 1]} : vector<4x34x34xbf16> to vector<4x32x32xbf16>
    %55 = vector.shape_cast %54 : vector<4x32x32xbf16> to vector<4x1024xbf16>
    %c7 = arith.constant 7 : index
    %c0_30 = arith.constant 0 : index
    %c0_31 = arith.constant 0 : index
    %56 = vector.load %arg4[%c7, %c0_30, %c0_31] : memref<9x8x4xbf16, #tpu.memory_space<vmem>>, vector<1x8x4xbf16>
    %57 = vector.shape_cast %56 : vector<1x8x4xbf16> to vector<8x4xbf16>
    %cst_32 = arith.constant dense<0.000000e+00> : vector<8x1024xf32>
    %58 = tpu.matmul %57, %55, %cst_32 {dimension_numbers = #tpu.dot_dimension_numbers<[1], [0], [0], [1], [0, 0, 1, 1], [], []>} : vector<8x4xbf16>, vector<4x1024xbf16>, vector<8x1024xf32> -> vector<8x1024xf32>
    %59 = arith.addf %53, %58 : vector<8x1024xf32>
    %60 = vector.extract_strided_slice %12 {offsets = [0, 2, 2], sizes = [4, 32, 32], strides = [1, 1, 1]} : vector<4x34x34xbf16> to vector<4x32x32xbf16>
    %61 = vector.shape_cast %60 : vector<4x32x32xbf16> to vector<4x1024xbf16>
    %c8 = arith.constant 8 : index
    %c0_33 = arith.constant 0 : index
    %c0_34 = arith.constant 0 : index
    %62 = vector.load %arg4[%c8, %c0_33, %c0_34] : memref<9x8x4xbf16, #tpu.memory_space<vmem>>, vector<1x8x4xbf16>
    %63 = vector.shape_cast %62 : vector<1x8x4xbf16> to vector<8x4xbf16>
    %cst_35 = arith.constant dense<0.000000e+00> : vector<8x1024xf32>
    %64 = tpu.matmul %63, %61, %cst_35 {dimension_numbers = #tpu.dot_dimension_numbers<[1], [0], [0], [1], [0, 0, 1, 1], [], []>} : vector<8x4xbf16>, vector<4x1024xbf16>, vector<8x1024xf32> -> vector<8x1024xf32>
    %65 = arith.addf %59, %64 : vector<8x1024xf32>
    %c0_36 = arith.constant 0 : index
    %c0_37 = arith.constant 0 : index
    %66 = vector.load %arg5[%c0_36, %c0_37] : memref<8x1xf32, #tpu.memory_space<vmem>>, vector<8x1xf32>
    %67 = vector.broadcast %66 : vector<8x1xf32> to vector<8x1024xf32>
    %68 = arith.mulf %65, %67 : vector<8x1024xf32>
    %c0_38 = arith.constant 0 : index
    %c0_39 = arith.constant 0 : index
    %69 = vector.load %arg6[%c0_38, %c0_39] : memref<8x1xf32, #tpu.memory_space<vmem>>, vector<8x1xf32>
    %70 = vector.broadcast %69 : vector<8x1xf32> to vector<8x1024xf32>
    %71 = arith.addf %68, %70 : vector<8x1024xf32>
    %c0_40 = arith.constant 0 : index
    %72 = memref.load %arg7[%c0_40] : memref<1xf32, #tpu.memory_space<smem>>
    %cst_41 = arith.constant 0.000000e+00 : f32
    %73 = vector.broadcast %cst_41 : f32 to vector<8x1024xf32>
    %74 = arith.cmpf oge, %71, %73 : vector<8x1024xf32>
    %75 = vector.broadcast %72 : f32 to vector<8x1024xf32>
    %76 = arith.mulf %75, %71 : vector<8x1024xf32>
    %77 = arith.select %74, %71, %76 : vector<8x1024xi1>, vector<8x1024xf32>
    %c0_42 = arith.constant 0 : index
    %c0_43 = arith.constant 0 : index
    %c0_44 = arith.constant 0 : index
    %78 = vector.load %arg8[%c0_42, %c0_43, %c0_44] : memref<1x8x1024xf32, #tpu.memory_space<vmem>>, vector<1x8x1024xf32>
    %79 = vector.shape_cast %78 : vector<1x8x1024xf32> to vector<8x1024xf32>
    %80 = vector.shape_cast %77 : vector<8x1024xf32> to vector<1x8x1024xf32>
    tpu.vector_store %arg8[%c0_42, %c0_43, %c0_44], %80 {strides = array<i32>} : memref<1x8x1024xf32, #tpu.memory_space<vmem>>, vector<1x8x1024xf32>,
    return
  }
  func.func @transform_0(%arg0: i32) -> (i32, i32, i32, i32) {
    %c0_i32 = arith.constant 0 : i32
    %c0_i32_0 = arith.constant 0 : i32
    %c0_i32_1 = arith.constant 0 : i32
    %c0_i32_2 = arith.constant 0 : i32
    return %arg0, %c0_i32, %c0_i32_0, %c0_i32_1 : i32, i32, i32, i32
  }
  func.func @transform_1(%arg0: i32) -> (i32, i32) {
    %c0_i32 = arith.constant 0 : i32
    %c0_i32_0 = arith.constant 0 : i32
    %c0_i32_1 = arith.constant 0 : i32
    return %c0_i32, %c0_i32_0 : i32, i32
  }
  func.func @transform_2(%arg0: i32) -> (i32, i32) {
    %c0_i32 = arith.constant 0 : i32
    %c0_i32_0 = arith.constant 0 : i32
    %c0_i32_1 = arith.constant 0 : i32
    return %c0_i32, %c0_i32_0 : i32, i32
  }
  func.func @transform_3(%arg0: i32) -> (i32, i32, i32) {
    %c0_i32 = arith.constant 0 : i32
    %c0_i32_0 = arith.constant 0 : i32
    %c0_i32_1 = arith.constant 0 : i32
    %c0_i32_2 = arith.constant 0 : i32
    return %c0_i32, %c0_i32_0, %c0_i32_1 : i32, i32, i32
  }
  func.func @transform_4(%arg0: i32) -> (i32, i32) {
    %c0_i32 = arith.constant 0 : i32
    %c0_i32_0 = arith.constant 0 : i32
    %c0_i32_1 = arith.constant 0 : i32
    return %c0_i32, %c0_i32_0 : i32, i32
  }
  func.func @transform_5(%arg0: i32) -> (i32, i32) {
    %c0_i32 = arith.constant 0 : i32
    %c0_i32_0 = arith.constant 0 : i32
    %c0_i32_1 = arith.constant 0 : i32
    return %c0_i32, %c0_i32_0 : i32, i32
  }
  func.func @transform_6(%arg0: i32) -> i32 {
    %c0_i32 = arith.constant 0 : i32
    %c0_i32_0 = arith.constant 0 : i32
    return %c0_i32 : i32
  }
  func.func @transform_7(%arg0: i32) -> (i32, i32, i32) {
    %c0_i32 = arith.constant 0 : i32
    %c0_i32_0 = arith.constant 0 : i32
    %c0_i32_1 = arith.constant 0 : i32
    return %arg0, %c0_i32, %c0_i32_0 : i32, i32, i32
  }
}

</mosaic_0001>

<bundles_post_ra>
// kernel: tpu_custom_call.1
= control target key start
LH: loop header
LB: loop body
LE: loop exit
PB: predicated region body
PF: predicated region fallthrough
CT: control target
= control target key end

     0   :  { %s10025_s0 = inlined_call_operand.vmem [shape: bf16[2,4,16,16], index: 0, kind: input, shape index: {}]   ;;  %s10026_s1 = inlined_call_operand.vmem [shape: bf16[34,16], index: 1, kind: input, shape index: {}]   ;;  %s10027_s2 = inlined_call_operand.vmem [shape: bf16[16,34], index: 2, kind: input, shape index: {}]   ;;  %s10028_s3 = inlined_call_operand.vmem [shape: bf16[9,8,4], index: 3, kind: input, shape index: {}]   ;;  %s10029_s4 = inlined_call_operand.vmem [shape: f32[8,1], index: 4, kind: input, shape index: {}]   ;;  %s10030_s5 = inlined_call_operand.vmem [shape: f32[8,1], index: 5, kind: input, shape index: {}]   ;;  %s10031_s6 = inlined_call_operand.<no memory space> [shape: f32[1], index: 6, kind: input, shape index: {}]   ;;  %s10032_s7 = inlined_call_operand.hbm [shape: f32[2,8,1024], index: 7, kind: output, shape index: {}]  }
   0x1   :  { %12 = sst [smem:[#allocation2]] %s10031_s6 }
   0x2   :  { %13 = vsyncpa [#allocation4], 0 }
   0x3   :  { %15 = vsyncpa [#allocation4 + $0x1], 0  ;;  %s6917_s26 = smov 0   ;;  %s6919_s27 = smov 0  }
   0x4   :  { %s6921_s28 = smov 0   ;;  %s6923_s29 = smov 0  }
   0x5 LB: > { %s6938_s6 = sadd.s32 4294967295, %s6861_s29   ;;  %s6537_s30 = sadd.s32 4294967294, %s6861_s29   ;;  %s6861_s29 = sphi %s6923_s29, %s10372_s29   ;;  %s6857_s28 = sphi %s6921_s28, %s10371_s28   ;;  %s6853_s27 = sphi %s6919_s27, %s10370_s27   ;;  %s6849_s26 = sphi %s6917_s26, %s10369_s26  }
   0x6   : > { %s6942_s8 = sadd.s32 1, %s6861_s29   ;;  %s180_s9 = sadd.s32 1, %s6857_s28 }
   0x7   : > { %s177_s10 = ssub.s32 %s6861_s29, %s6942_s8  ;;  %p190_p0 = scmp.ne.s32.totalorder %s6857_s28, %s6853_s27 }
   0x8   : > { %p178_p1 = scmp.eq.s32.totalorder %s177_s10, 0  ;;  %p191_p2 = scmp.eq.s32.totalorder %s6938_s6, 1 }
   0x9   : > { %p196_p3 = scmp.ne.s32.totalorder %s6853_s27, %s6849_s26  ;;  %p197_p4 = scmp.eq.s32.totalorder %s6537_s30, 1 }
   0xa   : > { %s6953_s11 = scalar_select %p178_p1, %s6857_s28, %s180_s9  }
   0xb   : > { %p6955_p5 = por %p191_p2, %p190_p0  ;;  %p6959_p6 = por %p197_p4, %p196_p3 }
   0xc   : > { %p6540_p7 = scmp.ge.s32.totalorder %s6861_s29, 1  ;;  %p241_p8 = scmp.lt.s32.totalorder %s6861_s29, 3 }
   0xe   : > { %p242_p9 = pnand %p6540_p7, %p241_p8 }
  0x10   : > { %245 = sbr.rel (%p242_p9) target bundleno = 1295 (0x50f), region = 48 }
  0x15   : > { %v6793_v0 = vld [vmem:[%s10027_s2] sm:$0xff]   ;;  %p273_p10 = scmp.lt.s32.totalorder %s6938_s6, 1  ;;  %vm315_vm0 = vcmask 130048   ;;  %v6863_v5 = vmov 0.0   ;;  %vm6864_vm1 = vmmov 0   ;;  %v6799_v17 = vld [vmem:[%s10026_s1 + $0x8] sm:$0xff]  }
  0x16   : > { %6676 = vmatprep.subr.bf16.mxu0 %v6793_v0  ;;  %6686 = vmatprep.subr.bf16.mxu1 %v6863_v5  ;;  %v6798_v11 = vld [vmem:[%s10026_s1] sm:$0xff]   ;;  %v6800_v20 = vld [vmem:[%s10026_s1 + $0x10] ss:$0 sps:$4 sm:$0x11]   ;;  %v10033_v21 = vmov 0   ;;  %s6866_s9 = smov 127  }
  0x17   : > { %s274_s16 = scalar_select %p273_p10, %s6938_s6, 1  ;;  %6677 = vmatpush3.bf16.msra.mxu0 %v6793_v0  ;;  %6688 = vmatprep.mubr.msk.bf16.mxu1 %vm6864_vm1, %v6863_v5  ;;  %vm4497_vm2 = vcmask 1046528   ;;  %vm2545_vm3 = vsmask.f32 7424  ;;  %vm1034_vm4 = vcmask 261120   ;;  %vm1038_vm5 = vcmask 523264  }
  0x18   : > { %6700 = vmatprep.subr.bf16.mxu0 %v6863_v5  ;;  %6791 = vset.pattern.permute.xlu0 %v10033_v21  ;;  %s6867_s10 = smov 126   ;;  %s6870_s14 = smov 32   ;;  %vm1041_vm6 = vcmask 785408   ;;  %vm1548_vm7 = vcmask 1041408   ;;  %vm1544_vm8 = vcmask 31744  }
  0x19   : > { %s6653_s17 = sshll.u32 %s274_s16, 5  ;;  %6792 = vset.pattern.permute.xlu1 %v10033_v21  ;;  %s6871_s15 = smov 64  }
  0x1a   : > { %s277_s20 = scalar_lea.vmem %s10025_s0, %s6653_s17  ;;  %s6872_s16 = smov 96  }
  0x1b   : > { %v6794_v1 = vld [vmem:[%s277_s20] sm:$0xff]   ;;  %v6795_v2 = vld [vmem:[%s277_s20 + $0x8] sm:$0xff]   ;;  %v6796_v3 = vld [vmem:[%s277_s20 + $0x10] sm:$0xff]   ;;  %s6429_s24 = sld [smem:[#allocation2]]  ;;  %s270_s25 = sand.u32 1, %s6853_s27  }
  0x1c   : > { %6678 = vmatprep.mubr.msk.bf16.mxu0 %vm315_vm0, %v6794_v1  ;;  %v6797_v4 = vld [vmem:[%s277_s20 + $0x18] sm:$0xff]   ;;  %s6541_s30 = sshll.u32 %s270_s25, 6  ;;  %s6873_s19 = smov [#allocation3]  }
  0x1d   : > { %6679 = vmatmul.mubr.msk.bf16.vlgmr.msra.gmra.mxu0 %vm315_vm0, %v6795_v2  ;;  %s6805_s20 = sshll.u32 %s6873_s19, 4  ;;  %s6806_s20 = int_to_ptr.vmem [resolvable:$false] %s6805_s20 }
  0x1e   : > { %6682 = vmatprep.mubr.msk.bf16.mxu0 %vm315_vm0, %v6796_v3  ;;  %s6807_s21 = scalar_lea.vmem %s6806_s20, 2048 }
  0x25   : > { %6683 = vmatmul.mubr.msk.bf16.gmra.mxu0 %vm315_vm0, %v6797_v4 }
  0x26   : > { %6702 = vmatprep.mubr.msk.bf16.mxu0 %vm6864_vm1, %v6863_v5 }
  0xdd   : > { %v6680_v6 = vpop.f32.mrf.mxu0 }
  0xdf   : > { %v362_v7 = vpop.f32.mrf.mxu0 }
  0xe1   : > { %v6681_v8 = vpop.f32.mrf.mxu0 }
  0xe2   : > { %v394_v9 = vpack.c.bf16 %v6681_v8, %v6680_v6 }
  0xe3   : > { %v365_v10 = vpop.f32.mrf.mxu0 }
  0xe4   : > { %v393_v12 = vpack.c.bf16 %v365_v10, %v362_v7  ;;  %6701 = vmatpush3.bf16.msra.mxu0 %v394_v9 }
  0xe5   : > { %v6684_v13 = vpop.f32.mrf.mxu0  ;;  %6728 = vmatprep.subr.bf16.mxu0 %v6863_v5 }
  0xe6   : > { %6687 = vmatpush3.bf16.msra.mxu1 %v393_v12 }
  0xe7   : > { %6703 = vmatmul.mubr.msk.bf16.vlgmr.msra.gmra.mxu0 %vm315_vm0, %v6798_v11  ;;  %v378_v14 = vpop.f32.mrf.mxu0  ;;  %6714 = vmatprep.subr.bf16.mxu1 %v6863_v5 }
  0xe8   : > { %6706 = vmatprep.mubr.msk.bf16.mxu0 %vm6864_vm1, %v6863_v5 }
  0xe9   : > { %6689 = vmatmul.mubr.msk.bf16.vlgmr.msra.gmra.mxu1 %vm315_vm0, %v6798_v11  ;;  %v6685_v15 = vpop.f32.mrf.mxu0 }
  0xea   : > { %6692 = vmatprep.mubr.msk.bf16.mxu1 %vm6864_vm1, %v6863_v5  ;;  %v396_v16 = vpack.c.bf16 %v6685_v15, %v6684_v13 }
  0xeb   : > { %v381_v18 = vpop.f32.mrf.mxu0 }
  0xec   : > { %v395_v19 = vpack.c.bf16 %v381_v18, %v378_v14  ;;  %6729 = vmatpush3.bf16.msra.mxu0 %v396_v16 }
  0xee   : > { %6715 = vmatpush3.bf16.msra.mxu1 %v395_v19 }
  0xef   : > { %6707 = vmatmul.mubr.msk.bf16.gmra.mxu0 %vm315_vm0, %v6799_v17 }
  0xf0   : > { %6710 = vmatprep.mubr.msk.bf16.mxu0 %vm6864_vm1, %v6863_v5 }
  0xf1   : > { %6693 = vmatmul.mubr.msk.bf16.gmra.mxu1 %vm315_vm0, %v6799_v17 }
  0xf2   : > { %6696 = vmatprep.mubr.msk.bf16.mxu1 %vm6864_vm1, %v6863_v5 }
  0xf7   : > { %6711 = vmatmul.mubr.msk.bf16.gmra.mxu0 %vm315_vm0, %v6800_v20 }
  0xf8   : > { %6730 = vmatprep.mubr.msk.bf16.mxu0 %vm6864_vm1, %v6863_v5 }
  0xf9   : > { %6697 = vmatmul.mubr.msk.bf16.gmra.mxu1 %vm315_vm0, %v6800_v20 }
  0xfa   : > { %6716 = vmatprep.mubr.msk.bf16.mxu1 %vm6864_vm1, %v6863_v5 }
  0xff   : > { %6731 = vmatmul.mubr.msk.bf16.vlgmr.msra.gmra.mxu0 %vm315_vm0, %v6798_v11 }
 0x100   : > { %6734 = vmatprep.mubr.msk.bf16.mxu0 %vm6864_vm1, %v6863_v5 }
 0x101   : > { %6717 = vmatmul.mubr.msk.bf16.vlgmr.msra.gmra.mxu1 %vm315_vm0, %v6798_v11 }
 0x102   : > { %6720 = vmatprep.mubr.msk.bf16.mxu1 %vm6864_vm1, %v6863_v5 }
 0x107   : > { %6735 = vmatmul.mubr.msk.bf16.gmra.mxu0 %vm315_vm0, %v6799_v17 }
 0x108   : > { %6738 = vmatprep.mubr.msk.bf16.mxu0 %vm6864_vm1, %v6863_v5 }
 0x109   : > { %6721 = vmatmul.mubr.msk.bf16.gmra.mxu1 %vm315_vm0, %v6799_v17 }
 0x10a   : > { %6724 = vmatprep.mubr.msk.bf16.mxu1 %vm6864_vm1, %v6863_v5 }
 0x10f   : > { %6739 = vmatmul.mubr.msk.bf16.gmra.mxu0 %vm315_vm0, %v6800_v20 }
 0x110   : > { %1679 = vmatprep.mubr.bf16.mxu0 %v10033_v21 }
 0x111   : > { %6725 = vmatmul.mubr.msk.bf16.gmra.mxu1 %vm315_vm0, %v6800_v20 }
 0x112   : > { %1597 = vmatprep.mubr.bf16.mxu1 %v10033_v21 }
 0x1a7   : > { %v514_v22 = vpop.f32.mrf.mxu0 }
 0x1a9   : > { %v458_v23 = vpop.f32.mrf.mxu1  ;;  %v6704_v24 = vpop.f32.mrf.mxu0 }
 0x1ab   : > { %v6690_v25 = vpop.f32.mrf.mxu1  ;;  %v517_v26 = vpop.f32.mrf.mxu0 }
 0x1ac   : > { %v7014_v27 = vpack.c.bf16 %v517_v26, %v514_v22 }
 0x1ad   : > { %v461_v28 = vpop.f32.mrf.mxu1  ;;  %v6705_v29 = vpop.f32.mrf.mxu0 }
 0x1ae   : > { %v7016_v30 = vpack.c.bf16 %v461_v28, %v458_v23  ;;  %1106 = vrot.lane.b32.xlu0 %v7014_v27, %s6866_s9  ;;  %1916 = vrot.lane.b32.xlu1 %v7014_v27, %s6867_s10  ;;  %v2563_v33 = vshll.u32 %v7014_v27, 16  ;;  %v665_v44 = vshrl.u32 %v7014_v27, 16  ;;  %v4503_v46 = vrot.slane %v7014_v27, 1 }
 0x1af   : > { %v6691_v31 = vpop.f32.mrf.mxu1  ;;  %v522_v32 = vpop.f32.mrf.mxu0 }
 0x1b0   : > { %v2547_v36 = vshll.u32 %v7016_v30, 16  ;;  %v2565_v39 = vrot.slane %v2563_v33, 1  ;;  %v4498_v51 = vrot.slane %v7016_v30, 1  ;;  %v664_v52 = vshrl.u32 %v7016_v30, 16 }
 0x1b1   : > { %v466_v34 = vpop.f32.mrf.mxu1  ;;  %v6708_v35 = vpop.f32.mrf.mxu0 }
 0x1b2   : > { %1102 = vrot.lane.b32.xlu0 %v7016_v30, %s6866_s9  ;;  %v2549_v43 = vrot.slane %v2547_v36, 1  ;;  %v2566_v53 = vor.u32 %v2565_v39, %v665_v44 }
 0x1b3   : > { %v6694_v37 = vpop.f32.mrf.mxu1  ;;  %v525_v38 = vpop.f32.mrf.mxu0 }
 0x1b4   : > { %v7026_v40 = vpack.c.bf16 %v525_v38, %v522_v32  ;;  %v2550_v61 = vor.u32 %v2549_v43, %v664_v52 }
 0x1b5   : > { %v469_v41 = vpop.f32.mrf.mxu1  ;;  %v6709_v42 = vpop.f32.mrf.mxu0 }
 0x1b6   : > { %v7029_v45 = vpack.c.bf16 %v469_v41, %v466_v34  ;;  %1912 = vrot.lane.b32.xlu0 %v7016_v30, %s6867_s10  ;;  %1108 = vrot.lane.b32.xlu1 %v7026_v40, %s6866_s9  ;;  %v4504_v47 = vrot.slane %v7026_v40, 1  ;;  %v2567_v48 = vshll.u32 %v7026_v40, 16  ;;  %v687_v13 = vshrl.u32 %v7026_v40, 16 }
 0x1b7   : > { %v6695_v49 = vpop.f32.mrf.mxu1  ;;  %v530_v50 = vpop.f32.mrf.mxu0 }
 0x1b8   : > { %v653_v54 = vpack.c.bf16 %v530_v50, %v530_v50  ;;  %v4499_v55 = vrot.slane %v7029_v45, 1  ;;  %v4505_v56 = vsel %vm4497_vm2, %v4503_v46, %v4504_v47  ;;  %v2551_v57 = vshll.u32 %v7029_v45, 16 }
 0x1b9   : > { %v474_v58 = vpop.f32.mrf.mxu1  ;;  %v6712_v59 = vpop.f32.mrf.mxu0  ;;  %v4523_v60 = vshrl.u32 %v4505_v56, 16  ;;  %v2569_v62 = vrot.slane %v2567_v48, 1  ;;  %v7049_v63 = vpack.i.b16 %v7026_v40, %v7029_v45  ;;  %v686_v12 = vshrl.u32 %v7029_v45, 16 }
 0x1ba   : > { %v2574_v0 = vshll.u32 %v653_v54, 16  ;;  %v4506_v1 = vrot.slane %v653_v54, 1  ;;  %v650_v2 = vpack.c.bf16 %v474_v58, %v474_v58  ;;  %1914 = vrot.lane.b32.xlu0 %v7029_v45, %s6867_s10  ;;  %1918 = vrot.lane.b32.xlu1 %v7026_v40, %s6867_s10  ;;  %v4500_v3 = vsel %vm4497_vm2, %v4498_v51, %v4499_v55 }
 0x1bb   : > { %v6698_v4 = vpop.f32.mrf.mxu1  ;;  %v533_v5 = vpop.f32.mrf.mxu0  ;;  %v4522_v6 = vshrl.u32 %v4500_v3, 16  ;;  %v7056_v7 = vpack.i.b16 %v4505_v56, %v4500_v3  ;;  %v2553_v8 = vrot.slane %v2551_v57, 1  ;;  %v2570_v9 = vsel %vm2545_vm3, %v2566_v53, %v2569_v62 }
 0x1bc   : > { %v2558_v10 = vshll.u32 %v650_v2, 16  ;;  %v4501_v11 = vrot.slane %v650_v2, 1  ;;  %v2576_v14 = vrot.slane %v2574_v0, 1  ;;  %v2615_v19 = vshrl.u32 %v2570_v9, 16 }
 0x1bd   : > { %v477_v15 = vpop.f32.mrf.mxu1  ;;  %v6713_v16 = vpop.f32.mrf.mxu0  ;;  %v7061_v17 = vpack.i.b16 %v4523_v60, %v4522_v6  ;;  %v2554_v18 = vsel %vm2545_vm3, %v2550_v61, %v2553_v8  ;;  %v7071_v29 = vsel %vm4497_vm2, %v4504_v47, %v4506_v1  ;;  %v2556_v31 = vor.u32 %v2553_v8, %v686_v12 }
 0x1be   : > { %v2560_v20 = vrot.slane %v2558_v10, 1  ;;  %5135 = vrot.lane.b32.xlu0 %v4500_v3, %s6866_s9  ;;  %1104 = vrot.lane.b32.xlu1 %v7029_v45, %s6866_s9  ;;  %v2614_v22 = vshrl.u32 %v2554_v18, 16  ;;  %v7067_v23 = vpack.i.b16 %v2570_v9, %v2554_v18  ;;  %v4502_v24 = vsel %vm4497_vm2, %v4499_v55, %v4501_v11 }
 0x1bf   : > { %v6699_v25 = vpop.f32.mrf.mxu1  ;;  %v626_v26 = vpop.f32.mrf.mxu0  ;;  %v4538_v28 = vshrl.u32 %v4502_v24, 16  ;;  %v2572_v32 = vor.u32 %v2569_v62, %v687_v13  ;;  %v7076_v34 = vpack.i.b16 %v7071_v29, %v4502_v24  ;;  %v4539_v37 = vshrl.u32 %v7071_v29, 16 }
 0x1c0   : > { %v7073_v33 = vpack.i.b16 %v2615_v19, %v2614_v22  ;;  %v7080_v38 = vsel %vm2545_vm3, %v2556_v31, %v2560_v20  ;;  %v7085_v40 = vpack.i.b16 %v687_v13, %v686_v12  ;;  %v6868_v16 = vmov 1983009808  }
 0x1c1   : > { %v570_v35 = vpop.f32.mrf.mxu1  ;;  %v6732_v36 = vpop.f32.mrf.mxu0  ;;  %v7083_v39 = vsel %vm2545_vm3, %v2572_v32, %v2576_v14  ;;  %v2630_v41 = vshrl.u32 %v7080_v38, 16  ;;  %v7094_v46 = vpack.i.b16 %v4539_v37, %v4538_v28 }
 0x1c2   : > { %5768 = vrot.lane.b32.xlu0 %v4500_v3, %s6867_s10  ;;  %5139 = vrot.lane.b32.xlu1 %v4505_v56, %s6866_s9  ;;  %v7092_v42 = vpack.i.b16 %v7083_v39, %v7080_v38  ;;  %v2631_v47 = vshrl.u32 %v7083_v39, 16 }
 0x1c3   : > { %v6718_v43 = vpop.f32.mrf.mxu1  ;;  %v629_v45 = vpop.f32.mrf.mxu0 }
 0x1c4   : > { %v7097_v50 = vpack.i.b16 %v2631_v47, %v2630_v41  ;;  %v7103_v57 = vpack.c.bf16 %v629_v45, %v626_v26 }
 0x1c5   : > { %v573_v48 = vpop.f32.mrf.mxu1  ;;  %v6733_v49 = vpop.f32.mrf.mxu0 }
 0x1c6   : > { %3227 = vrot.lane.b32.xlu0 %v2554_v18, %s6866_s9  ;;  %5772 = vrot.lane.b32.xlu1 %v4505_v56, %s6867_s10  ;;  %v7105_v60 = vpack.c.bf16 %v573_v48, %v570_v35  ;;  %v2595_v56 = vshll.u32 %v7103_v57, 16  ;;  %v4513_v6 = vrot.slane %v7103_v57, 1  ;;  %v673_v19 = vshrl.u32 %v7103_v57, 16 }
 0x1c7   : > { %v6719_v51 = vpop.f32.mrf.mxu1  ;;  %v634_v53 = vpop.f32.mrf.mxu0 }
 0x1c8   : > { %v2579_v4 = vshll.u32 %v7105_v60, 16  ;;  %v4508_v8 = vrot.slane %v7105_v60, 1  ;;  %v2597_v13 = vrot.slane %v2595_v56, 1  ;;  %v672_v28 = vshrl.u32 %v7105_v60, 16 }
 0x1c9   : > { %v578_v54 = vpop.f32.mrf.mxu1  ;;  %v6736_v55 = vpop.f32.mrf.mxu0 }
 0x1ca   : > { %3860 = vrot.lane.b32.xlu0 %v2554_v18, %s6867_s10  ;;  %3231 = vrot.lane.b32.xlu1 %v2570_v9, %s6866_s9  ;;  %v702_v18 = vlaneseq  ;;  %v2581_v20 = vrot.slane %v2579_v4, 1  ;;  %v7176_v4 = vpack.i.b16 %v7103_v57, %v7105_v60 }
 0x1cb   : > { %v6722_v58 = vpop.f32.mrf.mxu1  ;;  %v637_v59 = vpop.f32.mrf.mxu0 }
 0x1cc   : > { %v7107_v62 = vpack.c.bf16 %v637_v59, %v634_v53  ;;  %v703_v43 = vshrl.u32 %v702_v18, 7  ;;  %v2582_v45 = vor.u32 %v2581_v20, %v672_v28 }
 0x1cd   : > { %v581_v61 = vpop.f32.mrf.mxu1  ;;  %v6737_v0 = vpop.f32.mrf.mxu0 }
 0x1ce   : > { %v7110_v1 = vpack.c.bf16 %v581_v61, %v578_v54  ;;  %5137 = vrot.lane.b32.xlu0 %v4502_v24, %s6866_s9  ;;  %3864 = vrot.lane.b32.xlu1 %v2570_v9, %s6867_s10  ;;  %v4514_v11 = vrot.slane %v7107_v62, 1  ;;  %v2599_v14 = vshll.u32 %v7107_v62, 16  ;;  %v700_v9 = vunpack.c.l.s4 %v6868_v16 }
 0x1cf   : > { %v6723_v2 = vpop.f32.mrf.mxu1  ;;  %v642_v3 = vpop.f32.mrf.mxu0  ;;  %v695_v56 = vshrl.u32 %v7107_v62, 16 }
 0x1d0   : > { %v659_v5 = vpack.c.bf16 %v642_v3, %v642_v3  ;;  %v4509_v12 = vrot.slane %v7110_v1, 1  ;;  %v7126_v31 = vsel %vm4497_vm2, %v4513_v6, %v4514_v11  ;;  %v2601_v35 = vrot.slane %v2599_v14, 1 }
 0x1d1   : > { %v586_v10 = vpop.f32.mrf.mxu1  ;;  %v6740_v15 = vpop.f32.mrf.mxu0  ;;  %v701_v41 = vunpack.c.0.s8 %v700_v9  ;;  %v2583_v47 = vshll.u32 %v7110_v1, 16  ;;  %v6869_v2 = vmov 1934713408   ;;  %v7180_v6 = vpack.i.b16 %v673_v19, %v672_v28 }
 0x1d2   : > { %5770 = vrot.lane.b32.xlu0 %v4502_v24, %s6867_s10  ;;  %5141 = vrot.lane.b32.xlu1 %v7071_v29, %s6866_s9  ;;  %v4516_v26 = vrot.slane %v659_v5, 1  ;;  %v7131_v32 = vsel %vm4497_vm2, %v4508_v8, %v4509_v12  ;;  %v2598_v24 = vor.u32 %v2597_v13, %v673_v19  ;;  %v2606_v53 = vshll.u32 %v659_v5, 16 }
 0x1d3   : > { %v645_v22 = vpop.f32.mrf.mxu0  ;;  %v6726_v25 = vpop.f32.mrf.mxu1  ;;  %v4528_v49 = vpack.i.b16 %v7126_v31, %v7131_v32  ;;  %v7146_v55 = vrot.slane %v2583_v47, 1  ;;  %v7148_v58 = vsub.s32 %v701_v41, %v703_v43  ;;  %v731_v3 = vunpack.c.l.s4 %v6869_v2 }
 0x1d4   : > { %v7141_v51 = vsel %vm4497_vm2, %v4514_v11, %v4516_v26  ;;  %v7144_v54 = vsel %vm2545_vm3, %v2598_v24, %v2601_v35  ;;  %v2608_v0 = vrot.slane %v2606_v53, 1  ;;  %v2604_v5 = vor.u32 %v2601_v35, %v695_v56 }
 0x1d5   : > { %v6741_v36 = vpop.f32.mrf.mxu0  ;;  %v589_v37 = vpop.f32.mrf.mxu1  ;;  %v7159_v59 = vrot.slane %v4528_v49, %v7148_v58  ;;  %v7197_v13 = vpack.i.b16 %v665_v44, %v664_v52  ;;  %v7201_v14 = vpack.i.b16 %v7014_v27, %v7016_v30  ;;  %v732_v15 = vunpack.c.0.s8 %v731_v3 }
 0x1d6   : > { %3229 = vrot.lane.b32.xlu0 %v7080_v38, %s6866_s9  ;;  %5774 = vrot.lane.b32.xlu1 %v7071_v29, %s6867_s10  ;;  %v7156_v29 = vsel %vm2545_vm3, %v2582_v45, %v7146_v55  ;;  %v7185_v11 = vsel %vm2545_vm3, %v2604_v5, %v2608_v0  ;;  %v720_v16 = vrot.slane %v7176_v4, %v7148_v58  ;;  %v2623_v18 = vshrl.u32 %v7144_v54, 16 }
 0x1d7   : > { %v6727_v48 = vpop.f32.mrf.mxu1  ;;  %v7163_v61 = vpack.i.b16 %v7144_v54, %v7156_v29  ;;  %v7205_v9 = vpack.c.bf16 %v586_v10, %v586_v10  ;;  %v2622_v19 = vshrl.u32 %v7156_v29, 16  ;;  %v7219_v27 = vrot.slane %v7197_v13, %v7148_v58 }
 0x1d8   : > { %v705_v30 = vrot.slane %v7201_v14, %v7148_v58  ;;  %v7225_v44 = vpack.i.b16 %v10033_v21, %v10033_v21  ;;  %v7227_v52 = vsub.s32 %v732_v15, %v703_v43  ;;  %v7247_v35 = vrot.slane %v7067_v23, %v7148_v58 }
 0x1d9   : > { %v4511_v10 = vrot.slane %v7205_v9, 1  ;;  %v2624_v22 = vpack.i.b16 %v2623_v18, %v2622_v19  ;;  %v7237_v28 = vrot.slane %v7163_v61, %v7148_v58  ;;  %v7251_v36 = vrot.slane %v7073_v33, %v7148_v58 }
 0x1da   : > { %3862 = vrot.lane.b32.xlu0 %v7080_v38, %s6867_s10  ;;  %3233 = vrot.lane.b32.xlu1 %v7083_v39, %s6866_s9  ;;  %v7168_v38 = vrot.slane %v7056_v7, %v7148_v58  ;;  %v728_v20 = vcombine.low %v705_v30, %v720_v16  ;;  %v4550_v25 = vcombine.high %v7056_v7, %v7225_v44  ;;  %v4547_v3 = vshrl.u32 %v7141_v51, 16 }
 0x1db   : > { %v4565_v26 = vcombine.high %v4528_v49, %v7225_v44  ;;  %v2642_v24 = vcombine.high %v7067_v23, %v7225_v44  ;;  %v729_v7 = vcombine.high %v705_v30, %v720_v16  ;;  %v7262_v43 = vsel %vm4497_vm2, %v4509_v12, %v4511_v10 }
 0x1dc   : > { %v4580_v8 = vcombine.low %v7168_v38, %v7159_v59  ;;  %v7257_v41 = vrot.slane %v728_v20, %v7227_v52  ;;  %v7265_v45 = vrot.slane %v2624_v22, %v7148_v58  ;;  %v7272_v48 = vrot.slane %v4550_v25, %v7148_v58 }
 0x1dd   : > { %v7275_v49 = vrot.slane %v4565_v26, %v7148_v58  ;;  %v2708_v0 = vcombine.high %v7073_v33, %v7225_v44  ;;  %v2657_v2 = vcombine.high %v7163_v61, %v7225_v44  ;;  %v4546_v5 = vshrl.u32 %v7262_v43, 16 }
 0x1de   : > { %3866 = vrot.lane.b32.xlu1 %v7083_v39, %s6867_s10  ;;  %1114 = vrot.lane.b32.xlu0 %v7103_v57, %s6866_s9  ;;  %10091 = vst [vmem:[#allocation6_spill] sm:$0xff] %v7257_v41  ;;  %v760_v16 = vcombine.high %v7257_v41, %v10033_v21  ;;  %v7296_v18 = vrot.slane %v729_v7, %v7227_v52 }
 0x1df   : > { %v4544_v19 = vpack.i.b16 %v7141_v51, %v7262_v43  ;;  %v779_v61 = vcombine.high %v7180_v6, %v7225_v44  ;;  %v713_v30 = vcombine.high %v7176_v4, %v7225_v44  ;;  %v2723_v10 = vcombine.high %v2624_v22, %v7225_v44 }
 0x1e0   : > { %10092 = vst [vmem:[#allocation7_spill] sm:$0xff] %v7296_v18  ;;  %v7311_v20 = vrot.slane %v2708_v0, %v7148_v58  ;;  %v7314_v25 = vrot.slane %v2642_v24, %v7148_v58  ;;  %v7317_v26 = vrot.slane %v2657_v2, %v7148_v58  ;;  %v761_v7 = vcombine.high %v7296_v18, %v10033_v21 }
 0x1e1   : > { %v7324_v4 = vrot.slane %v4544_v19, %v7148_v58  ;;  %v7327_v22 = vrot.slane %v2723_v10, %v7148_v58  ;;  %v764_v0 = vcombine.high %v7197_v13, %v7225_v44  ;;  %v698_v24 = vcombine.high %v7201_v14, %v7225_v44 }
 0x1e2   : > { %1924 = vrot.lane.b32.xlu1 %v7103_v57, %s6867_s10  ;;  %1920 = vrot.lane.b32.xlu0 %v7105_v60, %s6867_s10  ;;  %v7209_v57 = vrot.slane %v7180_v6, %v7148_v58  ;;  %v4748_v14 = vcombine.high %v7094_v46, %v7225_v44 }
 0x1e4   : > { %v795_v6 = vcombine.high %v7219_v27, %v7209_v57 }
 0x1e6   : > { %1110 = vrot.lane.b32.xlu1 %v7105_v60, %s6866_s9  ;;  %1112 = vrot.lane.b32.xlu0 %v7110_v1, %s6866_s9  ;;  %v794_v60 = vcombine.low %v7219_v27, %v7209_v57  ;;  %v7339_v57 = vrot.slane %v7076_v34, %v7148_v58  ;;  %v727_v27 = vrot.slane %v713_v30, %v7148_v58 }
 0x1e8   : > { %v7254_v37 = vrot.slane %v794_v60, %v7227_v52  ;;  %v4548_v60 = vpack.i.b16 %v4547_v3, %v4546_v5  ;;  %v4697_v5 = vcombine.high %v4544_v19, %v7225_v44  ;;  %v809_v3 = vrot.slane %v795_v6, %v7227_v52 }
 0x1e9   : > { %v4682_v19 = vcombine.high %v7076_v34, %v7225_v44  ;;  %v712_v6 = vrot.slane %v698_v24, %v7148_v58 }
 0x1ea   : > { %1116 = vrot.lane.b32.xlu1 %v7107_v62, %s6866_s9  ;;  %1922 = vrot.lane.b32.xlu0 %v7110_v1, %s6867_s10  ;;  %v7355_v10 = vrot.slane %v4548_v60, %v7148_v58  ;;  %v7377_v34 = vrot.slane %v4697_v5, %v7148_v58  ;;  %v4763_v2 = vcombine.high %v4548_v60, %v7225_v44 }
 0x1eb   : > { %v745_v33 = vcombine.high %v712_v6, %v727_v27  ;;  %v7381_v13 = vrot.slane %v4682_v19, %v7148_v58  ;;  %v827_v19 = vcombine.high %v809_v3, %v10033_v21 }
 0x1ed   : > { %v7397_v5 = vrot.slane %v745_v33, %v7227_v52 }
 0x1ee   : > { %1926 = vrot.lane.b32.xlu1 %v7107_v62, %s6867_s10  ;;  %963 = vrot.lane.b32.xlu0 %v7254_v37, %s6870_s14 }
 0x1ef   : > { %10093 = vst [vmem:[#allocation8_spill] sm:$0xff] %v7397_v5  ;;  %v763_v33 = vcombine.high %v7397_v5, %v10033_v21 }
 0x1f2   : > { %5147 = vrot.lane.b32.xlu1 %v7126_v31, %s6866_s9  ;;  %966 = vrot.lane.b32.xlu0 %v760_v16, %s6871_s15  ;;  %v7352_v16 = vrot.slane %v7094_v46, %v7148_v58  ;;  %v7391_v46 = vrot.slane %v4763_v2, %v7148_v58  ;;  %v826_v2 = vcombine.high %v7254_v37, %v10033_v21 }
 0x1f6   : > { %5780 = vrot.lane.b32.xlu1 %v7126_v31, %s6867_s10  ;;  %975 = vrot.lane.b32.xlu0 %v761_v7, %s6871_s15  ;;  %v793_v7 = vrot.slane %v779_v61, %v7148_v58  ;;  %v778_v61 = vrot.slane %v764_v0, %v7148_v58  ;;  %v7388_v0 = vrot.slane %v4748_v14, %v7148_v58 }
 0x1f8   : > { %v810_v30 = vcombine.low %v778_v61, %v793_v7  ;;  %v811_v37 = vcombine.high %v778_v61, %v793_v7  ;;  %v692_v7 = vpack.i.b16 %v7107_v62, %v7110_v1  ;;  %v903_v62 = vrot.slane %v7085_v40, %v7148_v58 }
 0x1fa   : > { %972 = vrot.lane.b32.xlu1 %v809_v3, %s6870_s14  ;;  %5143 = vrot.lane.b32.xlu0 %v7131_v32, %s6866_s9  ;;  %v818_v24 = vrot.slane %v810_v30, %v7227_v52  ;;  %v744_v30 = vcombine.low %v712_v6, %v727_v27  ;;  %v825_v27 = vrot.slane %v811_v37, %v7227_v52  ;;  %v694_v6 = vshrl.u32 %v7110_v1, 16 }
 0x1fb   : > { %v837_v1 = vrot.slane %v7049_v63, %v7148_v58 }
 0x1fc   : > { %v7416_v14 = vrot.slane %v744_v30, %v7227_v52  ;;  %v828_v3 = vcombine.high %v818_v24, %v10033_v21 }
 0x1fe   : > { %3239 = vrot.lane.b32.xlu1 %v7144_v54, %s6866_s9  ;;  %5776 = vrot.lane.b32.xlu0 %v7131_v32, %s6867_s10  ;;  %10094 = vst [vmem:[#allocation9_spill] sm:$0xff] %v7416_v14 }
 0x202   : > { %3872 = vrot.lane.b32.xlu1 %v7144_v54, %s6867_s10  ;;  %981 = vrot.lane.b32.xlu0 %v818_v24, %s6870_s14  ;;  %v762_v54 = vcombine.high %v7416_v14, %v10033_v21  ;;  %v2588_v24 = vor.u32 %v7146_v55, %v694_v6 }
 0x206   : > { %969 = vrot.lane.b32.xlu1 %v826_v2, %s6872_s16  ;;  %993 = vrot.lane.b32.xlu0 %v763_v33, %s6871_s15  ;;  %v852_v33 = vrot.slane %v692_v7, %v7148_v58 }
 0x208   : > { %v861_v30 = vcombine.high %v837_v1, %v852_v33 }
 0x20a   : > { %978 = vrot.lane.b32.xlu1 %v827_v19, %s6872_s16  ;;  %3235 = vrot.lane.b32.xlu0 %v7156_v29, %s6866_s9  ;;  %v2590_v19 = vshll.u32 %v7205_v9, 16  ;;  %v829_v9 = vcombine.high %v825_v27, %v10033_v21 }
 0x20c   : > { %v2592_v61 = vrot.slane %v2590_v19, 1  ;;  %v7474_v19 = vrot.slane %v861_v30, %v7227_v52 }
 0x20e   : > { %984 = vrot.lane.b32.xlu1 %v762_v54, %s6871_s15  ;;  %3868 = vrot.lane.b32.xlu0 %v7156_v29, %s6867_s10  ;;  %v696_v29 = vpack.i.b16 %v695_v56, %v694_v6  ;;  %v7449_v56 = vsel %vm2545_vm3, %v2588_v24, %v2592_v61  ;;  %v845_v54 = vcombine.high %v692_v7, %v7225_v44 }
 0x20f   : > { %10096 = vst [vmem:[#allocation11_spill] sm:$0xff] %v7474_v19  ;;  %v896_v7 = vcombine.high %v7085_v40, %v7225_v44  ;;  %v830_v24 = vcombine.high %v7049_v63, %v7225_v44  ;;  %v893_v30 = vcombine.high %v7474_v19, %v10033_v21 }
 0x210   : > { %v918_v2 = vrot.slane %v696_v29, %v7148_v58  ;;  %v911_v61 = vcombine.high %v696_v29, %v7225_v44  ;;  %v859_v60 = vrot.slane %v845_v54, %v7148_v58 }
 0x211   : > { %v910_v63 = vrot.slane %v896_v7, %v7148_v58 }
 0x212   : > { %990 = vrot.lane.b32.xlu1 %v825_v27, %s6870_s14  ;;  %987 = vrot.lane.b32.xlu0 %v828_v3, %s6872_s16  ;;  %v926_v55 = vcombine.low %v903_v62, %v918_v2  ;;  %v925_v40 = vrot.slane %v911_v61, %v7148_v58 }
 0x214   : > { %v934_v3 = vrot.slane %v926_v55, %v7227_v52  ;;  %v942_v61 = vcombine.low %v910_v63, %v925_v40 }
 0x216   : > { %5149 = vrot.lane.b32.xlu1 %v7141_v51, %s6866_s9  ;;  %5145 = vrot.lane.b32.xlu0 %v7262_v43, %s6866_s9  ;;  %v958_v47 = vcombine.high %v934_v3, %v10033_v21 }
 0x21a   : > { %5782 = vrot.lane.b32.xlu1 %v7141_v51, %s6867_s10  ;;  %5778 = vrot.lane.b32.xlu0 %v7262_v43, %s6867_s10  ;;  %v860_v43 = vcombine.low %v837_v1, %v852_v33  ;;  %v4530_v33 = vshrl.u32 %v7131_v32, 16  ;;  %v927_v1 = vcombine.high %v903_v62, %v918_v2 }
 0x21c   : > { %v7471_v6 = vrot.slane %v860_v43, %v7227_v52  ;;  %v941_v2 = vrot.slane %v927_v1, %v7227_v52 }
 0x21e   : > { %996 = vrot.lane.b32.xlu1 %v829_v9, %s6872_s16  ;;  %3237 = vrot.lane.b32.xlu0 %v7449_v56, %s6866_s9  ;;  %10095 = vst [vmem:[#allocation10_spill] sm:$0xff] %v7471_v6  ;;  %v4531_v9 = vshrl.u32 %v7126_v31, 16  ;;  %v892_v29 = vcombine.high %v7471_v6, %v10033_v21  ;;  %v844_v31 = vrot.slane %v830_v24, %v7148_v58 }
 0x21f   : > { %v10127_v6 = vcombine.low %v7352_v16, %v7355_v10 }
 0x220   : > { %v7458_v51 = vpop.permute.xlu0 %1106  ;;  %v7465_v37 = vpop.permute.xlu1 %1916  ;;  %v4532_v32 = vpack.i.b16 %v4531_v9, %v4530_v33  ;;  %v876_v53 = vcombine.low %v844_v31, %v859_v60  ;;  %v877_v54 = vcombine.high %v844_v31, %v859_v60  ;;  %v959_v9 = vcombine.high %v941_v2, %v10033_v21 }
 0x221   : > { %v950_v33 = vrot.slane %v942_v61, %v7227_v52  ;;  %v7717_v19 = vrot.slane %v10127_v6, %v7227_v52 }
 0x222   : > { %3241 = vrot.lane.b32.xlu1 %v7185_v11, %s6866_s9  ;;  %3870 = vrot.lane.b32.xlu0 %v7449_v56, %s6867_s10  ;;  %v4638_v7 = vrot.slane %v4532_v32, %v7148_v58  ;;  %v7516_v1 = vrot.slane %v876_v53, %v7227_v52  ;;  %s9930_s9 = scalar_lea.vmem [#allocation3], %s6541_s30 }
 0x224   : > { %v7467_v27 = vpop.permute.xlu0 %1102  ;;  %10097 = vst [vmem:[#allocation12_spill] sm:$0xff] %v7516_v1  ;;  %v894_v31 = vcombine.high %v7516_v1, %v10033_v21 }
 0x226   : > { %3874 = vrot.lane.b32.xlu1 %v7185_v11, %s6867_s10  ;;  %999 = vrot.lane.b32.xlu0 %v934_v3, %s6870_s14  ;;  %v7519_v3 = vrot.slane %v877_v54, %v7227_v52  ;;  %s6654_s10 = sshll.u32 %s6938_s6, 10  ;;  %s6464_s6 = scalar_lea.sflag [#allocation4], %s270_s25 }
 0x227   : > { %s9980_s17 = scalar_lea.hbm %s10032_s7, %s6654_s10 }
 0x228   : > { %v7486_v55 = vpop.permute.xlu0 %1912  ;;  %v7488_v43 = vpop.permute.xlu1 %1108  ;;  %10098 = vst [vmem:[#allocation13_spill] sm:$0xff] %v7519_v3  ;;  %v895_v53 = vcombine.high %v7519_v3, %v10033_v21  ;;  %v7545_v21 = vrot.slane %v4580_v8, %v7227_v52 }
 0x22a   : > { %1002 = vrot.lane.b32.xlu1 %v892_v29, %s6871_s15  ;;  %1011 = vrot.lane.b32.xlu0 %v893_v30, %s6871_s15  ;;  %10101 = vst [vmem:[#allocation16_spill] sm:$0xff] %v7545_v21 }
 0x22c   : > { %v7501_v62 = vpop.permute.xlu0 %1914  ;;  %v7503_v15 = vpop.permute.xlu1 %1918 }
 0x22e   : > { %1008 = vrot.lane.b32.xlu1 %v941_v2, %s6870_s14  ;;  %1005 = vrot.lane.b32.xlu0 %v958_v47, %s6872_s16  ;;  %v4623_v47 = vrot.slane %v7061_v17, %v7148_v58  ;;  %v943_v2 = vcombine.high %v910_v63, %v925_v40 }
 0x230   : > { %v7509_v29 = vpop.permute.xlu0 %5135  ;;  %v7511_v24 = vpop.permute.xlu1 %1104  ;;  %v4646_v61 = vcombine.low %v4623_v47, %v4638_v7  ;;  %v957_v23 = vrot.slane %v943_v2, %v7227_v52  ;;  %v4647_v39 = vcombine.high %v4623_v47, %v4638_v7  ;;  %v10103_v7 = vcombine.high %v7168_v38, %v7159_v59 }
 0x231   : > { %v4616_v59 = vcombine.high %v7061_v17, %v7225_v44 }
 0x232   : > { %1014 = vrot.lane.b32.xlu1 %v959_v9, %s6872_s16  ;;  %1017 = vrot.lane.b32.xlu0 %v950_v33, %s6870_s14  ;;  %v4654_v12 = vrot.slane %v4646_v61, %v7227_v52  ;;  %v7560_v47 = vrot.slane %v10103_v7, %v7227_v52 }
 0x233   : > { %v4630_v17 = vrot.slane %v4616_v59, %v7148_v58 }
 0x234   : > { %v7525_v60 = vpop.permute.xlu0 %5768  ;;  %v7527_v30 = vpop.permute.xlu1 %5139  ;;  %10104 = vst [vmem:[#allocation17_spill] sm:$0xff] %v7560_v47 }
 0x235   : > { %10099 = vst [vmem:[#allocation14_spill] sm:$0xff] %v7525_v60 }
 0x236   : > { %1020 = vrot.lane.b32.xlu1 %v894_v31, %s6871_s15  ;;  %1029 = vrot.lane.b32.xlu0 %v895_v53, %s6871_s15  ;;  %v4661_v31 = vrot.slane %v4647_v39, %v7227_v52  ;;  %v10102_v53 = vmov 0  }
 0x237   : > { %v4612_v2 = vcombine.high %v7545_v21, %v10102_v53  ;;  %v4613_v39 = vcombine.high %v7560_v47, %v10102_v53  ;;  %v960_v60 = vcombine.high %v950_v33, %v10102_v53  ;;  %v4631_v21 = vcombine.high %v4532_v32, %v7225_v44 }
 0x238   : > { %v7535_v54 = vpop.permute.xlu0 %3227  ;;  %v7537_v9 = vpop.permute.xlu1 %5772  ;;  %v961_v7 = vcombine.high %v957_v23, %v10102_v53  ;;  %v10106_v47 = vcombine.low %v7251_v36, %v7265_v45  ;;  %v10107_v32 = vcombine.low %v7247_v35, %v7237_v28 }
 0x239   : > { %10100 = vst [vmem:[#allocation15_spill] sm:$0xff] %v7537_v9 }
 0x23a   : > { %1026 = vrot.lane.b32.xlu1 %v957_v23, %s6870_s14  ;;  %4815 = vrot.lane.b32.xlu0 %v4654_v12, %s6870_s14  ;;  %v2746_v33 = vrot.slane %v10106_v47, %v7227_v52  ;;  %v10110_v47 = vcombine.high %v7251_v36, %v7265_v45 }
 0x23c   : > { %v7549_v40 = vpop.permute.xlu0 %3860  ;;  %v7551_v63 = vpop.permute.xlu1 %3231  ;;  %v2753_v9 = vrot.slane %v10110_v47, %v7227_v52 }
 0x23e   : > { %4824 = vrot.lane.b32.xlu1 %v4661_v31, %s6870_s14  ;;  %4818 = vrot.lane.b32.xlu0 %v4612_v2, %s6871_s15 }
 0x240   : > { %v7564_v8 = vpop.permute.xlu0 %5137  ;;  %v7566_v61 = vpop.permute.xlu1 %3864 }
 0x242   : > { %4827 = vrot.lane.b32.xlu1 %v4613_v39, %s6871_s15  ;;  %1023 = vrot.lane.b32.xlu0 %v960_v60, %s6872_s16  ;;  %v7589_v39 = vrot.slane %v10107_v32, %v7227_v52  ;;  %v4645_v60 = vrot.slane %v4631_v21, %v7148_v58  ;;  %v10111_v21 = vcombine.high %v7247_v35, %v7237_v28 }
 0x243   : > { %v10113_v28 = vcombine.low %v7272_v48, %v7275_v49 }
 0x244   : > { %v7576_v38 = vpop.permute.xlu0 %5770  ;;  %v7578_v2 = vpop.permute.xlu1 %5141  ;;  %10108 = vst [vmem:[#allocation19_spill] sm:$0xff] %v7589_v39  ;;  %v2704_v32 = vcombine.high %v7589_v39, %v10102_v53  ;;  %v4662_v1 = vcombine.low %v4630_v17, %v4645_v60  ;;  %v4663_v47 = vcombine.high %v4630_v17, %v4645_v60  ;;  %v10115_v60 = vcombine.high %v7272_v48, %v7275_v49 }
 0x245   : > { %10105 = vst [vmem:[#allocation18_spill] sm:$0xff] %v7576_v38  ;;  %v7624_v35 = vrot.slane %v10113_v28, %v7227_v52  ;;  %v4678_v39 = vcombine.high %v4654_v12, %v10102_v53 }
 0x246   : > { %1032 = vrot.lane.b32.xlu1 %v961_v7, %s6872_s16  ;;  %2907 = vrot.lane.b32.xlu0 %v2746_v33, %s6870_s14  ;;  %v7609_v7 = vrot.slane %v10111_v21, %v7227_v52  ;;  %v4670_v45 = vrot.slane %v4662_v1, %v7227_v52  ;;  %v4677_v3 = vrot.slane %v4663_v47, %v7227_v52 }
 0x247   : > { %10114 = vst [vmem:[#allocation22_spill] sm:$0xff] %v7624_v35  ;;  %v4614_v1 = vcombine.high %v7624_v35, %v10102_v53  ;;  %v7639_v17 = vrot.slane %v10115_v60, %v7227_v52  ;;  %v4679_v60 = vcombine.high %v4661_v31, %v10102_v53  ;;  %v10120_v31 = vcombine.high %v7311_v20, %v7327_v22 }
 0x248   : > { %v7595_v23 = vpop.permute.xlu0 %3229  ;;  %v7597_v38 = vpop.permute.xlu1 %5774  ;;  %10112 = vst [vmem:[#allocation21_spill] sm:$0xff] %v7609_v7  ;;  %v2705_v36 = vcombine.high %v7609_v7, %v10102_v53 }
 0x249   : > { %10109 = vst [vmem:[#allocation20_spill] sm:$0xff] %v7597_v38  ;;  %10116 = vst [vmem:[#allocation23_spill] sm:$0xff] %v7639_v17  ;;  %v4615_v47 = vcombine.high %v7639_v17, %v10102_v53  ;;  %v10118_v17 = vcombine.low %v7314_v25, %v7317_v26  ;;  %v2769_v14 = vrot.slane %v10120_v31, %v7227_v52 }
 0x24a   : > { %2916 = vrot.lane.b32.xlu1 %v2753_v9, %s6870_s14  ;;  %2910 = vrot.lane.b32.xlu0 %v2704_v32, %s6871_s15  ;;  %v2771_v31 = vcombine.high %v2753_v9, %v10102_v53 }
 0x24b   : > { %v7665_v12 = vrot.slane %v10118_v17, %v7227_v52 }
 0x24c   : > { %v7613_v59 = vpop.permute.xlu0 %3862  ;;  %v7615_v38 = vpop.permute.xlu1 %3233 }
 0x24d   : > { %10119 = vst [vmem:[#allocation24_spill] sm:$0xff] %v7665_v12  ;;  %v2706_v17 = vcombine.high %v7665_v12, %v10102_v53  ;;  %v4680_v12 = vcombine.high %v4670_v45, %v10102_v53 }
 0x24e   : > { %2919 = vrot.lane.b32.xlu1 %v2705_v36, %s6871_s15  ;;  %4833 = vrot.lane.b32.xlu0 %v4670_v45, %s6870_s14  ;;  %v10128_v45 = vcombine.low %v7339_v57, %v7324_v4 }
 0x250   : > { %v7628_v32 = vpop.permute.xlu1 %3866  ;;  %v7630_v21 = vpop.permute.xlu0 %1114 }
 0x252   : > { %4842 = vrot.lane.b32.xlu1 %v4677_v3, %s6870_s14  ;;  %4836 = vrot.lane.b32.xlu0 %v4614_v1, %s6871_s15  ;;  %v10117_v1 = vcombine.low %v7311_v20, %v7327_v22  ;;  %v2770_v22 = vcombine.high %v2746_v33, %v10102_v53 }
 0x254   : > { %v7643_v36 = vpop.permute.xlu1 %1924  ;;  %v7645_v28 = vpop.permute.xlu0 %1920  ;;  %v2762_v35 = vrot.slane %v10117_v1, %v7227_v52  ;;  %v10121_v1 = vcombine.high %v7314_v25, %v7317_v26 }
 0x256   : > { %4845 = vrot.lane.b32.xlu1 %v4615_v47, %s6871_s15  ;;  %4821 = vrot.lane.b32.xlu0 %v4678_v39, %s6872_s16  ;;  %v7681_v5 = vrot.slane %v10121_v1, %v7227_v52  ;;  %v2638_v1 = vshrl.u32 %v7449_v56, 16 }
 0x258   : > { %v7652_v48 = vpop.permute.xlu1 %1110  ;;  %v7654_v49 = vpop.permute.xlu0 %1112  ;;  %10122 = vst [vmem:[#allocation25_spill] sm:$0xff] %v7681_v5  ;;  %v2707_v20 = vcombine.high %v7681_v5, %v10102_v53  ;;  %v2636_v5 = vpack.i.b16 %v7185_v11, %v7449_v56  ;;  %v10131_v56 = vcombine.high %v7352_v16, %v7355_v10  ;;  %v2781_v16 = vrot.slane %v7092_v42, %v7148_v58 }
 0x25a   : > { %4830 = vrot.lane.b32.xlu1 %v4679_v60, %s6872_s16  ;;  %2925 = vrot.lane.b32.xlu0 %v2762_v35, %s6870_s14  ;;  %v7736_v6 = vrot.slane %v10131_v56, %v7227_v52 }
 0x25c   : > { %v7669_v39 = vpop.permute.xlu1 %1116  ;;  %v7671_v47 = vpop.permute.xlu0 %1922 }
 0x25e   : > { %2934 = vrot.lane.b32.xlu1 %v2769_v14, %s6870_s14  ;;  %2928 = vrot.lane.b32.xlu0 %v2706_v17, %s6871_s15  ;;  %v2639_v17 = vshrl.u32 %v7185_v11, 16 }
 0x260   : > { %v7687_v60 = vpop.permute.xlu1 %1926  ;;  %v7689_v7 = vpop.permute.xlu0 %963  ;;  %v2640_v9 = vpack.i.b16 %v2639_v17, %v2638_v1  ;;  %v2796_v17 = vrot.slane %v2636_v5, %v7148_v58 }
 0x261   : > { %10123 = vst [vmem:[#allocation26_spill] sm:$0xff] %v7689_v7  ;;  %v7939_v7 = vpack.i.b16 %v7465_v37, %v7486_v55 }
 0x262   : > { %2937 = vrot.lane.b32.xlu1 %v2707_v20, %s6871_s15  ;;  %2913 = vrot.lane.b32.xlu0 %v2770_v22, %s6872_s16  ;;  %v4681_v22 = vcombine.high %v4677_v3, %v10102_v53 }
 0x264   : > { %v7696_v25 = vpop.permute.xlu1 %5147  ;;  %v7698_v26 = vpop.permute.xlu0 %966 }
 0x265   : > { %10124 = vst [vmem:[#allocation27_spill] sm:$0xff] %v7698_v26 }
 0x266   : > { %2922 = vrot.lane.b32.xlu1 %v2771_v31, %s6872_s16  ;;  %4839 = vrot.lane.b32.xlu0 %v4680_v12, %s6872_s16  ;;  %v7723_v12 = vrot.slane %v10128_v45, %v7227_v52  ;;  %v10132_v31 = vcombine.high %v7339_v57, %v7324_v4  ;;  %v2862_v45 = vrot.slane %v2640_v9, %v7148_v58 }
 0x267   : > { %v2847_v4 = vrot.slane %v7097_v50, %v7148_v58 }
 0x268   : > { %v7706_v33 = vpop.permute.xlu1 %5780  ;;  %v7708_v20 = vpop.permute.xlu0 %975  ;;  %10129 = vst [vmem:[#allocation30_spill] sm:$0xff] %v7723_v12  ;;  %v7742_v1 = vrot.slane %v10132_v31, %v7227_v52  ;;  %v2772_v31 = vcombine.high %v2762_v35, %v10102_v53 }
 0x269   : > { %10125 = vst [vmem:[#allocation28_spill] sm:$0xff] %v7706_v33  ;;  %10126 = vst [vmem:[#allocation29_spill] sm:$0xff] %v7708_v20  ;;  %v2804_v33 = vcombine.low %v2781_v16, %v2796_v17  ;;  %v2871_v18 = vcombine.high %v2847_v4, %v2862_v45 }
 0x26a   : > { %4848 = vrot.lane.b32.xlu1 %v4681_v22, %s6872_s16  ;;  %4851 = vrot.lane.b32.xlu0 %v7717_v19, %s6870_s14  ;;  %10133 = vst [vmem:[#allocation32_spill] sm:$0xff] %v7742_v1  ;;  %v4744_v22 = vcombine.high %v7723_v12, %v10102_v53  ;;  %v4745_v56 = vcombine.high %v7742_v1, %v10102_v53 }
 0x26b   : > { %v2870_v12 = vcombine.low %v2847_v4, %v2862_v45  ;;  %v7773_v1 = vrot.slane %v2804_v33, %v7227_v52  ;;  %v10141_v4 = vcombine.low %v7388_v0, %v7391_v46 }
 0x26c   : > { %v7728_v3 = vpop.permute.xlu1 %972  ;;  %v7730_v11 = vpop.permute.xlu0 %5143 }
 0x26d   : > { %10130 = vst [vmem:[#allocation31_spill] sm:$0xff] %v7728_v3  ;;  %v2805_v3 = vcombine.high %v2781_v16, %v2796_v17  ;;  %10136 = vst [vmem:[#allocation35_spill] sm:$0xff] %v7773_v1 }
 0x26e   : > { %4860 = vrot.lane.b32.xlu1 %v7736_v6, %s6870_s14  ;;  %4854 = vrot.lane.b32.xlu0 %v4744_v22, %s6871_s15  ;;  %v2773_v22 = vcombine.high %v2769_v14, %v10102_v53 }
 0x26f   : > { %v7786_v17 = vrot.slane %v2805_v3, %v7227_v52  ;;  %v2855_v3 = vcombine.high %v2640_v9, %v7225_v44 }
 0x270   : > { %v7755_v57 = vpop.permute.xlu1 %3239  ;;  %v7757_v10 = vpop.permute.xlu0 %5776 }
 0x271   : > { %10134 = vst [vmem:[#allocation33_spill] sm:$0xff] %v7757_v10  ;;  %v7770_v10 = vrot.slane %v2870_v12, %v7227_v52  ;;  %10139 = vst [vmem:[#allocation38_spill] sm:$0xff] %v7786_v17  ;;  %v2836_v12 = vcombine.high %v7773_v1, %v10102_v53  ;;  %v2837_v16 = vcombine.high %v7786_v17, %v10102_v53 }
 0x272   : > { %4863 = vrot.lane.b32.xlu1 %v4745_v56, %s6871_s15  ;;  %2931 = vrot.lane.b32.xlu0 %v2772_v31, %s6872_s16  ;;  %v7783_v56 = vrot.slane %v2871_v18, %v7227_v52  ;;  %v2789_v18 = vcombine.high %v2636_v5, %v7225_v44  ;;  %v4802_v31 = vrot.slane %v10141_v4, %v7227_v52 }
 0x273   : > { %v2774_v1 = vcombine.high %v7092_v42, %v7225_v44  ;;  %v2840_v5 = vcombine.high %v7097_v50, %v7225_v44  ;;  %v10145_v4 = vcombine.high %v7388_v0, %v7391_v46 }
 0x274   : > { %v7765_v20 = vpop.permute.xlu1 %3872  ;;  %v7767_v26 = vpop.permute.xlu0 %981  ;;  %v2803_v50 = vrot.slane %v2789_v18, %v7148_v58  ;;  %v4810_v18 = vcombine.high %v7717_v19, %v10102_v53 }
 0x275   : > { %10135 = vst [vmem:[#allocation34_spill] sm:$0xff] %v7767_v26  ;;  %v2788_v0 = vrot.slane %v2774_v1, %v7148_v58  ;;  %v2854_v46 = vrot.slane %v2840_v5, %v7148_v58  ;;  %v4811_v1 = vcombine.high %v7736_v6, %v10102_v53 }
 0x276   : > { %2940 = vrot.lane.b32.xlu1 %v2773_v22, %s6872_s16  ;;  %2943 = vrot.lane.b32.xlu0 %v7770_v10, %s6870_s14  ;;  %v10142_v22 = vcombine.low %v7381_v13, %v7377_v34 }
 0x278   : > { %v7778_v35 = vpop.permute.xlu1 %969  ;;  %v7780_v14 = vpop.permute.xlu0 %993 }
 0x279   : > { %10137 = vst [vmem:[#allocation36_spill] sm:$0xff] %v7778_v35  ;;  %10138 = vst [vmem:[#allocation37_spill] sm:$0xff] %v7780_v14 }
 0x27a   : > { %2952 = vrot.lane.b32.xlu1 %v7783_v56, %s6870_s14  ;;  %2946 = vrot.lane.b32.xlu0 %v2836_v12, %s6871_s15  ;;  %v7809_v12 = vrot.slane %v10142_v22, %v7227_v52  ;;  %v7825_v22 = vrot.slane %v10145_v4, %v7227_v52 }
 0x27c   : > { %v7793_v33 = vpop.permute.xlu1 %978  ;;  %v7795_v45 = vpop.permute.xlu0 %3235  ;;  %10143 = vst [vmem:[#allocation40_spill] sm:$0xff] %v7809_v12  ;;  %v4746_v14 = vcombine.high %v7809_v12, %v10102_v53 }
 0x27d   : > { %10140 = vst [vmem:[#allocation39_spill] sm:$0xff] %v7793_v33 }
 0x27e   : > { %2955 = vrot.lane.b32.xlu1 %v2837_v16, %s6871_s15  ;;  %4869 = vrot.lane.b32.xlu0 %v4802_v31, %s6870_s14  ;;  %v10146_v16 = vcombine.high %v7381_v13, %v7377_v34 }
 0x280   : > { %v7817_v9 = vpop.permute.xlu1 %984  ;;  %v7819_v17 = vpop.permute.xlu0 %3868  ;;  %v7831_v42 = vrot.slane %v10146_v16, %v7227_v52  ;;  %v2820_v16 = vcombine.low %v2788_v0, %v2803_v50 }
 0x281   : > { %10144 = vst [vmem:[#allocation41_spill] sm:$0xff] %v7817_v9  ;;  %v2869_v9 = vrot.slane %v2855_v3, %v7148_v58 }
 0x282   : > { %10147 = vst [vmem:[#allocation42_spill] sm:$0xff] %v7831_v42  ;;  %4878 = vrot.lane.b32.xlu1 %v7825_v22, %s6870_s14  ;;  %4872 = vrot.lane.b32.xlu0 %v4746_v14, %s6871_s15  ;;  %v4747_v34 = vcombine.high %v7831_v42, %v10102_v53  ;;  %v7860_v26 = vrot.slane %v2820_v16, %v7227_v52 }
 0x283   : > { %v2886_v3 = vcombine.low %v2854_v46, %v2869_v9  ;;  %v2887_v12 = vcombine.high %v2854_v46, %v2869_v9  ;;  %v1130_v9 = vshrl.u32 %v7652_v48, 16  ;;  %v1131_v46 = vshrl.u32 %v7630_v21, 16 }
 0x284   : > { %v7842_v4 = vpop.permute.xlu1 %990  ;;  %v7844_v13 = vpop.permute.xlu0 %987  ;;  %10150 = vst [vmem:[#allocation45_spill] sm:$0xff] %v7860_v26 }
 0x285   : > { %10148 = vst [vmem:[#allocation43_spill] sm:$0xff] %v7842_v4  ;;  %10149 = vst [vmem:[#allocation44_spill] sm:$0xff] %v7844_v13  ;;  %v2821_v13 = vcombine.high %v2788_v0, %v2803_v50  ;;  %v2894_v42 = vrot.slane %v2886_v3, %v7227_v52  ;;  %v2901_v6 = vrot.slane %v2887_v12, %v7227_v52  ;;  %v1122_v0 = vshrl.u32 %v7467_v27, 16 }
 0x286   : > { %4881 = vrot.lane.b32.xlu1 %v4747_v34, %s6871_s15  ;;  %4857 = vrot.lane.b32.xlu0 %v4810_v18, %s6872_s16  ;;  %v2838_v50 = vcombine.high %v7860_v26, %v10102_v53  ;;  %v7881_v3 = vpack.i.b16 %v7630_v21, %v7652_v48  ;;  %v7890_v26 = vpack.i.b16 %v1131_v46, %v1130_v9  ;;  %v1941_v46 = vshrl.u32 %v7643_v36, 16 }
 0x287   : > { %v7870_v18 = vrot.slane %v2821_v13, %v7227_v52  ;;  %v2904_v33 = vcombine.high %v2894_v42, %v10102_v53 }
 0x288   : > { %v7854_v14 = vpop.permute.xlu1 %5149  ;;  %v7856_v5 = vpop.permute.xlu0 %5145  ;;  %v1172_v48 = vrot.slane %v7881_v3, %v7148_v58 }
 0x289   : > { %10153 = vst [vmem:[#allocation48_spill] sm:$0xff] %v7870_v18  ;;  %v2839_v16 = vcombine.high %v7870_v18, %v10102_v53 }
 0x28a   : > { %4866 = vrot.lane.b32.xlu1 %v4811_v1, %s6872_s16  ;;  %2961 = vrot.lane.b32.xlu0 %v2894_v42, %s6870_s14  ;;  %v1123_v1 = vshrl.u32 %v7458_v51, 16 }
 0x28c   : > { %v7864_v19 = vpop.permute.xlu1 %5782  ;;  %v7866_v34 = vpop.permute.xlu0 %5778  ;;  %v7899_v21 = vpack.i.b16 %v1123_v1, %v1122_v0  ;;  %v4812_v0 = vcombine.high %v4802_v31, %v10102_v53  ;;  %v1932_v1 = vshrl.u32 %v7486_v55, 16  ;;  %v4813_v31 = vcombine.high %v7825_v22, %v10102_v53 }
 0x28d   : > { %10151 = vst [vmem:[#allocation46_spill] sm:$0xff] %v7864_v19  ;;  %10152 = vst [vmem:[#allocation47_spill] sm:$0xff] %v7866_v34  ;;  %v2902_v34 = vcombine.high %v7770_v10, %v10102_v53  ;;  %v2903_v10 = vcombine.high %v7783_v56, %v10102_v53  ;;  %v1933_v56 = vshrl.u32 %v7465_v37, 16 }
 0x28e   : > { %2970 = vrot.lane.b32.xlu1 %v2901_v6, %s6870_s14  ;;  %2964 = vrot.lane.b32.xlu0 %v2838_v50, %s6871_s15  ;;  %v7896_v50 = vpack.i.b16 %v7458_v51, %v7467_v27  ;;  %v1940_v51 = vshrl.u32 %v7645_v28, 16  ;;  %v1238_v27 = vrot.slane %v7890_v26, %v7148_v58 }
 0x290   : > { %v7883_v12 = vpop.permute.xlu1 %996  ;;  %v7885_v13 = vpop.permute.xlu0 %3237  ;;  %v7934_v35 = vpack.i.b16 %v1941_v46, %v1940_v51 }
 0x291   : > { %10154 = vst [vmem:[#allocation49_spill] sm:$0xff] %v7883_v12 }
 0x292   : > { %2973 = vrot.lane.b32.xlu1 %v2839_v16, %s6871_s15  ;;  %2949 = vrot.lane.b32.xlu0 %v2902_v34, %s6872_s16  ;;  %v1157_v34 = vrot.slane %v7896_v50, %v7148_v58  ;;  %v1223_v16 = vrot.slane %v7899_v21, %v7148_v58  ;;  %v2048_v37 = vrot.slane %v7934_v35, %v7148_v58 }
 0x294   : > { %v7904_v18 = vpop.permute.xlu1 %3241  ;;  %v7906_v9 = vpop.permute.xlu0 %3870  ;;  %v1180_v19 = vcombine.low %v1157_v34, %v1172_v48  ;;  %v1181_v41 = vcombine.high %v1157_v34, %v1172_v48 }
 0x296   : > { %2958 = vrot.lane.b32.xlu1 %v2903_v10, %s6872_s16  ;;  %4875 = vrot.lane.b32.xlu0 %v4812_v0, %s6872_s16  ;;  %v7932_v10 = vpack.i.b16 %v7643_v36, %v7645_v28  ;;  %v1246_v0 = vcombine.low %v1223_v16, %v1238_v27  ;;  %v2905_v36 = vcombine.high %v2901_v6, %v10102_v53 }
 0x297   : > { %v7950_v28 = vrot.slane %v1180_v19, %v7227_v52  ;;  %v7958_v46 = vrot.slane %v1181_v41, %v7227_v52 }
 0x298   : > { %v7923_v12 = vpop.permute.xlu1 %3874  ;;  %v7925_v4 = vpop.permute.xlu0 %999  ;;  %v1982_v48 = vrot.slane %v7932_v10, %v7148_v58  ;;  %v1254_v55 = vrot.slane %v1246_v0, %v7227_v52 }
 0x299   : > { %10155 = vst [vmem:[#allocation50_spill] sm:$0xff] %v7925_v4  ;;  %v7941_v4 = vpack.i.b16 %v1933_v56, %v1932_v1  ;;  %v1212_v34 = vcombine.high %v7950_v28, %v10102_v53  ;;  %v1247_v1 = vcombine.high %v1223_v16, %v1238_v27  ;;  %v1213_v56 = vcombine.high %v7958_v46, %v10102_v53 }
 0x29a   : > { %4884 = vrot.lane.b32.xlu1 %v4813_v31, %s6872_s16  ;;  %2967 = vrot.lane.b32.xlu0 %v2904_v33, %s6872_s16  ;;  %v1967_v33 = vrot.slane %v7939_v7, %v7148_v58  ;;  %v1231_v16 = vcombine.high %v7890_v26, %v7225_v44 }
 0x29b   : > { %v2033_v19 = vrot.slane %v7941_v4, %v7148_v58 }
 0x29c   : > { %v7944_v22 = vpop.permute.xlu1 %1002  ;;  %v7946_v42 = vpop.permute.xlu0 %1011  ;;  %v1990_v41 = vcombine.low %v1967_v33, %v1982_v48  ;;  %v1991_v0 = vcombine.high %v1967_v33, %v1982_v48  ;;  %v1150_v48 = vcombine.high %v7896_v50, %v7225_v44  ;;  %v1245_v50 = vrot.slane %v1231_v16, %v7148_v58 }
 0x29d   : > { %10156 = vst [vmem:[#allocation51_spill] sm:$0xff] %v7944_v22  ;;  %10157 = vst [vmem:[#allocation52_spill] sm:$0xff] %v7946_v42  ;;  %v2056_v31 = vcombine.low %v2033_v19, %v2048_v37  ;;  %v1261_v42 = vrot.slane %v1247_v1, %v7227_v52  ;;  %v2057_v27 = vcombine.high %v2033_v19, %v2048_v37 }
 0x29e   : > { %2976 = vrot.lane.b32.xlu1 %v2905_v36, %s6872_s16  ;;  %1415 = vrot.lane.b32.xlu0 %v1254_v55, %s6870_s14  ;;  %v1165_v36 = vcombine.high %v7881_v3, %v7225_v44  ;;  %v1216_v3 = vcombine.high %v7899_v21, %v7225_v44  ;;  %v8007_v1 = vrot.slane %v1991_v0, %v7227_v52 }
 0x29f   : > { %v8004_v19 = vrot.slane %v2057_v27, %v7227_v52 }
 0x2a0   : > { %v7966_v6 = vpop.permute.xlu1 %1008  ;;  %v7968_v51 = vpop.permute.xlu0 %1005  ;;  %v1179_v37 = vrot.slane %v1165_v36, %v7148_v58  ;;  %v2023_v16 = vcombine.high %v8007_v1, %v10102_v53 }
 0x2a1   : > { %10158 = vst [vmem:[#allocation53_spill] sm:$0xff] %v7966_v6  ;;  %10159 = vst [vmem:[#allocation54_spill] sm:$0xff] %v7968_v51  ;;  %v7986_v6 = vrot.slane %v2056_v31, %v7227_v52  ;;  %v1975_v31 = vcombine.high %v7932_v10, %v7225_v44  ;;  %v1960_v10 = vcombine.high %v7939_v7, %v7225_v44 }
 0x2a2   : > { %1418 = vrot.lane.b32.xlu1 %v1212_v34, %s6871_s15  ;;  %1427 = vrot.lane.b32.xlu0 %v1213_v56, %s6871_s15  ;;  %v7989_v34 = vrot.slane %v1990_v41, %v7227_v52  ;;  %v1164_v41 = vrot.slane %v1150_v48, %v7148_v58  ;;  %v1230_v56 = vrot.slane %v1216_v3, %v7148_v58 }
 0x2a3   : > { %v2041_v48 = vcombine.high %v7934_v35, %v7225_v44  ;;  %v1279_v35 = vcombine.high %v1261_v42, %v10102_v53 }
 0x2a4   : > { %v7978_v22 = vpop.permute.xlu1 %1014  ;;  %v7980_v51 = vpop.permute.xlu0 %1017  ;;  %v2022_v21 = vcombine.high %v7989_v34, %v10102_v53  ;;  %v1196_v36 = vcombine.low %v1164_v41, %v1179_v37  ;;  %v1262_v3 = vcombine.low %v1230_v56, %v1245_v50 }
 0x2a5   : > { %10160 = vst [vmem:[#allocation55_spill] sm:$0xff] %v7980_v51  ;;  %v1278_v51 = vcombine.high %v1254_v55, %v10102_v53  ;;  %v1989_v55 = vrot.slane %v1975_v31, %v7148_v58 }
 0x2a6   : > { %1424 = vrot.lane.b32.xlu1 %v1261_v42, %s6870_s14  ;;  %2225 = vrot.lane.b32.xlu0 %v7986_v6, %s6870_s14  ;;  %v1270_v7 = vrot.slane %v1262_v3, %v7227_v52 }
 0x2a8   : > { %v7999_v26 = vpop.permute.xlu1 %1020  ;;  %v8001_v33 = vpop.permute.xlu0 %1029 }
 0x2a9   : > { %10161 = vst [vmem:[#allocation56_spill] sm:$0xff] %v7999_v26  ;;  %10162 = vst [vmem:[#allocation57_spill] sm:$0xff] %v8001_v33  ;;  %v1197_v26 = vcombine.high %v1164_v41, %v1179_v37  ;;  %v8040_v37 = vrot.slane %v1196_v36, %v7227_v52  ;;  %v2055_v41 = vrot.slane %v2041_v48, %v7148_v58 }
 0x2aa   : > { %2234 = vrot.lane.b32.xlu1 %v8004_v19, %s6870_s14  ;;  %2228 = vrot.lane.b32.xlu0 %v2022_v21, %s6871_s15  ;;  %v2026_v21 = vcombine.high %v7941_v4, %v7225_v44  ;;  %v1974_v4 = vrot.slane %v1960_v10, %v7148_v58  ;;  %v1263_v48 = vcombine.high %v1230_v56, %v1245_v50 }
 0x2ab   : > { %v1214_v31 = vcombine.high %v8040_v37, %v10102_v53 }
 0x2ac   : > { %v8019_v0 = vpop.permute.xlu1 %1026  ;;  %v8021_v27 = vpop.permute.xlu0 %4815  ;;  %v2006_v3 = vcombine.low %v1974_v4, %v1989_v55  ;;  %v2007_v10 = vcombine.high %v1974_v4, %v1989_v55 }
 0x2ad   : > { %10163 = vst [vmem:[#allocation58_spill] sm:$0xff] %v8019_v0  ;;  %10164 = vst [vmem:[#allocation59_spill] sm:$0xff] %v8021_v27  ;;  %v2088_v0 = vcombine.high %v7986_v6, %v10102_v53  ;;  %v2089_v6 = vcombine.high %v8004_v19, %v10102_v53  ;;  %v1956_v19 = vshrl.u32 %v7671_v47, 16 }
 0x2ae   : > { %2237 = vrot.lane.b32.xlu1 %v2023_v16, %s6871_s15  ;;  %1421 = vrot.lane.b32.xlu0 %v1278_v51, %s6872_s16  ;;  %v8046_v16 = vrot.slane %v1197_v26, %v7227_v52  ;;  %v2040_v51 = vrot.slane %v2026_v21, %v7148_v58  ;;  %v8069_v50 = vrot.slane %v2006_v3, %v7227_v52 }
 0x2af   : > { %v8079_v4 = vrot.slane %v2007_v10, %v7227_v52  ;;  %v8090_v3 = vpack.i.b16 %v7669_v39, %v7654_v49 }
 0x2b0   : > { %v8034_v27 = vpop.permute.xlu1 %4824  ;;  %v8036_v33 = vpop.permute.xlu0 %4818  ;;  %v1215_v26 = vcombine.high %v8046_v16, %v10102_v53  ;;  %10171 = vst [vmem:[#allocation66_spill] sm:$0xff] %v8069_v50 }
 0x2b1   : > { %10165 = vst [vmem:[#allocation60_spill] sm:$0xff] %v8034_v27  ;;  %10166 = vst [vmem:[#allocation61_spill] sm:$0xff] %v8036_v33  ;;  %v2072_v33 = vcombine.low %v2040_v51, %v2055_v41  ;;  %v2073_v27 = vcombine.high %v2040_v51, %v2055_v41  ;;  %v1147_v41 = vshrl.u32 %v7669_v39, 16  ;;  %v1138_v51 = vshrl.u32 %v7511_v24, 16 }
 0x2b2   : > { %1430 = vrot.lane.b32.xlu1 %v1279_v35, %s6872_s16  ;;  %1433 = vrot.lane.b32.xlu0 %v1270_v7, %s6870_s14  ;;  %10174 = vst [vmem:[#allocation69_spill] sm:$0xff] %v8079_v4  ;;  %v2025_v10 = vcombine.high %v8079_v4, %v10102_v53  ;;  %v1304_v39 = vrot.slane %v8090_v3, %v7148_v58 }
 0x2b3   : > { %v2087_v55 = vrot.slane %v2073_v27, %v7227_v52 }
 0x2b4   : > { %v8052_v42 = vpop.permute.xlu1 %4827  ;;  %v8054_v36 = vpop.permute.xlu0 %1023 }
 0x2b5   : > { %10167 = vst [vmem:[#allocation62_spill] sm:$0xff] %v8052_v42  ;;  %10168 = vst [vmem:[#allocation63_spill] sm:$0xff] %v8054_v36  ;;  %v1277_v42 = vrot.slane %v1263_v48, %v7227_v52  ;;  %v2080_v36 = vrot.slane %v2072_v33, %v7227_v52  ;;  %v2024_v33 = vcombine.high %v8069_v50, %v10102_v53  ;;  %v1146_v48 = vshrl.u32 %v7654_v49, 16 }
 0x2b6   : > { %1436 = vrot.lane.b32.xlu1 %v1214_v31, %s6871_s15  ;;  %1445 = vrot.lane.b32.xlu0 %v1215_v26, %s6871_s15  ;;  %v1139_v50 = vshrl.u32 %v7488_v43, 16 }
 0x2b8   : > { %v8062_v21 = vpop.permute.xlu1 %1032  ;;  %v8064_v35 = vpop.permute.xlu0 %2907  ;;  %v8108_v49 = vpack.i.b16 %v1139_v50, %v1138_v51  ;;  %v1280_v50 = vcombine.high %v1270_v7, %v10102_v53  ;;  %v1948_v51 = vshrl.u32 %v7501_v62, 16 }
 0x2b9   : > { %10169 = vst [vmem:[#allocation64_spill] sm:$0xff] %v8062_v21  ;;  %10170 = vst [vmem:[#allocation65_spill] sm:$0xff] %v8064_v35  ;;  %v8099_v21 = vpack.i.b16 %v1147_v41, %v1146_v48  ;;  %v1949_v48 = vshrl.u32 %v7503_v15, 16 }
 0x2ba   : > { %1442 = vrot.lane.b32.xlu1 %v1277_v42, %s6870_s14  ;;  %2243 = vrot.lane.b32.xlu0 %v2080_v36, %s6870_s14 }
 0x2bc   : > { %v8073_v56 = vpop.permute.xlu1 %2916  ;;  %v8075_v31 = vpop.permute.xlu0 %2910 }
 0x2bd   : > { %10172 = vst [vmem:[#allocation67_spill] sm:$0xff] %v8073_v56  ;;  %10173 = vst [vmem:[#allocation68_spill] sm:$0xff] %v8075_v31  ;;  %v1281_v31 = vcombine.high %v1277_v42, %v10102_v53 }
 0x2be   : > { %2252 = vrot.lane.b32.xlu1 %v2087_v55, %s6870_s14  ;;  %2246 = vrot.lane.b32.xlu0 %v2024_v33, %s6871_s15  ;;  %v8105_v33 = vpack.i.b16 %v7488_v43, %v7511_v24  ;;  %v1370_v43 = vrot.slane %v8099_v21, %v7148_v58  ;;  %v1957_v24 = vshrl.u32 %v7687_v60, 16 }
 0x2c0   : > { %v8092_v27 = vpop.permute.xlu1 %2919  ;;  %v8094_v26 = vpop.permute.xlu0 %4833  ;;  %v8141_v35 = vpack.i.b16 %v1957_v24, %v1956_v19 }
 0x2c1   : > { %10175 = vst [vmem:[#allocation70_spill] sm:$0xff] %v8092_v27  ;;  %10176 = vst [vmem:[#allocation71_spill] sm:$0xff] %v8094_v26  ;;  %v2090_v27 = vcombine.high %v2080_v36, %v10102_v53 }
 0x2c2   : > { %2255 = vrot.lane.b32.xlu1 %v2025_v10, %s6871_s15  ;;  %2231 = vrot.lane.b32.xlu0 %v2088_v0, %s6872_s16  ;;  %v1289_v0 = vrot.slane %v8105_v33, %v7148_v58  ;;  %v1355_v10 = vrot.slane %v8108_v49, %v7148_v58 }
 0x2c4   : > { %v8113_v26 = vpop.permute.xlu1 %4842  ;;  %v8115_v41 = vpop.permute.xlu0 %4836  ;;  %v1378_v56 = vcombine.low %v1355_v10, %v1370_v43 }
 0x2c5   : > { %10177 = vst [vmem:[#allocation72_spill] sm:$0xff] %v8113_v26  ;;  %10178 = vst [vmem:[#allocation73_spill] sm:$0xff] %v8115_v41  ;;  %v1312_v41 = vcombine.low %v1289_v0, %v1304_v39  ;;  %v1313_v26 = vcombine.high %v1289_v0, %v1304_v39  ;;  %v8147_v39 = vpack.i.b16 %v7503_v15, %v7501_v62 }
 0x2c6   : > { %2240 = vrot.lane.b32.xlu1 %v2089_v6, %s6872_s16  ;;  %1439 = vrot.lane.b32.xlu0 %v1280_v50, %s6872_s16  ;;  %v8139_v6 = vpack.i.b16 %v7687_v60, %v7671_v47  ;;  %v8149_v50 = vpack.i.b16 %v1949_v48, %v1948_v51  ;;  %v2091_v47 = vcombine.high %v2087_v55, %v10102_v53 }
 0x2c7   : > { %v8158_v60 = vrot.slane %v1312_v41, %v7227_v52  ;;  %v2180_v15 = vrot.slane %v8141_v35, %v7148_v58  ;;  %v1386_v62 = vrot.slane %v1378_v56, %v7227_v52  ;;  %v1379_v51 = vcombine.high %v1355_v10, %v1370_v43 }
 0x2c8   : > { %v8132_v4 = vpop.permute.xlu1 %4845  ;;  %v8134_v7 = vpop.permute.xlu0 %4821  ;;  %v2114_v36 = vrot.slane %v8139_v6, %v7148_v58  ;;  %v2165_v55 = vrot.slane %v8149_v50, %v7148_v58  ;;  %v1363_v10 = vcombine.high %v8099_v21, %v7225_v44 }
 0x2c9   : > { %10179 = vst [vmem:[#allocation74_spill] sm:$0xff] %v8132_v4  ;;  %10180 = vst [vmem:[#allocation75_spill] sm:$0xff] %v8134_v7  ;;  %v1344_v24 = vcombine.high %v8158_v60, %v10102_v53 }
 0x2ca   : > { %1448 = vrot.lane.b32.xlu1 %v1281_v31, %s6872_s16  ;;  %2249 = vrot.lane.b32.xlu0 %v2090_v27, %s6872_s16  ;;  %v8166_v31 = vrot.slane %v1313_v26, %v7227_v52  ;;  %v2099_v27 = vrot.slane %v8147_v39, %v7148_v58  ;;  %v2188_v19 = vcombine.low %v2165_v55, %v2180_v15 }
 0x2cb   : > { %v2189_v43 = vcombine.high %v2165_v55, %v2180_v15 }
 0x2cc   : > { %v8152_v42 = vpop.permute.xlu1 %4830  ;;  %v8154_v0 = vpop.permute.xlu0 %2925  ;;  %v2122_v56 = vcombine.low %v2099_v27, %v2114_v36  ;;  %v1345_v26 = vcombine.high %v8166_v31, %v10102_v53  ;;  %v2123_v4 = vcombine.high %v2099_v27, %v2114_v36  ;;  %v1348_v36 = vcombine.high %v8108_v49, %v7225_v44 }
 0x2cd   : > { %10181 = vst [vmem:[#allocation76_spill] sm:$0xff] %v8152_v42  ;;  %10182 = vst [vmem:[#allocation77_spill] sm:$0xff] %v8154_v0  ;;  %v1393_v42 = vrot.slane %v1379_v51, %v7227_v52  ;;  %v8194_v0 = vrot.slane %v2188_v19, %v7227_v52  ;;  %v8210_v27 = vrot.slane %v2189_v43, %v7227_v52 }
 0x2ce   : > { %2258 = vrot.lane.b32.xlu1 %v2091_v47, %s6872_s16  ;;  %1451 = vrot.lane.b32.xlu0 %v1386_v62, %s6870_s14  ;;  %v1297_v47 = vcombine.high %v8090_v3, %v7225_v44  ;;  %v1282_v3 = vcombine.high %v8105_v33, %v7225_v44  ;;  %v8213_v55 = vrot.slane %v2123_v4, %v7227_v52 }
 0x2cf   : > { %v1377_v33 = vrot.slane %v1363_v10, %v7148_v58  ;;  %v2107_v10 = vcombine.high %v8139_v6, %v7225_v44  ;;  %v1411_v6 = vcombine.high %v1393_v42, %v10102_v53 }
 0x2d0   : > { %v8174_v41 = vpop.permute.xlu1 %2934  ;;  %v8178_v48 = vpop.permute.xlu0 %2928  ;;  %v1311_v21 = vrot.slane %v1297_v47, %v7148_v58  ;;  %v2155_v43 = vcombine.high %v8213_v55, %v10102_v53 }
 0x2d1   : > { %10183 = vst [vmem:[#allocation78_spill] sm:$0xff] %v8174_v41  ;;  %10184 = vst [vmem:[#allocation79_spill] sm:$0xff] %v8178_v48  ;;  %v8284_v41 = vpack.i.b16 %v7696_v25, %v7730_v11 }
 0x2d2   : > { %1454 = vrot.lane.b32.xlu1 %v1344_v24, %s6871_s15  ;;  %1463 = vrot.lane.b32.xlu0 %v1345_v26, %s6871_s15  ;;  %v8197_v24 = vrot.slane %v2122_v56, %v7227_v52  ;;  %v1296_v56 = vrot.slane %v1282_v3, %v7148_v58  ;;  %v1362_v26 = vrot.slane %v1348_v36, %v7148_v58 }
 0x2d3   : > { %v2173_v3 = vcombine.high %v8141_v35, %v7225_v44 }
 0x2d4   : > { %v8186_v7 = vpop.permute.xlu1 %2937  ;;  %v8191_v48 = vpop.permute.xlu0 %2913  ;;  %v2154_v49 = vcombine.high %v8197_v24, %v10102_v53  ;;  %v1328_v19 = vcombine.low %v1296_v56, %v1311_v21  ;;  %v1329_v47 = vcombine.high %v1296_v56, %v1311_v21  ;;  %v1394_v36 = vcombine.low %v1362_v26, %v1377_v33 }
 0x2d5   : > { %10185 = vst [vmem:[#allocation80_spill] sm:$0xff] %v8186_v7  ;;  %10186 = vst [vmem:[#allocation81_spill] sm:$0xff] %v8191_v48  ;;  %v1410_v7 = vcombine.high %v1386_v62, %v10102_v53  ;;  %v2092_v21 = vcombine.high %v8147_v39, %v7225_v44  ;;  %v2121_v62 = vrot.slane %v2107_v10, %v7148_v58 }
 0x2d6   : > { %1460 = vrot.lane.b32.xlu1 %v1393_v42, %s6870_s14  ;;  %2261 = vrot.lane.b32.xlu0 %v8194_v0, %s6870_s14  ;;  %v8246_v35 = vrot.slane %v1328_v19, %v7227_v52  ;;  %v8253_v39 = vrot.slane %v1394_v36, %v7227_v52 }
 0x2d8   : > { %v8207_v15 = vpop.permute.xlu1 %2922  ;;  %v8216_v51 = vpop.permute.xlu0 %4839  ;;  %v1346_v10 = vcombine.high %v8246_v35, %v10102_v53 }
 0x2d9   : > { %10187 = vst [vmem:[#allocation82_spill] sm:$0xff] %v8207_v15  ;;  %10188 = vst [vmem:[#allocation83_spill] sm:$0xff] %v8216_v51 }
 0x2da   : > { %2270 = vrot.lane.b32.xlu1 %v8210_v27, %s6870_s14  ;;  %2264 = vrot.lane.b32.xlu0 %v2154_v49, %s6871_s15  ;;  %v2158_v49 = vcombine.high %v8149_v50, %v7225_v44  ;;  %v8256_v50 = vrot.slane %v1329_v47, %v7227_v52 }
 0x2dc   : > { %v8225_v4 = vpop.permute.xlu1 %4848  ;;  %v8233_v51 = vpop.permute.xlu0 %4851  ;;  %v2172_v42 = vrot.slane %v2158_v49, %v7148_v58  ;;  %v5156_v49 = vshrl.u32 %v7527_v30, 16 }
 0x2dd   : > { %10189 = vst [vmem:[#allocation84_spill] sm:$0xff] %v8225_v4  ;;  %10190 = vst [vmem:[#allocation85_spill] sm:$0xff] %v8233_v51  ;;  %v2187_v4 = vrot.slane %v2173_v3, %v7148_v58  ;;  %v1395_v3 = vcombine.high %v1362_v26, %v1377_v33  ;;  %v5164_v51 = vshrl.u32 %v7696_v25, 16 }
 0x2de   : > { %2273 = vrot.lane.b32.xlu1 %v2155_v43, %s6871_s15  ;;  %1457 = vrot.lane.b32.xlu0 %v1410_v7, %s6872_s16  ;;  %v2106_v7 = vrot.slane %v2092_v21, %v7148_v58 }
 0x2df   : > { %v2204_v21 = vcombine.low %v2172_v42, %v2187_v4 }
 0x2e0   : > { %v8242_v56 = vpop.permute.xlu1 %4860  ;;  %v8250_v43 = vpop.permute.xlu0 %4854  ;;  %v2138_v36 = vcombine.low %v2106_v7, %v2121_v62  ;;  %v2139_v33 = vcombine.high %v2106_v7, %v2121_v62 }
 0x2e1   : > { %10191 = vst [vmem:[#allocation86_spill] sm:$0xff] %v8242_v56  ;;  %10192 = vst [vmem:[#allocation87_spill] sm:$0xff] %v8250_v43  ;;  %v5163_v43 = vshrl.u32 %v7730_v11, 16  ;;  %v8280_v56 = vrot.slane %v1395_v3, %v7227_v52  ;;  %v8291_v15 = vrot.slane %v2204_v21, %v7227_v52 }
 0x2e2   : > { %1466 = vrot.lane.b32.xlu1 %v1411_v6, %s6872_s16  ;;  %1469 = vrot.lane.b32.xlu0 %v8253_v39, %s6870_s14  ;;  %v1347_v6 = vcombine.high %v8256_v50, %v10102_v53 }
 0x2e4   : > { %v8263_v19 = vpop.permute.xlu1 %4863  ;;  %v8268_v47 = vpop.permute.xlu0 %2931 }
 0x2e5   : > { %10193 = vst [vmem:[#allocation88_spill] sm:$0xff] %v8263_v19  ;;  %10194 = vst [vmem:[#allocation89_spill] sm:$0xff] %v8268_v47  ;;  %v5155_v19 = vshrl.u32 %v7509_v29, 16  ;;  %v2205_v47 = vcombine.high %v2172_v42, %v2187_v4  ;;  %v8300_v4 = vpack.i.b16 %v7527_v30, %v7509_v29 }
 0x2e6   : > { %1472 = vrot.lane.b32.xlu1 %v1346_v10, %s6871_s15  ;;  %1481 = vrot.lane.b32.xlu0 %v1347_v6, %s6871_s15  ;;  %v8286_v10 = vpack.i.b16 %v5164_v51, %v5163_v43  ;;  %v8294_v6 = vrot.slane %v2138_v36, %v7227_v52  ;;  %v8312_v51 = vrot.slane %v2139_v33, %v7227_v52 }
 0x2e7   : > { %v8302_v62 = vpack.i.b16 %v5156_v49, %v5155_v19  ;;  %v8309_v11 = vrot.slane %v2205_v47, %v7227_v52  ;;  %v5205_v43 = vrot.slane %v8284_v41, %v7148_v58  ;;  %v5190_v42 = vrot.slane %v8300_v4, %v7148_v58 }
 0x2e8   : > { %v8277_v26 = vpop.permute.xlu1 %2940  ;;  %v8288_v48 = vpop.permute.xlu0 %2943  ;;  %10197 = vst [vmem:[#allocation92_spill] sm:$0xff] %v8294_v6  ;;  %10198 = vst [vmem:[#allocation93_spill] sm:$0xff] %v8312_v51  ;;  %v5271_v29 = vrot.slane %v8286_v10, %v7148_v58  ;;  %v2156_v7 = vcombine.high %v8294_v6, %v10102_v53  ;;  %v2157_v36 = vcombine.high %v8312_v51, %v10102_v53  ;;  %v3255_v51 = vshrl.u32 %v7795_v45, 16 }
 0x2e9   : > { %10195 = vst [vmem:[#allocation90_spill] sm:$0xff] %v8277_v26  ;;  %10196 = vst [vmem:[#allocation91_spill] sm:$0xff] %v8288_v48  ;;  %v5256_v19 = vrot.slane %v8302_v62, %v7148_v58  ;;  %v5213_v47 = vcombine.low %v5190_v42, %v5205_v43  ;;  %v2220_v49 = vcombine.high %v8194_v0, %v10102_v53 }
 0x2ea   : > { %1478 = vrot.lane.b32.xlu1 %v8280_v56, %s6870_s14  ;;  %2279 = vrot.lane.b32.xlu0 %v8291_v15, %s6870_s14  ;;  %v5214_v26 = vcombine.high %v5190_v42, %v5205_v43  ;;  %v3248_v43 = vshrl.u32 %v7551_v63, 16  ;;  %v3256_v42 = vshrl.u32 %v7755_v57, 16 }
 0x2eb   : > { %v5279_v33 = vcombine.low %v5256_v19, %v5271_v29  ;;  %v8350_v0 = vrot.slane %v5213_v47, %v7227_v52  ;;  %v3247_v47 = vshrl.u32 %v7535_v54, 16 }
 0x2ec   : > { %v8306_v25 = vpop.permute.xlu1 %2952  ;;  %v8318_v30 = vpop.permute.xlu0 %2946 }
 0x2ed   : > { %10199 = vst [vmem:[#allocation94_spill] sm:$0xff] %v8318_v30  ;;  %v5280_v30 = vcombine.high %v5256_v19, %v5271_v29  ;;  %10204 = vst [vmem:[#allocation99_spill] sm:$0xff] %v8350_v0 }
 0x2ee   : > { %2288 = vrot.lane.b32.xlu1 %v8309_v11, %s6870_s14  ;;  %2282 = vrot.lane.b32.xlu0 %v2156_v7, %s6871_s15  ;;  %v2221_v7 = vcombine.high %v8210_v27, %v10102_v53  ;;  %v8359_v27 = vpack.i.b16 %v7755_v57, %v7795_v45  ;;  %v8378_v57 = vpack.i.b16 %v7551_v63, %v7535_v54  ;;  %v3888_v54 = vshrl.u32 %v7819_v17, 16 }
 0x2ef   : > { %v8364_v19 = vrot.slane %v5280_v30, %v7227_v52  ;;  %v8382_v45 = vpack.i.b16 %v3248_v43, %v3247_v47  ;;  %v1412_v43 = vcombine.high %v8253_v39, %v10102_v53  ;;  %v1413_v39 = vcombine.high %v8280_v56, %v10102_v53 }
 0x2f0   : > { %v8329_v3 = vpop.permute.xlu1 %2955  ;;  %v8333_v21 = vpop.permute.xlu0 %4869  ;;  %v3282_v47 = vrot.slane %v8378_v57, %v7148_v58  ;;  %v2223_v56 = vcombine.high %v8309_v11, %v10102_v53  ;;  %v5198_v11 = vcombine.high %v8284_v41, %v7225_v44  ;;  %v5183_v41 = vcombine.high %v8300_v4, %v7225_v44 }
 0x2f1   : > { %10200 = vst [vmem:[#allocation95_spill] sm:$0xff] %v8329_v3  ;;  %10201 = vst [vmem:[#allocation96_spill] sm:$0xff] %v8333_v21  ;;  %v8347_v21 = vrot.slane %v5279_v33, %v7227_v52 }
 0x2f2   : > { %2291 = vrot.lane.b32.xlu1 %v2157_v36, %s6871_s15  ;;  %2267 = vrot.lane.b32.xlu0 %v2220_v49, %s6872_s16  ;;  %v8367_v36 = vrot.slane %v5214_v26, %v7227_v52  ;;  %v8370_v49 = vpack.i.b16 %v3256_v42, %v3255_v51  ;;  %v3297_v26 = vrot.slane %v8359_v27, %v7148_v58 }
 0x2f4   : > { %v8339_v6 = vpop.permute.xlu1 %4878  ;;  %v8344_v48 = vpop.permute.xlu0 %4872  ;;  %10206 = vst [vmem:[#allocation101_spill] sm:$0xff] %v8367_v36  ;;  %v5246_v30 = vcombine.high %v8367_v36, %v10102_v53  ;;  %v3363_v42 = vrot.slane %v8370_v49, %v7148_v58 }
 0x2f5   : > { %10202 = vst [vmem:[#allocation97_spill] sm:$0xff] %v8339_v6  ;;  %10203 = vst [vmem:[#allocation98_spill] sm:$0xff] %v8344_v48  ;;  %v3881_v48 = vshrl.u32 %v7566_v61, 16  ;;  %v3880_v6 = vshrl.u32 %v7549_v40, 16 }
 0x2f6   : > { %2276 = vrot.lane.b32.xlu1 %v2221_v7, %s6872_s16  ;;  %5448 = vrot.lane.b32.xlu0 %v8347_v21, %s6870_s14  ;;  %v5245_v7 = vcombine.high %v8350_v0, %v10102_v53  ;;  %v3305_v0 = vcombine.low %v3282_v47, %v3297_v26 }
 0x2f7   : > { %v8426_v3 = vpack.i.b16 %v3881_v48, %v3880_v6 }
 0x2f8   : > { %v8361_v29 = vpop.permute.xlu1 %4881  ;;  %v8372_v33 = vpop.permute.xlu0 %4857 }
 0x2f9   : > { %10205 = vst [vmem:[#allocation100_spill] sm:$0xff] %v8361_v29  ;;  %10207 = vst [vmem:[#allocation102_spill] sm:$0xff] %v8372_v33  ;;  %v3889_v29 = vshrl.u32 %v7765_v20, 16  ;;  %v3981_v6 = vrot.slane %v8426_v3, %v7148_v58 }
 0x2fa   : > { %5457 = vrot.lane.b32.xlu1 %v8364_v19, %s6870_s14  ;;  %5451 = vrot.lane.b32.xlu0 %v5245_v7, %s6871_s15  ;;  %v3348_v7 = vrot.slane %v8382_v45, %v7148_v58 }
 0x2fb   : > { %v8415_v33 = vpack.i.b16 %v3889_v29, %v3888_v54 }
 0x2fc   : > { %v8387_v51 = vpop.permute.xlu1 %4866  ;;  %v8394_v63 = vpop.permute.xlu0 %2961  ;;  %v3372_v29 = vcombine.high %v3348_v7, %v3363_v42 }
 0x2fd   : > { %10208 = vst [vmem:[#allocation103_spill] sm:$0xff] %v8387_v51  ;;  %10209 = vst [vmem:[#allocation104_spill] sm:$0xff] %v8394_v63  ;;  %v2222_v63 = vcombine.high %v8291_v15, %v10102_v53  ;;  %v3996_v54 = vrot.slane %v8415_v33, %v7148_v58 }
 0x2fe   : > { %5460 = vrot.lane.b32.xlu1 %v5246_v30, %s6871_s15  ;;  %1475 = vrot.lane.b32.xlu0 %v1412_v43, %s6872_s16  ;;  %v8413_v30 = vpack.i.b16 %v7765_v20, %v7819_v17  ;;  %v3371_v43 = vcombine.low %v3348_v7, %v3363_v42  ;;  %v3306_v20 = vcombine.high %v3282_v47, %v3297_v26 }
 0x2ff   : > { %v8457_v42 = vrot.slane %v3372_v29, %v7227_v52 }
 0x300   : > { %v8407_v36 = vpop.permute.xlu1 %2970  ;;  %v8417_v51 = vpop.permute.xlu0 %2964  ;;  %v3930_v15 = vrot.slane %v8413_v30, %v7148_v58 }
 0x301   : > { %10210 = vst [vmem:[#allocation105_spill] sm:$0xff] %v8407_v36  ;;  %10211 = vst [vmem:[#allocation106_spill] sm:$0xff] %v8417_v51  ;;  %v8424_v36 = vpack.i.b16 %v7566_v61, %v7549_v40  ;;  %v8440_v40 = vrot.slane %v3371_v43, %v7227_v52  ;;  %v8443_v61 = vrot.slane %v3305_v0, %v7227_v52 }
 0x302   : > { %1484 = vrot.lane.b32.xlu1 %v1413_v39, %s6872_s16  ;;  %2285 = vrot.lane.b32.xlu0 %v2222_v63, %s6872_s16  ;;  %v8460_v0 = vrot.slane %v3306_v20, %v7227_v52  ;;  %v5264_v63 = vcombine.high %v8286_v10, %v7225_v44  ;;  %v5249_v20 = vcombine.high %v8302_v62, %v7225_v44 }
 0x303   : > { %10214 = vst [vmem:[#allocation109_spill] sm:$0xff] %v8443_v61  ;;  %v3915_v48 = vrot.slane %v8424_v36, %v7148_v58  ;;  %v3337_v43 = vcombine.high %v8443_v61, %v10102_v53  ;;  %v4005_v51 = vcombine.high %v3981_v6, %v3996_v54  ;;  %v5212_v61 = vrot.slane %v5198_v11, %v7148_v58 }
 0x304   : > { %v8429_v17 = vpop.permute.xlu1 %2973  ;;  %v8437_v39 = vpop.permute.xlu0 %2949  ;;  %10215 = vst [vmem:[#allocation110_spill] sm:$0xff] %v8460_v0 }
 0x305   : > { %10212 = vst [vmem:[#allocation107_spill] sm:$0xff] %v8429_v17  ;;  %10213 = vst [vmem:[#allocation108_spill] sm:$0xff] %v8437_v39  ;;  %v3938_v47 = vcombine.low %v3915_v48, %v3930_v15  ;;  %v3939_v29 = vcombine.high %v3915_v48, %v3930_v15  ;;  %v5278_v17 = vrot.slane %v5264_v63, %v7148_v58 }
 0x306   : > { %2294 = vrot.lane.b32.xlu1 %v2223_v56, %s6872_s16  ;;  %3540 = vrot.lane.b32.xlu0 %v8440_v40, %s6870_s14  ;;  %v4004_v56 = vcombine.low %v3981_v6, %v3996_v54  ;;  %v5197_v15 = vrot.slane %v5183_v41, %v7148_v58  ;;  %v5263_v48 = vrot.slane %v5249_v20, %v7148_v58 }
 0x307   : > { %v8487_v62 = vrot.slane %v3938_v47, %v7227_v52  ;;  %v8497_v6 = vrot.slane %v4005_v51, %v7227_v52  ;;  %v8500_v11 = vrot.slane %v3939_v29, %v7227_v52  ;;  %v3290_v29 = vcombine.high %v8359_v27, %v7225_v44 }
 0x308   : > { %v8454_v26 = vpop.permute.xlu1 %2958  ;;  %v8464_v7 = vpop.permute.xlu0 %4875  ;;  %v8484_v4 = vrot.slane %v4004_v56, %v7227_v52  ;;  %v5229_v63 = vcombine.low %v5197_v15, %v5212_v61  ;;  %v5230_v56 = vcombine.high %v5197_v15, %v5212_v61  ;;  %v5296_v20 = vcombine.high %v5263_v48, %v5278_v17 }
 0x309   : > { %10216 = vst [vmem:[#allocation111_spill] sm:$0xff] %v8464_v7  ;;  %v3338_v7 = vcombine.high %v8460_v0, %v10102_v53  ;;  %10219 = vst [vmem:[#allocation114_spill] sm:$0xff] %v8487_v62  ;;  %v3971_v51 = vcombine.high %v8500_v11, %v10102_v53  ;;  %v3275_v61 = vcombine.high %v8378_v57, %v7225_v44 }
 0x30a   : > { %3549 = vrot.lane.b32.xlu1 %v8457_v42, %s6870_s14  ;;  %3543 = vrot.lane.b32.xlu0 %v3337_v43, %s6871_s15  ;;  %10221 = vst [vmem:[#allocation116_spill] sm:$0xff] %v8500_v11  ;;  %v5295_v43 = vcombine.low %v5263_v48, %v5278_v17  ;;  %v3341_v17 = vcombine.high %v8382_v45, %v7225_v44 }
 0x30b   : > { %v8530_v15 = vrot.slane %v5230_v56, %v7227_v52  ;;  %v3304_v48 = vrot.slane %v3290_v29, %v7148_v58  ;;  %v3289_v45 = vrot.slane %v3275_v61, %v7148_v58  ;;  %v5311_v29 = vcombine.high %v8347_v21, %v10102_v53 }
 0x30c   : > { %v8475_v10 = vpop.permute.xlu1 %4884  ;;  %v8481_v39 = vpop.permute.xlu0 %2967  ;;  %v5312_v11 = vcombine.high %v8364_v19, %v10102_v53  ;;  %v3908_v19 = vcombine.high %v8424_v36, %v7225_v44 }
 0x30d   : > { %10217 = vst [vmem:[#allocation112_spill] sm:$0xff] %v8475_v10  ;;  %10218 = vst [vmem:[#allocation113_spill] sm:$0xff] %v8481_v39  ;;  %v3356_v10 = vcombine.high %v8370_v49, %v7225_v44  ;;  %v8514_v39 = vrot.slane %v5295_v43, %v7227_v52  ;;  %v8527_v49 = vrot.slane %v5296_v20, %v7227_v52 }
 0x30e   : > { %3552 = vrot.lane.b32.xlu1 %v3338_v7, %s6871_s15  ;;  %4173 = vrot.lane.b32.xlu0 %v8484_v4, %s6870_s14  ;;  %v3970_v7 = vcombine.high %v8487_v62, %v10102_v53  ;;  %10223 = vst [vmem:[#allocation118_spill] sm:$0xff] %v8530_v15  ;;  %v3355_v43 = vrot.slane %v3341_v17, %v7148_v58 }
 0x30f   : > { %v3322_v61 = vcombine.high %v3289_v45, %v3304_v48  ;;  %v3923_v17 = vcombine.high %v8413_v30, %v7225_v44 }
 0x310   : > { %v8494_v54 = vpop.permute.xlu1 %2976  ;;  %v1416_v47 = vpop.permute.xlu0 %1415 }
 0x311   : > { %10220 = vst [vmem:[#allocation115_spill] sm:$0xff] %v8494_v54  ;;  %v8517_v54 = vrot.slane %v5229_v63, %v7227_v52  ;;  %v3370_v63 = vrot.slane %v3356_v10, %v7148_v58  ;;  %v3321_v10 = vcombine.low %v3289_v45, %v3304_v48  ;;  %v3937_v36 = vrot.slane %v3923_v17, %v7148_v58  ;;  %v8602_v17 = vld [vmem:[%s10028_s3 + $0x4] sm:$0xf] }
 0x312   : > { %4182 = vrot.lane.b32.xlu1 %v8497_v6, %s6870_s14  ;;  %4176 = vrot.lane.b32.xlu0 %v3970_v7, %s6871_s15 }
 0x313   : > { %10222 = vst [vmem:[#allocation117_spill] sm:$0xff] %v8517_v54  ;;  %v5247_v57 = vcombine.high %v8517_v54, %v10102_v53  ;;  %v3387_v54 = vcombine.low %v3355_v43, %v3370_v63  ;;  %v3388_v21 = vcombine.high %v3355_v43, %v3370_v63  ;;  %v8569_v30 = vrot.slane %v3321_v10, %v7227_v52 }
 0x314   : > { %v1419_v41 = vpop.permute.xlu1 %1418  ;;  %v1428_v0 = vpop.permute.xlu0 %1427 }
 0x315   : > { %10224 = vst [vmem:[#allocation119_spill] sm:$0xff] %v8569_v30  ;;  %v3339_v43 = vcombine.high %v8569_v30, %v10102_v53  ;;  %v4037_v30 = vcombine.high %v8497_v6, %v10102_v53 }
 0x316   : > { %4185 = vrot.lane.b32.xlu1 %v3971_v51, %s6871_s15  ;;  %5466 = vrot.lane.b32.xlu0 %v8514_v39, %s6870_s14  ;;  %v5248_v51 = vcombine.high %v8530_v15, %v10102_v53 }
 0x318   : > { %v1425_v27 = vpop.permute.xlu1 %1424  ;;  %v8534_v7 = vpop.permute.xlu0 %2225 }
 0x319   : > { %v1495_v48 = vsel %vm1034_vm4, %v7958_v46, %v1425_v27  ;;  %v8582_v27 = vrot.slane %v3388_v21, %v7227_v52 }
 0x31a   : > { %5475 = vrot.lane.b32.xlu1 %v8527_v49, %s6870_s14  ;;  %5469 = vrot.lane.b32.xlu0 %v5247_v57, %s6871_s15  ;;  %v3989_v57 = vcombine.high %v8415_v33, %v7225_v44 }
 0x31c   : > { %v8543_v56 = vpop.permute.xlu1 %2234  ;;  %v8547_v20 = vpop.permute.xlu0 %2228 }
 0x31e   : > { %5478 = vrot.lane.b32.xlu1 %v5248_v51, %s6871_s15  ;;  %5454 = vrot.lane.b32.xlu0 %v5311_v29, %s6872_s16  ;;  %v1488_v51 = vsel %vm1034_vm4, %v7950_v28, %v1416_v47  ;;  %v8566_v29 = vrot.slane %v3387_v54, %v7227_v52  ;;  %v3974_v28 = vcombine.high %v8426_v3, %v7225_v44 }
 0x31f   : > { %v1490_v33 = vsel %vm1038_vm5, %v1488_v51, %v1419_v41  ;;  %v1497_v47 = vsel %vm1038_vm5, %v1495_v48, %v1428_v0  ;;  %v4003_v41 = vrot.slane %v3989_v57, %v7148_v58  ;;  %v3922_v0 = vrot.slane %v3908_v19, %v7148_v58 }
 0x320   : > { %v8557_v15 = vpop.permute.xlu1 %2237  ;;  %v1422_v45 = vpop.permute.xlu0 %1421 }
 0x321   : > { %v1492_v46 = vsel %vm1041_vm6, %v1490_v33, %v1422_v45  ;;  %v3954_v51 = vcombine.low %v3922_v0, %v3937_v36  ;;  %v3403_v45 = vcombine.high %v8440_v40, %v10102_v53  ;;  %v3955_v19 = vcombine.high %v3922_v0, %v3937_v36 }
 0x322   : > { %5463 = vrot.lane.b32.xlu1 %v5312_v11, %s6872_s16  ;;  %3558 = vrot.lane.b32.xlu0 %v8566_v29, %s6870_s14  ;;  %v8585_v11 = vrot.slane %v3322_v61, %v7227_v52  ;;  %v1549_v10 = vsel %vm1548_vm7, %v1492_v46, 0  ;;  %v3988_v61 = vrot.slane %v3974_v28, %v7148_v58  ;;  %v3404_v46 = vcombine.high %v8457_v42, %v10102_v53 }
 0x323   : > { %v5179_v40 = vshrl.u32 %v7856_v5, 16  ;;  %v5172_v36 = vshrl.u32 %v7578_v2, 16  ;;  %v8631_v42 = vpack.i.b16 %v7854_v14, %v7856_v5 }
 0x324   : > { %v1431_v54 = vpop.permute.xlu1 %1430  ;;  %10225 = vst [vmem:[#allocation120_spill] sm:$0xff] %v8585_v11  ;;  %v1434_v63 = vpop.permute.xlu0 %1433  ;;  %v3340_v21 = vcombine.high %v8585_v11, %v10102_v53  ;;  %v4020_v33 = vcombine.low %v3988_v61, %v4003_v41 }
 0x325   : > { %v1499_v3 = vsel %vm1041_vm6, %v1497_v47, %v1431_v54  ;;  %v4021_v54 = vcombine.high %v3988_v61, %v4003_v41  ;;  %v5180_v47 = vshrl.u32 %v7854_v14, 16  ;;  %v8639_v61 = vrot.slane %v3955_v19, %v7227_v52 }
 0x326   : > { %3567 = vrot.lane.b32.xlu1 %v8582_v27, %s6870_s14  ;;  %6569 = vmatprep.subr.msk.bf16.mxu1 %vm1548_vm7, %v1499_v3  ;;  %v8650_v14 = vpack.i.b16 %v7578_v2, %v7564_v8  ;;  %v5337_v19 = vrot.slane %v8631_v42, %v7148_v58  ;;  %v4036_v2 = vcombine.high %v8484_v4, %v10102_v53 }
 0x327   : > { %3561 = vrot.lane.b32.xlu0 %v3339_v43, %s6871_s15  ;;  %1580 = vmatpush1.bf16.msra.mxu1 %v1549_v10  ;;  %v8620_v43 = vrot.slane %v4020_v33, %v7227_v52  ;;  %v8623_v10 = vrot.slane %v3954_v51, %v7227_v52  ;;  %v8636_v0 = vrot.slane %v4021_v54, %v7227_v52 }
 0x328   : > { %v1437_v57 = vpop.permute.xlu1 %1436  ;;  %v1446_v48 = vpop.permute.xlu0 %1445  ;;  %10229 = vst [vmem:[#allocation124_spill] sm:$0xff] %v8639_v61  ;;  %v8642_v51 = vpack.i.b16 %v5180_v47, %v5179_v40  ;;  %v3973_v54 = vcombine.high %v8639_v61, %v10102_v53  ;;  %v5322_v40 = vrot.slane %v8650_v14, %v7148_v58  ;;  %v1502_v4 = vsel %vm1034_vm4, %v8040_v37, %v1434_v63 }
 0x329   : > { %10227 = vst [vmem:[#allocation122_spill] sm:$0xff] %v8623_v10  ;;  %v3972_v33 = vcombine.high %v8623_v10, %v10102_v53  ;;  %v5313_v10 = vcombine.high %v8514_v39, %v10102_v53  ;;  %v1504_v62 = vsel %vm1038_vm5, %v1502_v4, %v1437_v57  ;;  %v5314_v57 = vcombine.high %v8527_v49, %v10102_v53 }
 0x32a   : > { %3570 = vrot.lane.b32.xlu1 %v3340_v21, %s6871_s15  ;;  %6570 = vmatmul.mubr.msk.bf16.vlgmr.msra.gmra.mxu1 %vm1544_vm8, %v8602_v17  ;;  %v5171_v21 = vshrl.u32 %v7564_v8, 16  ;;  %v5403_v47 = vrot.slane %v8642_v51, %v7148_v58  ;;  %v5346_v6 = vcombine.high %v5322_v40, %v5337_v19 }
 0x32b   : > { %3546 = vrot.lane.b32.xlu0 %v3403_v45, %s6872_s16  ;;  %1638 = vmatprep.mubr.bf16.mxu1 %v10102_v53 }
 0x32c   : > { %v1443_v28 = vpop.permute.xlu1 %1442  ;;  %v8617_v3 = vpop.permute.xlu0 %2243  ;;  %v8654_v5 = vpack.i.b16 %v5172_v36, %v5171_v21  ;;  %v5345_v21 = vcombine.low %v5322_v40, %v5337_v19 }
 0x32d   : > { %10226 = vst [vmem:[#allocation121_spill] sm:$0xff] %v8617_v3  ;;  %v1509_v61 = vsel %vm1034_vm4, %v8046_v16, %v1443_v28  ;;  %v3264_v3 = vshrl.u32 %v7615_v38, 16  ;;  %v8695_v16 = vpack.i.b16 %v7904_v18, %v7885_v13 }
 0x32e   : > { %3555 = vrot.lane.b32.xlu1 %v3404_v46, %s6872_s16  ;;  %v5388_v36 = vrot.slane %v8654_v5, %v7148_v58  ;;  %v1511_v63 = vsel %vm1038_vm5, %v1509_v61, %v1446_v48 }
 0x32f   : > { %4191 = vrot.lane.b32.xlu0 %v8620_v43, %s6870_s14 }
 0x330   : > { %v8633_v41 = vpop.permute.xlu1 %2252  ;;  %v8644_v45 = vpop.permute.xlu0 %2246 }
 0x331   : > { %10228 = vst [vmem:[#allocation123_spill] sm:$0xff] %v8633_v41  ;;  %10230 = vst [vmem:[#allocation125_spill] sm:$0xff] %v8644_v45  ;;  %v5411_v45 = vcombine.low %v5388_v36, %v5403_v47 }
 0x332   : > { %4200 = vrot.lane.b32.xlu1 %v8636_v0, %s6870_s14 }
 0x333   : > { %4194 = vrot.lane.b32.xlu0 %v3972_v33, %s6871_s15  ;;  %v3272_v33 = vshrl.u32 %v7904_v18, 16 }
 0x334   : > { %v8659_v46 = vpop.permute.xlu1 %2255  ;;  %v8665_v8 = vpop.permute.xlu0 %2231 }
 0x335   : > { %10231 = vst [vmem:[#allocation126_spill] sm:$0xff] %v8659_v46  ;;  %v3271_v46 = vshrl.u32 %v7885_v13, 16  ;;  %v8716_v13 = vpack.i.b16 %v7615_v38, %v7595_v23 }
 0x336   : > { %4203 = vrot.lane.b32.xlu1 %v3973_v54, %s6871_s15 }
 0x337   : > { %4179 = vrot.lane.b32.xlu0 %v4036_v2, %s6872_s16  ;;  %v3263_v2 = vshrl.u32 %v7595_v23, 16  ;;  %v8700_v28 = vpack.i.b16 %v3272_v33, %v3271_v46  ;;  %v3429_v46 = vrot.slane %v8695_v16, %v7148_v58 }
 0x338   : > { %v8676_v11 = vpop.permute.xlu1 %2240  ;;  %v1440_v54 = vpop.permute.xlu0 %1439 }
 0x339   : > { %v1506_v37 = vsel %vm1041_vm6, %v1504_v62, %v1440_v54  ;;  %v8706_v62 = vrot.slane %v5411_v45, %v7227_v52  ;;  %v8718_v49 = vpack.i.b16 %v3264_v3, %v3263_v2  ;;  %v8728_v45 = vrot.slane %v5346_v6, %v7227_v52 }
 0x33a   : > { %4188 = vrot.lane.b32.xlu1 %v4037_v30, %s6872_s16  ;;  %v5412_v30 = vcombine.high %v5388_v36, %v5403_v47  ;;  %v1553_v18 = vsel %vm1548_vm7, %v1506_v37, 0  ;;  %v3495_v38 = vrot.slane %v8700_v28, %v7148_v58  ;;  %v3414_v47 = vrot.slane %v8716_v13, %v7148_v58 }
 0x33b   : > { %5472 = vrot.lane.b32.xlu0 %v5313_v10, %s6872_s16  ;;  %10233 = vst [vmem:[#allocation128_spill] sm:$0xff] %v8706_v62  ;;  %v8709_v10 = vrot.slane %v5345_v21, %v7227_v52  ;;  %10237 = vst [vmem:[#allocation132_spill] sm:$0xff] %v8728_v45  ;;  %v3480_v36 = vrot.slane %v8718_v49, %v7148_v58  ;;  %v5378_v33 = vcombine.high %v8728_v45, %v10102_v53 }
 0x33c   : > { %v1449_v39 = vpop.permute.xlu1 %1448  ;;  %v8703_v40 = vpop.permute.xlu0 %2249  ;;  %v8725_v61 = vrot.slane %v5412_v30, %v7227_v52  ;;  %v3437_v4 = vcombine.low %v3414_v47, %v3429_v46  ;;  %v3905_v54 = vshrl.u32 %v7923_v12, 16  ;;  %v3405_v6 = vcombine.high %v8566_v29, %v10102_v53 }
 0x33d   : > { %v1513_v19 = vsel %vm1041_vm6, %v1511_v63, %v1449_v39  ;;  %10232 = vst [vmem:[#allocation127_spill] sm:$0xff] %v8703_v40  ;;  %10234 = vst [vmem:[#allocation129_spill] sm:$0xff] %v8709_v10  ;;  %v5377_v3 = vcombine.high %v8709_v10, %v10102_v53  ;;  %v3503_v37 = vcombine.low %v3480_v36, %v3495_v38  ;;  %v3897_v39 = vshrl.u32 %v7628_v32, 16 }
 0x33e   : > { %5481 = vrot.lane.b32.xlu1 %v5314_v57, %s6872_s16  ;;  %6571 = vmatprep.subr.msk.bf16.mxu1 %vm1548_vm7, %v1513_v19  ;;  %10236 = vst [vmem:[#allocation131_spill] sm:$0xff] %v8725_v61  ;;  %v3904_v63 = vshrl.u32 %v7906_v9, 16  ;;  %v3438_v57 = vcombine.high %v3414_v47, %v3429_v46  ;;  %v8757_v30 = vpack.i.b16 %v7923_v12, %v7906_v9  ;;  %v3896_v29 = vshrl.u32 %v7613_v59, 16 }
 0x33f   : > { %5484 = vrot.lane.b32.xlu0 %v8706_v62, %s6870_s14  ;;  %1621 = vmatpush1.bf16.msra.mxu1 %v1553_v18  ;;  %v3406_v18 = vcombine.high %v8582_v27, %v10102_v53  ;;  %v8767_v10 = vrot.slane %v3503_v37, %v7227_v52  ;;  %v8770_v46 = vrot.slane %v3437_v4, %v7227_v52 }
 0x340   : > { %v8722_v48 = vpop.permute.xlu1 %2258  ;;  %v1452_v23 = vpop.permute.xlu0 %1451  ;;  %v8762_v45 = vpack.i.b16 %v3905_v54, %v3904_v63  ;;  %v8774_v12 = vpack.i.b16 %v7628_v32, %v7613_v59  ;;  %v8777_v9 = vpack.i.b16 %v3897_v39, %v3896_v29  ;;  %v4062_v27 = vrot.slane %v8757_v30, %v7148_v58 }
 0x341   : > { %10235 = vst [vmem:[#allocation130_spill] sm:$0xff] %v8722_v48  ;;  %10238 = vst [vmem:[#allocation133_spill] sm:$0xff] %v8770_v46  ;;  %v3469_v4 = vcombine.high %v8770_v46, %v10102_v53  ;;  %v5381_v54 = vcombine.high %v8654_v5, %v7225_v44  ;;  %v5396_v39 = vcombine.high %v8642_v51, %v7225_v44  ;;  %v10241_v48 = vld [vmem:[#allocation6_spill] sm:$0xff] }
 0x342   : > { %5493 = vrot.lane.b32.xlu1 %v8725_v61, %s6870_s14  ;;  %6572 = vmatmul.mubr.msk.bf16.vlgmr.msra.gmra.mxu1 %vm1544_vm8, %v8602_v17  ;;  %v4128_v59 = vrot.slane %v8762_v45, %v7148_v58  ;;  %v4113_v37 = vrot.slane %v8777_v9, %v7148_v58  ;;  %v4038_v46 = vcombine.high %v8620_v43, %v10102_v53  ;;  %v10240_v61 = vld [vmem:[#allocation26_spill] sm:$0xff] }
 0x343   : > { %5487 = vrot.lane.b32.xlu0 %v5377_v3, %s6871_s15  ;;  %1720 = vmatprep.mubr.bf16.mxu1 %v10102_v53  ;;  %v3504_v3 = vcombine.high %v3480_v36, %v3495_v38  ;;  %v8789_v36 = vrot.slane %v3438_v57, %v7227_v52  ;;  %v8819_v51 = vrot.slane %v5381_v54, %v7148_v58 }
 0x344   : > { %v1455_v21 = vpop.permute.xlu1 %1454  ;;  %v1464_v2 = vpop.permute.xlu0 %1463  ;;  %v4136_v40 = vcombine.low %v4113_v37, %v4128_v59  ;;  %v5410_v43 = vrot.slane %v5396_v39, %v7148_v58  ;;  %v3422_v54 = vcombine.high %v8695_v16, %v7225_v44 }
 0x345   : > { %v8786_v47 = vrot.slane %v3504_v3, %v7227_v52  ;;  %10239 = vst [vmem:[#allocation134_spill] sm:$0xff] %v8789_v36  ;;  %v3470_v5 = vcombine.high %v8789_v36, %v10102_v53  ;;  %v1037_v36 = vsel %vm1034_vm4, %v10241_v48, %v10240_v61  ;;  %v4039_v61 = vcombine.high %v8636_v0, %v10102_v53 }
 0x346   : > { %5496 = vrot.lane.b32.xlu1 %v5378_v33, %s6871_s15  ;;  %v8845_v16 = vrot.slane %v4136_v40, %v7227_v52 }
 0x347   : > { %3564 = vrot.lane.b32.xlu0 %v3405_v6, %s6872_s16  ;;  %v4047_v6 = vrot.slane %v8774_v12, %v7148_v58 }
 0x348   : > { %v1461_v19 = vpop.permute.xlu1 %1460  ;;  %v8764_v33 = vpop.permute.xlu0 %2261 }
 0x349   : > { %v4070_v63 = vcombine.low %v4047_v6, %v4062_v27  ;;  %v1523_v3 = vsel %vm1034_vm4, %v8166_v31, %v1461_v19  ;;  %v10242_v31 = vld [vmem:[#allocation31_spill] sm:$0xff] }
 0x34a   : > { %3573 = vrot.lane.b32.xlu1 %v3406_v18, %s6872_s16  ;;  %v1516_v18 = vsel %vm1034_vm4, %v8158_v60, %v1452_v23  ;;  %v10243_v23 = vld [vmem:[#allocation7_spill] sm:$0xff]  ;;  %v1525_v48 = vsel %vm1038_vm5, %v1523_v3, %v1464_v2  ;;  %v3473_v2 = vcombine.high %v8718_v49, %v7225_v44  ;;  %v10248_v3 = vld [vmem:[#allocation53_spill] sm:$0xff] }
 0x34b   : > { %3576 = vrot.lane.b32.xlu0 %v8767_v10, %s6870_s14  ;;  %v1518_v60 = vsel %vm1038_vm5, %v1516_v18, %v1455_v21  ;;  %v1046_v19 = vsel %vm1034_vm4, %v10243_v23, %v10242_v31  ;;  %v4137_v21 = vcombine.high %v4113_v37, %v4128_v59  ;;  %v10245_v59 = vld [vmem:[#allocation29_spill] sm:$0xff]  ;;  %v10247_v37 = vld [vmem:[#allocation39_spill] sm:$0xff]  ;;  %v3436_v31 = vrot.slane %v3422_v54, %v7148_v58 }
 0x34c   : > { %v8783_v38 = vpop.permute.xlu1 %2270  ;;  %v8793_v32 = vpop.permute.xlu0 %2264  ;;  %v10249_v49 = vld [vmem:[#allocation11_spill] sm:$0xff] }
 0x34e   : > { %3585 = vrot.lane.b32.xlu1 %v8786_v47, %s6870_s14 }
 0x34f   : > { %3579 = vrot.lane.b32.xlu0 %v3469_v4, %s6871_s15  ;;  %v3407_v4 = vcombine.high %v8716_v13, %v7225_v44  ;;  %v4071_v13 = vcombine.high %v4047_v6, %v4062_v27  ;;  %v10244_v27 = vld [vmem:[#allocation27_spill] sm:$0xff]  ;;  %v1048_v6 = vsel %vm1038_vm5, %v1046_v19, %v10245_v59 }
 0x350   : > { %v8808_v57 = vpop.permute.xlu1 %2273  ;;  %v1458_v29 = vpop.permute.xlu0 %1457  ;;  %v1040_v0 = vsel %vm1038_vm5, %v1037_v36, %v10244_v27  ;;  %v10250_v27 = vld [vmem:[#allocation52_spill] sm:$0xff] }
 0x351   : > { %v1520_v62 = vsel %vm1041_vm6, %v1518_v60, %v1458_v29  ;;  %v1074_v29 = vsel %vm1034_vm4, %v10249_v49, %v10248_v3  ;;  %v8875_v60 = vrot.slane %v4071_v13, %v7227_v52  ;;  %v3421_v54 = vrot.slane %v3407_v4, %v7148_v58  ;;  %v10254_v49 = vld [vmem:[#allocation54_spill] sm:$0xff] }
 0x352   : > { %3588 = vrot.lane.b32.xlu1 %v3470_v5, %s6871_s15  ;;  %v3488_v5 = vcombine.high %v8700_v28, %v7225_v44  ;;  %v1557_v28 = vsel %vm1548_vm7, %v1520_v62, 0  ;;  %v8872_v62 = vrot.slane %v4137_v21, %v7227_v52  ;;  %v1076_v21 = vsel %vm1038_vm5, %v1074_v29, %v10250_v27 }
 0x353   : > { %4197 = vrot.lane.b32.xlu0 %v4038_v46, %s6872_s16  ;;  %v8848_v46 = vrot.slane %v4070_v63, %v7227_v52  ;;  %v1050_v63 = vsel %vm1041_vm6, %v1048_v6, %v10247_v37  ;;  %v3487_v13 = vrot.slane %v3473_v2, %v7148_v58  ;;  %v4103_v59 = vcombine.high %v8875_v60, %v10102_v53  ;;  %v10252_v2 = vld [vmem:[#allocation10_spill] sm:$0xff] }
 0x354   : > { %v1467_v41 = vpop.permute.xlu1 %1466  ;;  %v8842_v18 = vpop.permute.xlu0 %1469  ;;  %v3502_v23 = vrot.slane %v3488_v5, %v7148_v58  ;;  %v1078_v5 = vsel %vm1041_vm6, %v1076_v21, %v7978_v22  ;;  %v5428_v6 = vcombine.high %v8819_v51, %v5410_v43  ;;  %v3453_v4 = vcombine.low %v3421_v54, %v3436_v31 }
 0x355   : > { %v1527_v39 = vsel %vm1041_vm6, %v1525_v48, %v1467_v41  ;;  %v10246_v41 = vld [vmem:[#allocation36_spill] sm:$0xff]  ;;  %v4102_v48 = vcombine.high %v8848_v46, %v10102_v53  ;;  %v4121_v21 = vcombine.high %v8762_v45, %v7225_v44 }
 0x356   : > { %4206 = vrot.lane.b32.xlu1 %v4039_v61, %s6872_s16  ;;  %6573 = vmatprep.subr.msk.bf16.mxu0 %vm1548_vm7, %v1527_v39  ;;  %v1043_v40 = vsel %vm1041_vm6, %v1040_v0, %v10246_v41  ;;  %v5427_v61 = vcombine.low %v8819_v51, %v5410_v43  ;;  %v3519_v37 = vcombine.low %v3487_v13, %v3502_v23  ;;  %v8921_v51 = vld [vmem:[%s10028_s3] sm:$0xf] }
 0x357   : > { %4209 = vrot.lane.b32.xlu0 %v8845_v16, %s6870_s14  ;;  %1662 = vmatpush1.bf16.msra.mxu0 %v1557_v28  ;;  %v1732_v39 = vsel %vm1548_vm7, %v1043_v40, 0  ;;  %v10251_v28 = vld [vmem:[#allocation50_spill] sm:$0xff]  ;;  %v3454_v43 = vcombine.high %v3421_v54, %v3436_v31  ;;  %v3520_v27 = vcombine.high %v3487_v13, %v3502_v23 }
 0x358   : > { %v8868_v36 = vpop.permute.xlu1 %1472  ;;  %6577 = vmatprep.subr.msk.bf16.mxu0 %vm1548_vm7, %v1050_v63  ;;  %v8879_v19 = vpop.permute.xlu0 %1481  ;;  %v1067_v41 = vsel %vm1034_vm4, %v10252_v2, %v10251_v28  ;;  %v8909_v40 = vrot.slane %v5427_v61, %v7227_v52  ;;  %v10253_v63 = vld [vmem:[#allocation51_spill] sm:$0xff]  ;;  %v8938_v31 = vrot.slane %v3519_v37, %v7227_v52 }
 0x359   : > { %v1069_v3 = vsel %vm1038_vm5, %v1067_v41, %v10253_v63  ;;  %v8962_v13 = vrot.slane %v3520_v27, %v7227_v52 }
 0x35a   : > { %4218 = vrot.lane.b32.xlu1 %v8872_v62, %s6870_s14  ;;  %6574 = vmatmul.mubr.msk.bf16.vlgmr.msra.gmra.mxu0 %vm1544_vm8, %v8602_v17  ;;  %v1071_v29 = vsel %vm1041_vm6, %v1069_v3, %v10254_v49 }
 0x35b   : > { %4212 = vrot.lane.b32.xlu0 %v4102_v48, %s6871_s15  ;;  %1763 = vmatpush1.bf16.msra.mxu0 %v1732_v39  ;;  %v4055_v48 = vcombine.high %v8757_v30, %v7225_v44  ;;  %v8928_v39 = vrot.slane %v5428_v6, %v7227_v52  ;;  %v8941_v30 = vrot.slane %v3453_v4, %v7227_v52  ;;  %v1740_v54 = vsel %vm1548_vm7, %v1071_v29, 0 }
 0x35c   : > { %v8896_v0 = vpop.permute.xlu1 %1478  ;;  %6581 = vmatprep.subr.msk.bf16.mxu0 %vm1548_vm7, %v1078_v5  ;;  %1780 = vmatprep.mubr.bf16.mxu0 %v10102_v53  ;;  %v8906_v22 = vpop.permute.xlu0 %2279  ;;  %v2305_v5 = vsel %vm1034_vm4, %v8007_v1, %v8543_v56  ;;  %v4040_v1 = vcombine.high %v8774_v12, %v7225_v44  ;;  %v4106_v56 = vcombine.high %v8777_v9, %v7225_v44 }
 0x35d   : > { %v2307_v23 = vsel %vm1038_vm5, %v2305_v5, %v8557_v15  ;;  %v8966_v12 = vrot.slane %v3454_v43, %v7227_v52  ;;  %v4069_v9 = vrot.slane %v4055_v48, %v7148_v58  ;;  %v2298_v6 = vsel %vm1034_vm4, %v7989_v34, %v8534_v7 }
 0x35e   : > { %4221 = vrot.lane.b32.xlu1 %v4103_v59, %s6871_s15  ;;  %v2309_v45 = vsel %vm1041_vm6, %v2307_v23, %v8676_v11  ;;  %v4135_v11 = vrot.slane %v4121_v21, %v7148_v58  ;;  %v3471_v28 = vcombine.high %v8941_v30, %v10102_v53  ;;  %v2300_v2 = vsel %vm1038_vm5, %v2298_v6, %v8547_v20 }
 0x35f   : > { %5502 = vrot.lane.b32.xlu0 %v8909_v40, %s6870_s14  ;;  %v4054_v41 = vrot.slane %v4040_v1, %v7148_v58  ;;  %v4120_v37 = vrot.slane %v4106_v56, %v7148_v58  ;;  %v2302_v63 = vsel %vm1041_vm6, %v2300_v2, %v8665_v8  ;;  %v2333_v34 = vsel %vm1034_vm4, %v8213_v55, %v8783_v38 }
 0x360   : > { %v8925_v61 = vpop.permute.xlu1 %2288  ;;  %v8935_v59 = vpop.permute.xlu0 %2282  ;;  %v2335_v7 = vsel %vm1038_vm5, %v2333_v34, %v8808_v57  ;;  %v3472_v3 = vcombine.high %v8966_v12, %v10102_v53  ;;  %v3535_v8 = vcombine.high %v8767_v10, %v10102_v53  ;;  %v2357_v55 = vsel %vm1548_vm7, %v2302_v63, 0  ;;  %v10257_v63 = vld [vmem:[#allocation70_spill] sm:$0xff] }
 0x361   : > { %v4086_v49 = vcombine.low %v4054_v41, %v4069_v9  ;;  %v4152_v48 = vcombine.low %v4120_v37, %v4135_v11  ;;  %v5330_v38 = vcombine.high %v8631_v42, %v7225_v44  ;;  %v4087_v57 = vcombine.high %v4054_v41, %v4069_v9  ;;  %v10255_v9 = vld [vmem:[#allocation67_spill] sm:$0xff] }
 0x362   : > { %5511 = vrot.lane.b32.xlu1 %v8928_v39, %s6870_s14  ;;  %6578 = vmatmul.mubr.msk.bf16.vlgmr.msra.gmra.mxu0 %vm1544_vm8, %v8921_v51  ;;  %v3536_v10 = vcombine.high %v8786_v47, %v10102_v53  ;;  %v4153_v21 = vcombine.high %v4120_v37, %v4135_v11  ;;  %v2326_v5 = vsel %vm1034_vm4, %v8197_v24, %v8764_v33  ;;  %v9031_v24 = vld [vmem:[%s10028_s3 + $0x8] sm:$0xf]  ;;  %v10256_v11 = vld [vmem:[#allocation21_spill] sm:$0xff] }
 0x363   : > { %3594 = vrot.lane.b32.xlu0 %v8938_v31, %s6870_s14  ;;  %1845 = vmatpush1.bf16.msra.mxu0 %v1740_v54  ;;  %v9015_v42 = vrot.slane %v4152_v48, %v7227_v52  ;;  %v9018_v23 = vrot.slane %v4086_v49, %v7227_v52  ;;  %v5315_v1 = vcombine.high %v8650_v14, %v7225_v44  ;;  %v10261_v48 = vld [vmem:[#allocation34_spill] sm:$0xff] }
 0x364   : > { %6586 = vmatprep.subr.msk.bf16.mxu0 %vm1548_vm7, %v2309_v45  ;;  %v8959_v15 = vpop.permute.xlu1 %2291  ;;  %1862 = vmatprep.mubr.bf16.mxu0 %v10102_v53  ;;  %v2268_v4 = vpop.permute.xlu0 %2267  ;;  %v2328_v47 = vsel %vm1038_vm5, %v2326_v5, %v8793_v32  ;;  %v9034_v33 = vrot.slane %v5330_v38, %v7148_v58  ;;  %v9039_v14 = vrot.slane %v4153_v21, %v7227_v52 }
 0x365   : > { %v2330_v56 = vsel %vm1041_vm6, %v2328_v47, %v2268_v4  ;;  %v9042_v32 = vrot.slane %v4087_v57, %v7227_v52  ;;  %v2987_v6 = vsel %vm1034_vm4, %v10256_v11, %v10255_v9  ;;  %v1530_v4 = vsel %vm1034_vm4, %v8246_v35, %v8842_v18  ;;  %v10258_v35 = vld [vmem:[#allocation43_spill] sm:$0xff]  ;;  %v10264_v47 = vld [vmem:[#allocation37_spill] sm:$0xff] }
 0x366   : > { %3603 = vrot.lane.b32.xlu1 %v8962_v13, %s6870_s14  ;;  %v4104_v41 = vcombine.high %v9018_v23, %v10102_v53  ;;  %v5329_v37 = vrot.slane %v5315_v1, %v7148_v58  ;;  %v2989_v34 = vsel %vm1038_vm5, %v2987_v6, %v10257_v63  ;;  %v4168_v5 = vcombine.high %v8845_v16, %v10102_v53  ;;  %v10263_v1 = vld [vmem:[#allocation41_spill] sm:$0xff]  ;;  %v10266_v11 = vld [vmem:[#allocation19_spill] sm:$0xff]  ;;  %v10269_v63 = vld [vmem:[#allocation68_spill] sm:$0xff] }
 0x367   : > { %3597 = vrot.lane.b32.xlu0 %v3471_v28, %s6871_s15  ;;  %v1537_v28 = vsel %vm1034_vm4, %v8256_v50, %v8896_v0  ;;  %v10259_v50 = vld [vmem:[#allocation8_spill] sm:$0xff]  ;;  %v10260_v0 = vld [vmem:[#allocation82_spill] sm:$0xff]  ;;  %v10265_v9 = vld [vmem:[#allocation65_spill] sm:$0xff] }
 0x368   : > { %v2277_v20 = vpop.permute.xlu1 %2276  ;;  %v8992_v43 = vpop.permute.xlu0 %5448  ;;  %v1060_v18 = vsel %vm1034_vm4, %v10259_v50, %v10258_v35  ;;  %v5361_v57 = vcombine.low %v5329_v37, %v9034_v33  ;;  %v2980_v6 = vsel %vm1034_vm4, %v10266_v11, %v10265_v9  ;;  %v10268_v16 = vld [vmem:[#allocation49_spill] sm:$0xff]  ;;  %v10278_v9 = vld [vmem:[#allocation55_spill] sm:$0xff]  ;;  %v10279_v11 = vld [vmem:[#allocation12_spill] sm:$0xff] }
 0x369   : > { %v2337_v29 = vsel %vm1041_vm6, %v2335_v7, %v2277_v20  ;;  %v1532_v7 = vsel %vm1038_vm5, %v1530_v4, %v8868_v36  ;;  %v2365_v20 = vsel %vm1548_vm7, %v2330_v56, 0  ;;  %v1062_v56 = vsel %vm1038_vm5, %v1060_v18, %v10264_v47  ;;  %v10271_v35 = vld [vmem:[#allocation13_spill] sm:$0xff] }
 0x36a   : > { %3606 = vrot.lane.b32.xlu1 %v3472_v3, %s6871_s15  ;;  %6582 = vmatmul.mubr.msk.bf16.vlgmr.msra.gmra.mxu0 %vm1544_vm8, %v8921_v51  ;;  %v2991_v3 = vsel %vm1041_vm6, %v2989_v34, %v10260_v0  ;;  %v2982_v34 = vsel %vm1038_vm5, %v2980_v6, %v10269_v63  ;;  %v10272_v18 = vld [vmem:[#allocation81_spill] sm:$0xff]  ;;  %v1081_v6 = vsel %vm1034_vm4, %v10279_v11, %v10278_v9  ;;  %v10292_v9 = vld [vmem:[#allocation126_spill] sm:$0xff] }
 0x36b   : > { %3582 = vrot.lane.b32.xlu0 %v3535_v8, %s6872_s16  ;;  %2388 = vmatpush1.bf16.msra.mxu0 %v2357_v55  ;;  %v4105_v8 = vcombine.high %v9042_v32, %v10102_v53  ;;  %v10262_v55 = vld [vmem:[#allocation9_spill] sm:$0xff]  ;;  %v2984_v0 = vsel %vm1041_vm6, %v2982_v34, %v10272_v18  ;;  %v10283_v34 = vld [vmem:[#allocation63_spill] sm:$0xff] }
 0x36c   : > { %6590 = vmatprep.subr.msk.bf16.mxu0 %vm1548_vm7, %v2337_v29  ;;  %v9004_v27 = vpop.permute.xlu1 %5457  ;;  %2405 = vmatprep.mubr.bf16.mxu0 %v10102_v53  ;;  %v9012_v54 = vpop.permute.xlu0 %5451  ;;  %v1539_v29 = vsel %vm1038_vm5, %v1537_v28, %v8879_v19  ;;  %v1053_v38 = vsel %vm1034_vm4, %v10262_v55, %v10261_v48  ;;  %v10267_v28 = vld [vmem:[#allocation44_spill] sm:$0xff] }
 0x36d   : > { %v1055_v19 = vsel %vm1038_vm5, %v1053_v38, %v10263_v1  ;;  %v3039_v38 = vsel %vm1548_vm7, %v2984_v0, 0  ;;  %v10277_v1 = vld [vmem:[#allocation64_spill] sm:$0xff]  ;;  %v10286_v0 = vld [vmem:[#allocation94_spill] sm:$0xff] }
 0x36e   : > { %3591 = vrot.lane.b32.xlu1 %v3536_v10, %s6872_s16 }
 0x36f   : > { %4227 = vrot.lane.b32.xlu0 %v9015_v42, %s6870_s14 }
 0x370   : > { %v9036_v45 = vpop.permute.xlu1 %5460  ;;  %v1476_v2 = vpop.permute.xlu0 %1475 }
 0x371   : > { %v1534_v49 = vsel %vm1041_vm6, %v1532_v7, %v1476_v2  ;;  %v1057_v2 = vsel %vm1041_vm6, %v1055_v19, %v10267_v28  ;;  %v5362_v7 = vcombine.high %v5329_v37, %v9034_v33  ;;  %v9120_v33 = vrot.slane %v5361_v57, %v7227_v52 }
 0x372   : > { %4236 = vrot.lane.b32.xlu1 %v9039_v14, %s6870_s14  ;;  %6587 = vmatmul.mubr.msk.bf16.vlgmr.msra.gmra.mxu0 %vm1544_vm8, %v9031_v24  ;;  %v1561_v4 = vsel %vm1548_vm7, %v1534_v49, 0  ;;  %v4169_v49 = vcombine.high %v8872_v62, %v10102_v53  ;;  %v1736_v37 = vsel %vm1548_vm7, %v1057_v2, 0  ;;  %v10274_v62 = vld [vmem:[#allocation57_spill] sm:$0xff]  ;;  %v10281_v2 = vld [vmem:[#allocation56_spill] sm:$0xff] }
 0x373   : > { %4230 = vrot.lane.b32.xlu0 %v4104_v41, %s6871_s15  ;;  %2470 = vmatpush1.bf16.msra.mxu0 %v2365_v20  ;;  %v1064_v41 = vsel %vm1041_vm6, %v1062_v56, %v10268_v16  ;;  %v10270_v20 = vld [vmem:[#allocation58_spill] sm:$0xff]  ;;  %v9147_v56 = vrot.slane %v5362_v7, %v7227_v52  ;;  %v1083_v16 = vsel %vm1038_vm5, %v1081_v6, %v10281_v2 }
 0x374   : > { %6595 = vmatprep.subr.msk.bf16.mxu0 %vm1548_vm7, %v2991_v3  ;;  %v1485_v36 = vpop.permute.xlu1 %1484  ;;  %2487 = vmatprep.mubr.bf16.mxu0 %v10102_v53  ;;  %v9083_v21 = vpop.permute.xlu0 %2285  ;;  %v1088_v50 = vsel %vm1034_vm4, %v10271_v35, %v10270_v20  ;;  %v1085_v7 = vsel %vm1041_vm6, %v1083_v16, %v10283_v34  ;;  %v10284_v20 = vld [vmem:[#allocation91_spill] sm:$0xff] }
 0x375   : > { %v1541_v10 = vsel %vm1041_vm6, %v1539_v29, %v1485_v36  ;;  %v3537_v29 = vcombine.high %v8938_v31, %v10102_v53  ;;  %v1090_v55 = vsel %vm1038_vm5, %v1088_v50, %v10274_v62  ;;  %v10275_v31 = vld [vmem:[#allocation95_spill] sm:$0xff]  ;;  %v10288_v62 = vld [vmem:[#allocation108_spill] sm:$0xff] }
 0x376   : > { %4239 = vrot.lane.b32.xlu1 %v4105_v8, %s6871_s15  ;;  %6575 = vmatprep.subr.msk.bf16.mxu1 %vm1548_vm7, %v1541_v10  ;;  %v10273_v8 = vld [vmem:[#allocation38_spill] sm:$0xff]  ;;  %v10276_v10 = vld [vmem:[#allocation33_spill] sm:$0xff]  ;;  %v10285_v35 = vld [vmem:[#allocation35_spill] sm:$0xff] }
 0x377   : > { %4215 = vrot.lane.b32.xlu0 %v4168_v5, %s6872_s16  ;;  %1703 = vmatpush1.bf16.msra.mxu1 %v1561_v4  ;;  %v3015_v48 = vsel %vm1034_vm4, %v10273_v8, %v8306_v25  ;;  %v3538_v25 = vcombine.high %v8962_v13, %v10102_v53  ;;  %v5796_v5 = vshrl.u32 %v10276_v10, 16  ;;  %v10280_v4 = vld [vmem:[#allocation28_spill] sm:$0xff]  ;;  %v3008_v50 = vsel %vm1034_vm4, %v10285_v35, %v10284_v20  ;;  %v10287_v8 = vld [vmem:[#allocation14_spill] sm:$0xff]  ;;  %v10295_v20 = vld [vmem:[#allocation121_spill] sm:$0xff] }
 0x378   : > { %v9110_v3 = vpop.permute.xlu1 %2294  ;;  %6579 = vmatprep.subr.msk.bf16.mxu1 %vm1548_vm7, %v1064_v41  ;;  %v9115_v36 = vpop.permute.xlu0 %3540  ;;  %v3017_v57 = vsel %vm1038_vm5, %v3015_v48, %v10275_v31  ;;  %v5797_v28 = vshrl.u32 %v10280_v4, 16  ;;  %v10282_v41 = vld [vmem:[#allocation15_spill] sm:$0xff]  ;;  %v5788_v48 = vshrl.u32 %v10287_v8, 16  ;;  %v10290_v31 = vld [vmem:[#allocation69_spill] sm:$0xff]  ;;  %v10296_v35 = vld [vmem:[#allocation66_spill] sm:$0xff] }
 0x379   : > { %v3019_v19 = vsel %vm1041_vm6, %v3017_v57, %v8454_v26  ;;  %v5379_v26 = vcombine.high %v9120_v33, %v10102_v53  ;;  %v5789_v63 = vshrl.u32 %v10282_v41, 16 }
 0x37a   : > { %4224 = vrot.lane.b32.xlu1 %v4169_v49, %s6872_s16  ;;  %6576 = vmatmul.mubr.msk.bf16.vlgmr.msra.gmra.mxu1 %vm1544_vm8, %v8602_v17  ;;  %v1092_v17 = vsel %vm1041_vm6, %v1090_v55, %v10277_v1  ;;  %v5798_v18 = vpack.i.b16 %v5797_v28, %v5796_v5  ;;  %v3010_v49 = vsel %vm1038_vm5, %v3008_v50, %v10286_v0  ;;  %v10291_v5 = vld [vmem:[#allocation128_spill] sm:$0xff]  ;;  %v10293_v28 = vld [vmem:[#allocation130_spill] sm:$0xff] }
 0x37b   : > { %3600 = vrot.lane.b32.xlu0 %v3537_v29, %s6872_s16  ;;  %6591 = vmatmul.mubr.msk.bf16.vlgmr.msra.gmra.mxu0 %vm1544_vm8, %v9031_v24  ;;  %v3012_v55 = vsel %vm1041_vm6, %v3010_v49, %v10288_v62  ;;  %v5443_v1 = vcombine.high %v10291_v5, %v10102_v53  ;;  %v5790_v6 = vpack.i.b16 %v5789_v63, %v5788_v48  ;;  %v10297_v0 = vld [vmem:[#allocation114_spill] sm:$0xff]  ;;  %v10298_v62 = vld [vmem:[#allocation125_spill] sm:$0xff] }
 0x37c   : > { %3070 = vmatpush1.bf16.msra.mxu0 %v3039_v38  ;;  %1804 = vmatpush1.bf16.msra.mxu1 %v1736_v37  ;;  %v9144_v47 = vpop.permute.xlu1 %3549  ;;  %v9154_v13 = vpop.permute.xlu0 %3543  ;;  %v5380_v37 = vcombine.high %v9147_v56, %v10102_v53  ;;  %v10289_v38 = vld [vmem:[#allocation123_spill] sm:$0xff]  ;;  %v5897_v16 = vcombine.high %v5798_v18, %v7225_v44  ;;  %v9203_v34 = vrot.slane %v5798_v18, %v7148_v58 }
 0x37d   : > { %6599 = vmatprep.subr.msk.bf16.mxu0 %vm1548_vm7, %v3019_v19  ;;  %6583 = vmatprep.subr.msk.bf16.mxu1 %vm1548_vm7, %v1092_v17  ;;  %v2319_v57 = vsel %vm1034_vm4, %v10290_v31, %v10289_v38  ;;  %v9188_v17 = vld [vmem:[%s10028_s3 + $0xc] sm:$0xf]  ;;  %v1744_v19 = vsel %vm1548_vm7, %v1085_v7, 0  ;;  %v3047_v7 = vsel %vm1548_vm7, %v3012_v55, 0  ;;  %v2312_v50 = vsel %vm1034_vm4, %v10296_v35, %v10295_v20 }
 0x37e   : > { %3609 = vrot.lane.b32.xlu1 %v3538_v25, %s6872_s16  ;;  %1821 = vmatprep.mubr.bf16.mxu1 %v10102_v53  ;;  %v2321_v11 = vsel %vm1038_vm5, %v2319_v57, %v10292_v9  ;;  %v5786_v48 = vpack.i.b16 %v10282_v41, %v10287_v8  ;;  %v2314_v55 = vsel %vm1038_vm5, %v2312_v50, %v10298_v62 }
 0x37f   : > { %5505 = vrot.lane.b32.xlu0 %v5379_v26, %s6871_s15  ;;  %3087 = vmatprep.mubr.bf16.mxu0 %v10102_v53  ;;  %v5794_v26 = vpack.i.b16 %v10280_v4, %v10276_v10  ;;  %v2323_v2 = vsel %vm1041_vm6, %v2321_v11, %v10293_v28  ;;  %v10294_v10 = vld [vmem:[#allocation131_spill] sm:$0xff]  ;;  %v5882_v31 = vcombine.high %v5790_v6, %v7225_v44 }
 0x380   : > { %v9173_v29 = vpop.permute.xlu1 %3552  ;;  %v4174_v25 = vpop.permute.xlu0 %4173  ;;  %v5444_v4 = vcombine.high %v10294_v10, %v10102_v53  ;;  %v5889_v57 = vrot.slane %v5790_v6, %v7148_v58  ;;  %v9238_v8 = vrot.slane %v5897_v16, %v7148_v58  ;;  %v5446_v11 = vcombine.high %v8928_v39, %v10102_v53  ;;  %v10301_v6 = vld [vmem:[#allocation93_spill] sm:$0xff] }
 0x381   : > { %v4246_v49 = vsel %vm1034_vm4, %v10297_v0, %v4174_v25  ;;  %v10299_v25 = vld [vmem:[#allocation127_spill] sm:$0xff]  ;;  %v9235_v41 = vrot.slane %v5794_v26, %v7148_v58  ;;  %v2347_v28 = vsel %vm1034_vm4, %v10301_v6, %v8925_v61  ;;  %v5816_v10 = vcombine.high %v5786_v48, %v7225_v44  ;;  %v10302_v0 = vld [vmem:[#allocation92_spill] sm:$0xff] }
 0x382   : > { %5514 = vrot.lane.b32.xlu1 %v5380_v37, %s6871_s15  ;;  %6580 = vmatmul.mubr.msk.bf16.vlgmr.msra.gmra.mxu1 %vm1544_vm8, %v8921_v51  ;;  %v5445_v37 = vcombine.high %v8909_v40, %v10102_v53  ;;  %v5831_v40 = vcombine.high %v5794_v26, %v7225_v44  ;;  %v2316_v5 = vsel %vm1041_vm6, %v2314_v55, %v10299_v25 }
 0x383   : > { %5490 = vrot.lane.b32.xlu0 %v5443_v1, %s6872_s16  ;;  %1886 = vmatpush1.bf16.msra.mxu1 %v1744_v19  ;;  %v10300_v1 = vld [vmem:[#allocation116_spill] sm:$0xff]  ;;  %v4170_v26 = vcombine.high %v9015_v42, %v10102_v53  ;;  %v5912_v16 = vcombine.low %v5889_v57, %v9203_v34  ;;  %v2349_v39 = vsel %vm1038_vm5, %v2347_v28, %v8959_v15 }
 0x384   : > { %6596 = vmatmul.mubr.msk.bf16.vlgmr.msra.gmra.mxu0 %vm1544_vm8, %v9188_v17  ;;  %6588 = vmatprep.subr.msk.bf16.mxu1 %vm1548_vm7, %v2323_v2  ;;  %v4183_v63 = vpop.permute.xlu1 %4182  ;;  %v4177_v18 = vpop.permute.xlu0 %4176  ;;  %v5896_v61 = vrot.slane %v5882_v31, %v7148_v58  ;;  %v9263_v42 = vrot.slane %v5831_v40, %v7148_v58  ;;  %v2351_v20 = vsel %vm1041_vm6, %v2349_v39, %v9110_v3  ;;  %v10303_v3 = vld [vmem:[#allocation117_spill] sm:$0xff]  ;;  %v10304_v40 = vld [vmem:[#allocation118_spill] sm:$0xff] }
 0x385   : > { %3152 = vmatpush1.bf16.msra.mxu0 %v3047_v7  ;;  %1903 = vmatprep.mubr.bf16.mxu1 %v10102_v53  ;;  %v9224_v38 = vsel %vm1038_vm5, %v4246_v49, %v4177_v18  ;;  %v4253_v19 = vsel %vm1034_vm4, %v10300_v1, %v4183_v63  ;;  %v5823_v63 = vrot.slane %v5786_v48, %v7148_v58 }
 0x386   : > { %5499 = vrot.lane.b32.xlu1 %v5444_v4, %s6872_s16  ;;  %3169 = vmatprep.mubr.bf16.mxu0 %v10102_v53  ;;  %v2361_v4 = vsel %vm1548_vm7, %v2316_v5, 0  ;;  %v4171_v50 = vcombine.high %v9039_v14, %v10102_v53  ;;  %v2340_v49 = vsel %vm1034_vm4, %v10302_v0, %v8906_v22  ;;  %v9280_v48 = vrot.slane %v5912_v16, %v7227_v52 }
 0x387   : > { %5508 = vrot.lane.b32.xlu0 %v5445_v37, %s6872_s16  ;;  %v5846_v35 = vcombine.low %v5823_v63, %v9235_v41  ;;  %v5928_v62 = vcombine.low %v5896_v61, %v9238_v8  ;;  %v5830_v14 = vrot.slane %v5816_v10, %v7148_v58  ;;  %v5847_v22 = vcombine.high %v5823_v63, %v9235_v41  ;;  %v10308_v10 = vld [vmem:[#allocation90_spill] sm:$0xff] }
 0x388   : > { %v4186_v9 = vpop.permute.xlu1 %4185  ;;  %v5467_v7 = vpop.permute.xlu0 %5466  ;;  %v5929_v1 = vcombine.high %v5896_v61, %v9238_v8  ;;  %v10310_v61 = vld [vmem:[#allocation47_spill] sm:$0xff] }
 0x389   : > { %v9248_v2 = vsel %vm1038_vm5, %v4253_v19, %v4186_v9  ;;  %v5535_v18 = vsel %vm1034_vm4, %v10303_v3, %v5467_v7  ;;  %v10305_v19 = vld [vmem:[#allocation78_spill] sm:$0xff]  ;;  %v10306_v9 = vld [vmem:[#allocation25_spill] sm:$0xff]  ;;  %v9314_v6 = vrot.slane %v5928_v62, %v7227_v52  ;;  %v9317_v28 = vrot.slane %v5846_v35, %v7227_v52  ;;  %v10307_v7 = vld [vmem:[#allocation80_spill] sm:$0xff] }
 0x38a   : > { %5517 = vrot.lane.b32.xlu1 %v5446_v11, %s6872_s16  ;;  %6584 = vmatmul.mubr.msk.bf16.vlgmr.msra.gmra.mxu1 %vm1544_vm8, %v8921_v51  ;;  %v5913_v51 = vcombine.high %v5889_v57, %v9203_v34  ;;  %v2342_v34 = vsel %vm1038_vm5, %v2340_v49, %v8935_v59  ;;  %v5862_v57 = vcombine.low %v5830_v14, %v9263_v42 }
 0x38b   : > { %4233 = vrot.lane.b32.xlu0 %v4170_v26, %s6872_s16  ;;  %2429 = vmatpush1.bf16.msra.mxu1 %v2361_v4  ;;  %v2344_v31 = vsel %vm1041_vm6, %v2342_v34, %v9083_v21  ;;  %v3001_v41 = vsel %vm1034_vm4, %v10306_v9, %v10305_v19  ;;  %v5863_v16 = vcombine.high %v5830_v14, %v9263_v42  ;;  %v10309_v4 = vld [vmem:[#allocation46_spill] sm:$0xff]  ;;  %v10314_v14 = vld [vmem:[#allocation79_spill] sm:$0xff]  ;;  %v10317_v9 = vld [vmem:[#allocation105_spill] sm:$0xff] }
 0x38c   : > { %6592 = vmatprep.subr.msk.bf16.mxu1 %vm1548_vm7, %v2351_v20  ;;  %v5476_v15 = vpop.permute.xlu1 %5475  ;;  %2446 = vmatprep.mubr.bf16.mxu1 %v10102_v53  ;;  %v5470_v37 = vpop.permute.xlu0 %5469  ;;  %v9302_v5 = vrot.slane %v5913_v51, %v7227_v52  ;;  %v3003_v26 = vsel %vm1038_vm5, %v3001_v41, %v10307_v7  ;;  %v2369_v8 = vsel %vm1548_vm7, %v2344_v31, 0  ;;  %v5813_v39 = vshrl.u32 %v10309_v4, 16  ;;  %v10312_v51 = vld [vmem:[#allocation24_spill] sm:$0xff] }
 0x38d   : > { %6600 = vmatmul.mubr.msk.bf16.vlgmr.msra.gmra.mxu0 %vm1544_vm8, %v9188_v17  ;;  %v9289_v55 = vsel %vm1038_vm5, %v5535_v18, %v5470_v37  ;;  %v5542_v59 = vsel %vm1034_vm4, %v10304_v40, %v5476_v15  ;;  %v3005_v63 = vsel %vm1041_vm6, %v3003_v26, %v10308_v10  ;;  %v5812_v20 = vshrl.u32 %v10310_v61, 16  ;;  %v10313_v37 = vld [vmem:[#allocation20_spill] sm:$0xff]  ;;  %v10316_v40 = vld [vmem:[#allocation18_spill] sm:$0xff] }
 0x38e   : > { %4242 = vrot.lane.b32.xlu1 %v4171_v50, %s6872_s16  ;;  %3720 = vmatprep.mubr.bf16.mxu0 %v10102_v53  ;;  %v9337_v15 = vrot.slane %v5929_v1, %v7227_v52  ;;  %v9341_v42 = vrot.slane %v5847_v22, %v7227_v52  ;;  %v10311_v50 = vld [vmem:[#allocation77_spill] sm:$0xff]  ;;  %v5878_v3 = vcombine.high %v9317_v28, %v10102_v53  ;;  %v5805_v62 = vshrl.u32 %v10313_v37, 16  ;;  %v10318_v41 = vld [vmem:[#allocation48_spill] sm:$0xff] }
 0x38f   : > { %6081 = vrot.lane.b32.xlu0 %v9280_v48, %s6870_s14  ;;  %v2994_v0 = vsel %vm1034_vm4, %v10312_v51, %v10311_v50  ;;  %v9351_v18 = vrot.slane %v5862_v57, %v7227_v52  ;;  %v10315_v22 = vld [vmem:[#allocation89_spill] sm:$0xff]  ;;  %v9367_v19 = vrot.slane %v5863_v16, %v7227_v52  ;;  %v3029_v7 = vsel %vm1034_vm4, %v10318_v41, %v10317_v9  ;;  %v10320_v16 = vld [vmem:[#allocation115_spill] sm:$0xff]  ;;  %v10323_v41 = vld [vmem:[#allocation106_spill] sm:$0xff] }
 0x390   : > { %v5479_v25 = vpop.permute.xlu1 %5478  ;;  %v9311_v11 = vpop.permute.xlu0 %5454  ;;  %v2996_v34 = vsel %vm1038_vm5, %v2994_v0, %v10314_v14  ;;  %v5879_v57 = vcombine.high %v9341_v42, %v10102_v53  ;;  %v10322_v14 = vld [vmem:[#allocation45_spill] sm:$0xff] }
 0x391   : > { %v9309_v21 = vsel %vm1038_vm5, %v5542_v59, %v5479_v25  ;;  %v2998_v31 = vsel %vm1041_vm6, %v2996_v34, %v10315_v22  ;;  %v5804_v59 = vshrl.u32 %v10316_v40, 16  ;;  %v5814_v25 = vpack.i.b16 %v5813_v39, %v5812_v20  ;;  %v10319_v20 = vld [vmem:[#allocation107_spill] sm:$0xff] }
 0x392   : > { %6090 = vrot.lane.b32.xlu1 %v9302_v5, %s6870_s14  ;;  %6589 = vmatmul.mubr.msk.bf16.vlgmr.msra.gmra.mxu1 %vm1544_vm8, %v9031_v24  ;;  %v3043_v39 = vsel %vm1548_vm7, %v2998_v31, 0  ;;  %v3031_v50 = vsel %vm1038_vm5, %v3029_v7, %v10319_v20  ;;  %v5944_v31 = vcombine.high %v9280_v48, %v10102_v53 }
 0x393   : > { %6099 = vrot.lane.b32.xlu0 %v9314_v6, %s6870_s14  ;;  %2511 = vmatpush1.bf16.msra.mxu1 %v2369_v8  ;;  %v5880_v8 = vcombine.high %v9351_v18, %v10102_v53  ;;  %v5806_v10 = vpack.i.b16 %v5805_v62, %v5804_v59  ;;  %v3033_v51 = vsel %vm1041_vm6, %v3031_v50, %v10320_v16  ;;  %v10321_v62 = vld [vmem:[#allocation104_spill] sm:$0xff] }
 0x394   : > { %6597 = vmatprep.subr.msk.bf16.mxu1 %vm1548_vm7, %v3005_v63  ;;  %v9334_v35 = vpop.permute.xlu1 %5463  ;;  %2528 = vmatprep.mubr.bf16.mxu1 %v10102_v53  ;;  %v9346_v49 = vpop.permute.xlu0 %3558  ;;  %v5810_v63 = vpack.i.b16 %v10309_v4, %v10310_v61  ;;  %v6029_v0 = vcombine.high %v5814_v25, %v7225_v44  ;;  %v5881_v61 = vcombine.high %v9367_v19, %v10102_v53 }
 0x395   : > { %v3022_v34 = vsel %vm1034_vm4, %v10322_v14, %v10321_v62  ;;  %v6014_v59 = vcombine.high %v5806_v10, %v7225_v44 }
 0x396   : > { %6108 = vrot.lane.b32.xlu1 %v9337_v15, %s6870_s14  ;;  %v5963_v9 = vcombine.high %v5810_v63, %v7225_v44  ;;  %v3024_v7 = vsel %vm1038_vm5, %v3022_v34, %v10323_v41  ;;  %v6043_v20 = vrot.slane %v6029_v0, %v7148_v58 }
 0x397   : > { %6084 = vrot.lane.b32.xlu0 %v5878_v3, %s6871_s15  ;;  %v6036_v3 = vrot.slane %v5814_v25, %v7148_v58 }
 0x398   : > { %v9362_v1 = vpop.permute.xlu1 %3567  ;;  %v5977_v34 = vrot.slane %v5963_v9, %v7148_v58 }
 0x399   : > { %v9372_v26 = vpop.permute.xlu0 %3561 }
 0x39a   : > { %6093 = vrot.lane.b32.xlu1 %v5879_v57, %s6871_s15  ;;  %6593 = vmatmul.mubr.msk.bf16.vlgmr.msra.gmra.mxu1 %vm1544_vm8, %v9031_v24  ;;  %v5802_v24 = vpack.i.b16 %v10313_v37, %v10316_v40  ;;  %v6021_v57 = vrot.slane %v5806_v10, %v7148_v58  ;;  %v5970_v37 = vrot.slane %v5810_v63, %v7148_v58  ;;  %v10324_v40 = vld [vmem:[#allocation113_spill] sm:$0xff] }
 0x39b   : > { %6102 = vrot.lane.b32.xlu0 %v5880_v8, %s6871_s15  ;;  %3111 = vmatpush1.bf16.msra.mxu1 %v3043_v39  ;;  %v3026_v25 = vsel %vm1041_vm6, %v3024_v7, %v10324_v40  ;;  %v10325_v8 = vld [vmem:[#allocation109_spill] sm:$0xff]  ;;  %v10326_v39 = vld [vmem:[#allocation110_spill] sm:$0xff] }
 0x39c   : > { %6601 = vmatprep.subr.msk.bf16.mxu1 %vm1548_vm7, %v3033_v51  ;;  %v9389_v4 = vpop.permute.xlu1 %3570  ;;  %3128 = vmatprep.mubr.bf16.mxu1 %v10102_v53  ;;  %v3613_v48 = vsel %vm1034_vm4, %v10325_v8, %v9115_v36  ;;  %v3620_v10 = vsel %vm1034_vm4, %v10326_v39, %v9144_v47  ;;  %v5945_v51 = vcombine.high %v9302_v5, %v10102_v53  ;;  %v3051_v0 = vsel %vm1548_vm7, %v3026_v25, 0  ;;  %v9449_v25 = vld [vmem:[%s10028_s3 + $0x10] sm:$0xf] }
 0x39d   : > { %v3547_v22 = vpop.permute.xlu0 %3546  ;;  %v3615_v50 = vsel %vm1038_vm5, %v3613_v48, %v9154_v13  ;;  %v3622_v63 = vsel %vm1038_vm5, %v3620_v10, %v9173_v29  ;;  %v5946_v47 = vcombine.high %v9314_v6, %v10102_v53  ;;  %v6044_v14 = vcombine.low %v6021_v57, %v6036_v3 }
 0x39e   : > { %6111 = vrot.lane.b32.xlu1 %v5881_v61, %s6871_s15  ;;  %v3617_v36 = vsel %vm1041_vm6, %v3615_v50, %v3547_v22  ;;  %v5948_v13 = vcombine.high %v5802_v24, %v7225_v44  ;;  %v5955_v29 = vrot.slane %v5802_v24, %v7148_v58  ;;  %v6028_v5 = vrot.slane %v6014_v59, %v7148_v58  ;;  %v10327_v24 = vld [vmem:[#allocation122_spill] sm:$0xff] }
 0x39f   : > { %6087 = vrot.lane.b32.xlu0 %v5944_v31, %s6872_s16  ;;  %v3672_v6 = vsel %vm1548_vm7, %v3617_v36, 0  ;;  %v5947_v31 = vcombine.high %v9337_v15, %v10102_v53  ;;  %v6045_v41 = vcombine.high %v6021_v57, %v6036_v3  ;;  %v6052_v40 = vrot.slane %v6044_v14, %v7227_v52  ;;  %v10328_v57 = vld [vmem:[#allocation124_spill] sm:$0xff] }
 0x3a0   : > { %v3556_v16 = vpop.permute.xlu1 %3555  ;;  %v5978_v44 = vcombine.low %v5955_v29, %v5970_v37  ;;  %v6060_v9 = vcombine.low %v6028_v5, %v6043_v20  ;;  %v5962_v15 = vrot.slane %v5948_v13, %v7148_v58  ;;  %v5979_v3 = vcombine.high %v5955_v29, %v5970_v37 }
 0x3a1   : > { %v3624_v61 = vsel %vm1041_vm6, %v3622_v63, %v3556_v16  ;;  %v4192_v62 = vpop.permute.xlu0 %4191  ;;  %v6059_v10 = vrot.slane %v6045_v41, %v7227_v52  ;;  %v6061_v50 = vcombine.high %v6028_v5, %v6043_v20  ;;  %v10329_v41 = vld [vmem:[#allocation129_spill] sm:$0xff] }
 0x3a2   : > { %6096 = vrot.lane.b32.xlu1 %v5945_v51, %s6872_s16  ;;  %6598 = vmatmul.mubr.msk.bf16.vlgmr.msra.gmra.mxu1 %vm1544_vm8, %v9188_v17  ;;  %v4260_v59 = vsel %vm1034_vm4, %v10327_v24, %v4192_v62  ;;  %v5994_v63 = vcombine.low %v5962_v15, %v5977_v34  ;;  %v6068_v58 = vrot.slane %v6060_v9, %v7227_v52 }
 0x3a3   : > { %6105 = vrot.lane.b32.xlu0 %v5946_v47, %s6872_s16  ;;  %3193 = vmatpush1.bf16.msra.mxu1 %v3051_v0  ;;  %v9469_v37 = vrot.slane %v5978_v44, %v7227_v52  ;;  %v5995_v20 = vcombine.high %v5962_v15, %v5977_v34  ;;  %v9481_v62 = vrot.slane %v5979_v3, %v7227_v52  ;;  %v10331_v3 = vld [vmem:[#allocation119_spill] sm:$0xff] }
 0x3a4   : > { %6604 = vmatprep.subr.msk.bf16.mxu0 %vm1548_vm7, %v3624_v61  ;;  %v4201_v22 = vpop.permute.xlu1 %4200  ;;  %3210 = vmatprep.mubr.bf16.mxu1 %v10102_v53  ;;  %v6075_v61 = vrot.slane %v6061_v50, %v7227_v52  ;;  %v9486_v0 = vrot.slane %v5994_v63, %v7227_v52  ;;  %v6076_v24 = vcombine.high %v6052_v40, %v10102_v53  ;;  %v10332_v63 = vld [vmem:[#allocation120_spill] sm:$0xff] }
 0x3a5   : > { %3703 = vmatpush1.bf16.msra.mxu0 %v3672_v6  ;;  %v4195_v7 = vpop.permute.xlu0 %4194  ;;  %v4267_v48 = vsel %vm1034_vm4, %v10328_v57, %v4201_v22  ;;  %v6010_v14 = vcombine.high %v9469_v37, %v10102_v53  ;;  %v6011_v29 = vcombine.high %v9481_v62, %v10102_v53  ;;  %v9497_v5 = vrot.slane %v5995_v20, %v7227_v52 }
 0x3a6   : > { %v9452_v8 = vsel %vm1038_vm5, %v4260_v59, %v4195_v7  ;;  %6114 = vrot.lane.b32.xlu1 %v5947_v31, %s6872_s16  ;;  %v10330_v59 = vld [vmem:[#allocation132_spill] sm:$0xff]  ;;  %v6077_v15 = vcombine.high %v6059_v10, %v10102_v53  ;;  %v3627_v57 = vsel %vm1034_vm4, %v10331_v3, %v9346_v49  ;;  %v3634_v20 = vsel %vm1034_vm4, %v10332_v63, %v9362_v1  ;;  %v10334_v63 = vld [vmem:[#allocation134_spill] sm:$0xff] }
 0x3a7   : > { %6117 = vrot.lane.b32.xlu0 %v6052_v40, %s6870_s14  ;;  %v6013_v31 = vcombine.high %v9497_v5, %v10102_v53  ;;  %v3629_v50 = vsel %vm1038_vm5, %v3627_v57, %v9372_v26  ;;  %v3636_v49 = vsel %vm1038_vm5, %v3634_v20, %v9389_v4  ;;  %v10333_v57 = vld [vmem:[#allocation133_spill] sm:$0xff] }
 0x3a8   : > { %v4204_v39 = vpop.permute.xlu1 %4203  ;;  %6605 = vmatmul.mubr.msk.bf16.vlgmr.msra.gmra.mxu0 %vm1544_vm8, %v9449_v25 }
 0x3a9   : > { %v9463_v16 = vsel %vm1038_vm5, %v4267_v48, %v4204_v39  ;;  %v9465_v51 = vpop.permute.xlu0 %4179  ;;  %3802 = vmatprep.mubr.bf16.mxu0 %v10102_v53  ;;  %v6078_v39 = vcombine.high %v6068_v58, %v10102_v53 }
 0x3aa   : > { %6126 = vrot.lane.b32.xlu1 %v6059_v10, %s6870_s14  ;;  %6602 = vmatmul.mubr.msk.bf16.vlgmr.msra.gmra.mxu1 %vm1544_vm8, %v9188_v17 }
 0x3ab   : > { %6135 = vrot.lane.b32.xlu0 %v6068_v58, %s6870_s14  ;;  %3761 = vmatprep.mubr.bf16.mxu1 %v10102_v53 }
 0x3ac   : > { %v9477_v36 = vpop.permute.xlu1 %4188 }
 0x3ad   : > { %v5473_v47 = vpop.permute.xlu0 %5472 }
 0x3ae   : > { %v9490_v17 = vsel %vm1041_vm6, %v9289_v55, %v5473_v47  ;;  %6144 = vrot.lane.b32.xlu1 %v6075_v61, %s6870_s14  ;;  %v6012_v55 = vcombine.high %v9486_v0, %v10102_v53  ;;  %s6478_s14 = sshll.u32 %s9930_s9, 4  ;;  %s9982_s14 = int_to_ptr.vmem [resolvable:$true] %s6478_s14 }
 0x3af   : > { %6120 = vrot.lane.b32.xlu0 %v6010_v14, %s6871_s15  ;;  %v6079_v14 = vcombine.high %v6075_v61, %v10102_v53  ;;  %s6801_s18 = scalar_lea.vmem %s9982_s14, 1024  ;;  %p6808_p0 = scmp.lt.s32.totalorder %s9982_s14, %s6806_s20 }
 0x3b0   : > { %v5482_v13 = vpop.permute.xlu1 %5481  ;;  %p6802_p11 = scmp.ne.s32.totalorder %s9982_s14, %s6801_s18  ;;  %p6809_p1 = scmp.lt.s32.totalorder %s6807_s21, %s6801_s18 }
 0x3b1   : > { %v9501_v34 = vsel %vm1041_vm6, %v9309_v21, %v5482_v13  ;;  %v5485_v6 = vpop.permute.xlu0 %5484 }
 0x3b2   : > { %6129 = vrot.lane.b32.xlu1 %v6011_v29, %s6871_s15  ;;  %v5549_v52 = vsel %vm1034_vm4, %v10329_v41, %v5485_v6  ;;  %p6803_p12 = pnand %p6802_p11, %p6955_p5  ;;  %p6810_p2 = por %p6809_p1, %p6808_p0 }
 0x3b3   : > { %6138 = vrot.lane.b32.xlu0 %v6012_v55, %s6871_s15 }
 0x3b4   : > { %v5494_v22 = vpop.permute.xlu1 %5493  ;;  %p6804_p13 = pneg %p6803_p12 }
 0x3b5   : > { %v5488_v44 = vpop.permute.xlu0 %5487  ;;  %v5556_v7 = vsel %vm1034_vm4, %v10330_v59, %v5494_v22  ;;  %v6401_v59 = vld [vmem:[%s10029_s4] sm:$0xff] }
 0x3b6   : > { %v9513_v21 = vsel %vm1038_vm5, %v5549_v52, %v5488_v44  ;;  %6147 = vrot.lane.b32.xlu1 %v6013_v31, %s6871_s15  ;;  %p6811_p3 = pnand %p6810_p2, %p6804_p13 }
 0x3b7   : > { %6123 = vrot.lane.b32.xlu0 %v6076_v24, %s6872_s16 }
 0x3b8   : > { %v5497_v9 = vpop.permute.xlu1 %5496 }
 0x3b9   : > { %v9524_v48 = vsel %vm1038_vm5, %v5556_v7, %v5497_v9  ;;  %v3565_v40 = vpop.permute.xlu0 %3564  ;;  %v6415_v7 = vld [vmem:[%s10030_s5] sm:$0xff] }
 0x3ba   : > { %6132 = vrot.lane.b32.xlu1 %v6077_v15, %s6872_s16  ;;  %v3631_v10 = vsel %vm1041_vm6, %v3629_v50, %v3565_v40 }
 0x3bb   : > { %6141 = vrot.lane.b32.xlu0 %v6078_v39, %s6872_s16  ;;  %v3676_v26 = vsel %vm1548_vm7, %v3631_v10, 0 }
 0x3bc   : > { %v3574_v47 = vpop.permute.xlu1 %3573 }
 0x3bd   : > { %v3638_v58 = vsel %vm1041_vm6, %v3636_v49, %v3574_v47  ;;  %v3577_v13 = vpop.permute.xlu0 %3576 }
 0x3be   : > { %6150 = vrot.lane.b32.xlu1 %v6079_v14, %s6872_s16  ;;  %6606 = vmatprep.subr.msk.bf16.mxu1 %vm1548_vm7, %v3638_v58  ;;  %v3641_v40 = vsel %vm1034_vm4, %v10333_v57, %v3577_v13  ;;  %v4250_v13 = vsel %vm1041_vm6, %v9224_v38, %v9465_v51 }
 0x3bf   : > { %3744 = vmatpush1.bf16.msra.mxu1 %v3676_v26  ;;  %6404 = vperm.xlu0 %6791, %v6401_v59   ;;  %v4305_v59 = vsel %vm1548_vm7, %v4250_v13, 0  ;;  %v10338_v13 = vld [vmem:[#allocation76_spill] sm:$0xff] }
 0x3c0   : > { %v3586_v1 = vpop.permute.xlu1 %3585 }
 0x3c1   : > { %v3580_v29 = vpop.permute.xlu0 %3579  ;;  %v3648_v20 = vsel %vm1034_vm4, %v10334_v63, %v3586_v1  ;;  %v4257_v1 = vsel %vm1041_vm6, %v9248_v2, %v9477_v36 }
 0x3c2   : > { %6607 = vmatmul.mubr.msk.bf16.vlgmr.msra.gmra.mxu1 %vm1544_vm8, %v9449_v25  ;;  %6418 = vperm.xlu1 %6792, %v6415_v7   ;;  %v3643_v50 = vsel %vm1038_vm5, %v3641_v40, %v3580_v29 }
 0x3c3   : > { %3843 = vmatprep.mubr.bf16.mxu1 %v10102_v53 }
 0x3c4   : > { %v3589_v4 = vpop.permute.xlu1 %3588 }
 0x3c5   : > { %v9545_v6 = vpop.permute.xlu0 %4197  ;;  %v3650_v49 = vsel %vm1038_vm5, %v3648_v20, %v3589_v4 }
 0x3c8   : > { %v9547_v61 = vpop.permute.xlu1 %4206 }
 0x3c9   : > { %v4210_v55 = vpop.permute.xlu0 %4209 }
 0x3ca   : > { %v4274_v2 = vsel %vm1034_vm4, %v8848_v46, %v4210_v55  ;;  %v10335_v46 = vld [vmem:[#allocation60_spill] sm:$0xff]  ;;  %v10336_v55 = vld [vmem:[#allocation17_spill] sm:$0xff] }
 0x3cc   : > { %v4219_v22 = vpop.permute.xlu1 %4218 }
 0x3cd   : > { %v4213_v31 = vpop.permute.xlu0 %4212  ;;  %v4281_v57 = vsel %vm1034_vm4, %v8875_v60, %v4219_v22 }
 0x3ce   : > { %v4276_v36 = vsel %vm1038_vm5, %v4274_v2, %v4213_v31  ;;  %v4895_v31 = vsel %vm1034_vm4, %v10336_v55, %v10335_v46  ;;  %v4264_v55 = vsel %vm1041_vm6, %v9452_v8, %v9545_v6 }
 0x3cf   : > { %v4309_v6 = vsel %vm1548_vm7, %v4264_v55, 0  ;;  %v10352_v55 = vld [vmem:[#allocation71_spill] sm:$0xff] }
 0x3d0   : > { %v4222_v41 = vpop.permute.xlu1 %4221 }
 0x3d1   : > { %v9549_v52 = vpop.permute.xlu0 %5502 }
 0x3d4   : > { %v9551_v44 = vpop.permute.xlu1 %5511 }
 0x3d5   : > { %v3595_v24 = vpop.permute.xlu0 %3594 }
 0x3d8   : > { %v3604_v9 = vpop.permute.xlu1 %3603 }
 0x3d9   : > { %v3598_v15 = vpop.permute.xlu0 %3597 }
 0x3dc   : > { %v3607_v3 = vpop.permute.xlu1 %3606 }
 0x3dd   : > { %v3583_v39 = vpop.permute.xlu0 %3582 }
 0x3de   : > { %v3645_v10 = vsel %vm1041_vm6, %v3643_v50, %v3583_v39  ;;  %v9599_v39 = vld [vmem:[%s10028_s3 + $0x14] sm:$0xf]  ;;  %v4283_v50 = vsel %vm1038_vm5, %v4281_v57, %v4222_v41 }
 0x3df   : > { %v3680_v26 = vsel %vm1548_vm7, %v3645_v10, 0  ;;  %v3655_v10 = vsel %vm1034_vm4, %v8941_v30, %v3595_v24  ;;  %v3662_v30 = vsel %vm1034_vm4, %v8966_v12, %v3604_v9  ;;  %v10341_v12 = vld [vmem:[#allocation61_spill] sm:$0xff] }
 0x3e0   : > { %v3592_v47 = vpop.permute.xlu1 %3591 }
 0x3e1   : > { %v3652_v14 = vsel %vm1041_vm6, %v3650_v49, %v3592_v47  ;;  %v9567_v58 = vpop.permute.xlu0 %4227  ;;  %v10337_v49 = vld [vmem:[#allocation62_spill] sm:$0xff] }
 0x3e2   : > { %6608 = vmatprep.subr.msk.bf16.mxu0 %vm1548_vm7, %v3652_v14  ;;  %v4897_v47 = vsel %vm1038_vm5, %v4895_v31, %v10337_v49  ;;  %v3657_v14 = vsel %vm1038_vm5, %v3655_v10, %v3598_v15  ;;  %v3664_v15 = vsel %vm1038_vm5, %v3662_v30, %v3607_v3  ;;  %v10342_v3 = vld [vmem:[#allocation75_spill] sm:$0xff]  ;;  %v4271_v31 = vsel %vm1041_vm6, %v9463_v16, %v9547_v61 }
 0x3e3   : > { %3785 = vmatpush1.bf16.msra.mxu0 %v3680_v26  ;;  %v10346_v16 = vld [vmem:[#allocation103_spill] sm:$0xff] }
 0x3e4   : > { %v9577_v29 = vpop.permute.xlu1 %4236  ;;  %6613 = vmatprep.subr.msk.bf16.mxu0 %vm1548_vm7, %v4257_v1  ;;  %v4899_v1 = vsel %vm1041_vm6, %v4897_v47, %v10338_v13  ;;  %v10347_v13 = vld [vmem:[#allocation85_spill] sm:$0xff] }
 0x3e5   : > { %v9580_v4 = vpop.permute.xlu0 %4230 }
 0x3e6   : > { %6609 = vmatmul.mubr.msk.bf16.vlgmr.msra.gmra.mxu0 %vm1544_vm8, %v9449_v25 }
 0x3e7   : > { %4336 = vmatpush1.bf16.msra.mxu0 %v4305_v59  ;;  %4353 = vmatprep.mubr.bf16.mxu0 %v10102_v53 }
 0x3e8   : > { %v9586_v38 = vpop.permute.xlu1 %4239 }
 0x3e9   : > { %v4216_v51 = vpop.permute.xlu0 %4215 }
 0x3ea   : > { %v9591_v7 = vpop.f32.mrf.mxu1  ;;  %v4278_v40 = vsel %vm1041_vm6, %v4276_v36, %v4216_v51  ;;  %v10339_v51 = vld [vmem:[#allocation59_spill] sm:$0xff]  ;;  %v10340_v36 = vld [vmem:[#allocation16_spill] sm:$0xff] }
 0x3eb   : > { %v4313_v41 = vsel %vm1548_vm7, %v4278_v40, 0  ;;  %v4888_v57 = vsel %vm1034_vm4, %v10340_v36, %v10339_v51  ;;  %v9676_v51 = vld [vmem:[%s10028_s3 + $0x18] sm:$0xf] }
 0x3ec   : > { %v4225_v63 = vpop.permute.xlu1 %4224  ;;  %v9602_v20 = vpop.f32.mrf.mxu1  ;;  %v4890_v9 = vsel %vm1038_vm5, %v4888_v57, %v10341_v12  ;;  %v10351_v57 = vld [vmem:[#allocation101_spill] sm:$0xff]  ;;  %v4288_v12 = vsel %vm1034_vm4, %v9018_v23, %v9567_v58  ;;  %v4295_v23 = vsel %vm1034_vm4, %v9042_v32, %v9577_v29  ;;  %v10356_v29 = vld [vmem:[#allocation99_spill] sm:$0xff] }
 0x3ed   : > { %v4285_v60 = vsel %vm1041_vm6, %v4283_v50, %v4225_v63  ;;  %v3601_v22 = vpop.permute.xlu0 %3600  ;;  %v4892_v46 = vsel %vm1041_vm6, %v4890_v9, %v10342_v3 }
 0x3ee   : > { %6614 = vmatmul.mubr.msk.bf16.vlgmr.msra.gmra.mxu0 %vm1544_vm8, %v9599_v39  ;;  %6617 = vmatprep.subr.msk.bf16.mxu0 %vm1548_vm7, %v4285_v60  ;;  %v1603_v26 = vpop.f32.mrf.mxu1  ;;  %v3659_v24 = vsel %vm1041_vm6, %v3657_v14, %v3601_v22  ;;  %v10343_v60 = vld [vmem:[#allocation86_spill] sm:$0xff]  ;;  %v10344_v22 = vld [vmem:[#allocation32_spill] sm:$0xff]  ;;  %v4947_v14 = vsel %vm1548_vm7, %v4892_v46, 0  ;;  %v4290_v46 = vsel %vm1038_vm5, %v4288_v12, %v9580_v4 }
 0x3ef   : > { %4418 = vmatpush1.bf16.msra.mxu0 %v4313_v41  ;;  %4435 = vmatprep.mubr.bf16.mxu0 %v10102_v53  ;;  %v3684_v63 = vsel %vm1548_vm7, %v3659_v24, 0  ;;  %v4923_v49 = vsel %vm1034_vm4, %v10344_v22, %v10343_v60  ;;  %v10345_v41 = vld [vmem:[#allocation88_spill] sm:$0xff]  ;;  %v10355_v22 = vld [vmem:[#allocation23_spill] sm:$0xff] }
 0x3f0   : > { %v3610_v59 = vpop.permute.xlu1 %3609  ;;  %6622 = vmatprep.subr.msk.bf16.mxu0 %vm1548_vm7, %v4899_v1  ;;  %v1604_v2 = vpop.f32.mrf.mxu1  ;;  %v4925_v8 = vsel %vm1038_vm5, %v4923_v49, %v10345_v41  ;;  %v10348_v1 = vld [vmem:[#allocation30_spill] sm:$0xff]  ;;  %v10354_v60 = vld [vmem:[#allocation72_spill] sm:$0xff]  ;;  %v5521_v49 = vsel %vm1034_vm4, %v10356_v29, %v8992_v43  ;;  %v10357_v41 = vld [vmem:[#allocation73_spill] sm:$0xff] }
 0x3f1   : > { %v3666_v40 = vsel %vm1041_vm6, %v3664_v15, %v3610_v59  ;;  %v9629_v50 = vpop.permute.xlu0 %5505  ;;  %v4927_v61 = vsel %vm1041_vm6, %v4925_v8, %v10346_v16  ;;  %v4916_v30 = vsel %vm1034_vm4, %v10348_v1, %v10347_v13  ;;  %v10350_v59 = vld [vmem:[#allocation102_spill] sm:$0xff]  ;;  %v4909_v32 = vsel %vm1034_vm4, %v10355_v22, %v10354_v60 }
 0x3f2   : > { %6610 = vmatprep.subr.msk.bf16.mxu1 %vm1548_vm7, %v3666_v40  ;;  %v5528_v40 = vsel %vm1034_vm4, %v10351_v57, %v9004_v27  ;;  %v10361_v57 = vld [vmem:[#allocation97_spill] sm:$0xff]  ;;  %v10367_v22 = vld [vmem:[#allocation98_spill] sm:$0xff] }
 0x3f3   : > { %3826 = vmatpush1.bf16.msra.mxu1 %v3684_v63  ;;  %v5530_v3 = vsel %vm1038_vm5, %v5528_v40, %v9036_v45  ;;  %v4297_v45 = vsel %vm1038_vm5, %v4295_v23, %v9586_v38  ;;  %v10362_v40 = vld [vmem:[#allocation42_spill] sm:$0xff]  ;;  %v10364_v23 = vld [vmem:[#allocation112_spill] sm:$0xff] }
 0x3f4   : > { %v9643_v10 = vpop.permute.xlu1 %5514  ;;  %6615 = vmatprep.subr.msk.bf16.mxu1 %vm1548_vm7, %v4271_v31  ;;  %v5532_v27 = vsel %vm1041_vm6, %v5530_v3, %v9334_v35  ;;  %v10353_v31 = vld [vmem:[#allocation22_spill] sm:$0xff]  ;;  %v4937_v12 = vsel %vm1034_vm4, %v10362_v40, %v10361_v57  ;;  %v10363_v3 = vld [vmem:[#allocation100_spill] sm:$0xff] }
 0x3f5   : > { %v9649_v47 = vpop.permute.xlu0 %5490  ;;  %v4902_v35 = vsel %vm1034_vm4, %v10353_v31, %v10352_v55  ;;  %v10365_v31 = vld [vmem:[#allocation96_spill] sm:$0xff]  ;;  %v9817_v57 = vld [vmem:[%s10028_s3 + $0x20] sm:$0xf] }
 0x3f6   : > { %6611 = vmatmul.mubr.msk.bf16.vlgmr.msra.gmra.mxu1 %vm1544_vm8, %v9449_v25  ;;  %6618 = vmatmul.mubr.msk.bf16.vlgmr.msra.gmra.mxu0 %vm1544_vm8, %v9599_v39  ;;  %v10349_v25 = vld [vmem:[#allocation87_spill] sm:$0xff]  ;;  %v4904_v8 = vsel %vm1038_vm5, %v4902_v35, %v10357_v41  ;;  %v5553_v29 = vsel %vm1041_vm6, %v9513_v21, %v9649_v47 }
 0x3f7   : > { %4978 = vmatpush1.bf16.msra.mxu0 %v4947_v14  ;;  %4377 = vmatpush1.bf16.msra.mxu1 %v4309_v6  ;;  %v4918_v15 = vsel %vm1038_vm5, %v4916_v30, %v10349_v25  ;;  %v10358_v6 = vld [vmem:[#allocation74_spill] sm:$0xff]  ;;  %v10359_v30 = vld [vmem:[#allocation83_spill] sm:$0xff]  ;;  %v10360_v25 = vld [vmem:[#allocation84_spill] sm:$0xff] }
 0x3f8   : > { %6626 = vmatprep.subr.msk.bf16.mxu0 %vm1548_vm7, %v4927_v61  ;;  %v5500_v26 = vpop.permute.xlu1 %5499  ;;  %4394 = vmatprep.mubr.bf16.mxu1 %v10102_v53  ;;  %v4920_v2 = vsel %vm1041_vm6, %v4918_v15, %v10350_v59  ;;  %v4911_v16 = vsel %vm1038_vm5, %v4909_v32, %v10358_v6  ;;  %v5523_v61 = vsel %vm1038_vm5, %v5521_v49, %v9012_v54  ;;  %v9769_v49 = vld [vmem:[%s10028_s3 + $0x1c] sm:$0xf]  ;;  %v5588_v6 = vsel %vm1548_vm7, %v5553_v29, 0 }
 0x3f9   : > { %v9666_v24 = vpop.permute.xlu0 %5508  ;;  %4995 = vmatprep.mubr.bf16.mxu0 %v10102_v53  ;;  %v4955_v63 = vsel %vm1548_vm7, %v4920_v2, 0  ;;  %v4906_v43 = vsel %vm1041_vm6, %v4904_v8, %v10359_v30  ;;  %v4913_v15 = vsel %vm1041_vm6, %v4911_v16, %v10360_v25  ;;  %v5525_v59 = vsel %vm1041_vm6, %v5523_v61, %v9311_v11 }
 0x3fc   : > { %v9678_v36 = vpop.permute.xlu1 %5517 }
 0x3fd   : > { %v4234_v9 = vpop.permute.xlu0 %4233 }
 0x3fe   : > { %6616 = vmatmul.mubr.msk.bf16.vlgmr.msra.gmra.mxu1 %vm1544_vm8, %v9599_v39  ;;  %6623 = vmatmul.mubr.msk.bf16.vlgmr.msra.gmra.mxu0 %vm1544_vm8, %v9676_v51  ;;  %v4292_v58 = vsel %vm1041_vm6, %v4290_v46, %v4234_v9  ;;  %v4939_v46 = vsel %vm1038_vm5, %v4937_v12, %v10363_v3 }
 0x3ff   : > { %5060 = vmatpush1.bf16.msra.mxu0 %v4955_v63  ;;  %4476 = vmatprep.mubr.bf16.mxu1 %v10102_v53  ;;  %v4317_v13 = vsel %vm1548_vm7, %v4292_v58, 0  ;;  %v4951_v63 = vsel %vm1548_vm7, %v4906_v43, 0  ;;  %v4941_v58 = vsel %vm1041_vm6, %v4939_v46, %v10364_v23 }
 0x400   : > { %6631 = vmatprep.subr.msk.bf16.mxu0 %vm1548_vm7, %v5532_v27  ;;  %v4243_v4 = vpop.permute.xlu1 %4242  ;;  %5077 = vmatprep.mubr.bf16.mxu0 %v10102_v53  ;;  %v5580_v27 = vsel %vm1548_vm7, %v5525_v59, 0 }
 0x401   : > { %v4299_v14 = vsel %vm1041_vm6, %v4297_v45, %v4243_v4  ;;  %v6082_v38 = vpop.permute.xlu0 %6081  ;;  %v5560_v45 = vsel %vm1041_vm6, %v9524_v48, %v5500_v26  ;;  %v10368_v26 = vld [vmem:[#allocation111_spill] sm:$0xff] }
 0x402   : > { %6619 = vmatprep.subr.msk.bf16.mxu1 %vm1548_vm7, %v4299_v14  ;;  %v9724_v1 = vpop.f32.mrf.mxu1  ;;  %v6154_v16 = vsel %vm1034_vm4, %v9317_v28, %v6082_v38  ;;  %v5584_v28 = vsel %vm1548_vm7, %v9490_v17, 0 }
 0x403   : > { %4459 = vmatpush1.bf16.msra.mxu1 %v4317_v13 }
 0x404   : > { %v6091_v2 = vpop.permute.xlu1 %6090  ;;  %6624 = vmatprep.subr.msk.bf16.mxu1 %vm1548_vm7, %v4913_v15  ;;  %v9733_v54 = vpop.f32.mrf.mxu1 }
 0x405   : > { %v9738_v9 = vpop.permute.xlu0 %6099  ;;  %v6161_v61 = vsel %vm1034_vm4, %v9341_v42, %v6091_v2 }
 0x406   : > { %6620 = vmatmul.mubr.msk.bf16.vlgmr.msra.gmra.mxu1 %vm1544_vm8, %v9599_v39  ;;  %6627 = vmatmul.mubr.msk.bf16.vlgmr.msra.gmra.mxu0 %vm1544_vm8, %v9676_v51  ;;  %v1644_v11 = vpop.f32.mrf.mxu1  ;;  %v10366_v39 = vld [vmem:[#allocation40_spill] sm:$0xff] }
 0x407   : > { %5611 = vmatpush1.bf16.msra.mxu0 %v5580_v27  ;;  %5019 = vmatpush1.bf16.msra.mxu1 %v4951_v63  ;;  %v4930_v35 = vsel %vm1034_vm4, %v10366_v39, %v10365_v31  ;;  %v6168_v27 = vsel %vm1034_vm4, %v9351_v18, %v9738_v9 }
 0x408   : > { %6635 = vmatprep.subr.msk.bf16.mxu0 %vm1548_vm7, %v5560_v45  ;;  %v6109_v4 = vpop.permute.xlu1 %6108  ;;  %6628 = vmatprep.subr.msk.bf16.mxu1 %vm1548_vm7, %v4941_v58  ;;  %v1645_v55 = vpop.f32.mrf.mxu1  ;;  %v4932_v48 = vsel %vm1038_vm5, %v4930_v35, %v10367_v22 }
 0x409   : > { %v6085_v60 = vpop.permute.xlu0 %6084  ;;  %5036 = vmatprep.mubr.bf16.mxu1 %v10102_v53  ;;  %5628 = vmatprep.mubr.bf16.mxu0 %v10102_v53  ;;  %v4934_v32 = vsel %vm1041_vm6, %v4932_v48, %v10368_v26 }
 0x40a   : > { %v4959_v8 = vsel %vm1548_vm7, %v4934_v32, 0  ;;  %v6156_v13 = vsel %vm1038_vm5, %v6154_v16, %v6085_v60 }
 0x40c   : > { %v6094_v14 = vpop.permute.xlu1 %6093 }
 0x40d   : > { %v6103_v41 = vpop.permute.xlu0 %6102  ;;  %v6163_v30 = vsel %vm1038_vm5, %v6161_v61, %v6094_v14 }
 0x40e   : > { %6625 = vmatmul.mubr.msk.bf16.vlgmr.msra.gmra.mxu1 %vm1544_vm8, %v9676_v51  ;;  %6632 = vmatmul.mubr.msk.bf16.vlgmr.msra.gmra.mxu0 %vm1544_vm8, %v9769_v49  ;;  %v6170_v23 = vsel %vm1038_vm5, %v6168_v27, %v6103_v41 }
 0x40f   : > { %5101 = vmatpush1.bf16.msra.mxu1 %v4959_v8  ;;  %5693 = vmatpush1.bf16.msra.mxu0 %v5588_v6 }
 0x410   : > { %6633 = vmatprep.subr.msk.bf16.mxu1 %vm1548_vm7, %v9501_v34  ;;  %v6112_v21 = vpop.permute.xlu1 %6111  ;;  %5118 = vmatprep.mubr.bf16.mxu1 %v10102_v53  ;;  %v5570_v34 = vsel %vm1034_vm4, %v9147_v56, %v9551_v44  ;;  %v5563_v44 = vsel %vm1034_vm4, %v9120_v33, %v9549_v52  ;;  %v6175_v33 = vsel %vm1034_vm4, %v9367_v19, %v6109_v4 }
 0x411   : > { %v6088_v47 = vpop.permute.xlu0 %6087  ;;  %5710 = vmatprep.mubr.bf16.mxu0 %v10102_v53  ;;  %v5572_v42 = vsel %vm1038_vm5, %v5570_v34, %v9643_v10  ;;  %v6177_v3 = vsel %vm1038_vm5, %v6175_v33, %v6112_v21 }
 0x412   : > { %v6158_v43 = vsel %vm1041_vm6, %v6156_v13, %v6088_v47  ;;  %v5574_v38 = vsel %vm1041_vm6, %v5572_v42, %v9678_v36 }
 0x413   : > { %v6213_v56 = vsel %vm1548_vm7, %v6158_v43, 0 }
 0x414   : > { %v6097_v25 = vpop.permute.xlu1 %6096 }
 0x415   : > { %v6165_v15 = vsel %vm1041_vm6, %v6163_v30, %v6097_v25  ;;  %v6106_v59 = vpop.permute.xlu0 %6105 }
 0x416   : > { %6629 = vmatmul.mubr.msk.bf16.vlgmr.msra.gmra.mxu1 %vm1544_vm8, %v9676_v51  ;;  %6636 = vmatmul.mubr.msk.bf16.vlgmr.msra.gmra.mxu0 %vm1544_vm8, %v9769_v49  ;;  %v5565_v51 = vsel %vm1038_vm5, %v5563_v44, %v9629_v50  ;;  %v6172_v45 = vsel %vm1041_vm6, %v6170_v23, %v6106_v59 }
 0x417   : > { %5652 = vmatpush1.bf16.msra.mxu1 %v5584_v28  ;;  %6640 = vmatprep.subr.msk.bf16.mxu0 %vm1548_vm7, %v6165_v15  ;;  %v5567_v2 = vsel %vm1041_vm6, %v5565_v51, %v9666_v24  ;;  %v6217_v60 = vsel %vm1548_vm7, %v6172_v45, 0 }
 0x418   : > { %6637 = vmatprep.subr.msk.bf16.mxu1 %vm1548_vm7, %v5574_v38  ;;  %6244 = vmatpush1.bf16.msra.mxu0 %v6213_v56  ;;  %v6115_v17 = vpop.permute.xlu1 %6114  ;;  %v5592_v63 = vsel %vm1548_vm7, %v5567_v2, 0 }
 0x419   : > { %v6118_v10 = vpop.permute.xlu0 %6117  ;;  %5669 = vmatprep.mubr.bf16.mxu1 %v10102_v53  ;;  %6261 = vmatprep.mubr.bf16.mxu0 %v10102_v53  ;;  %v6179_v24 = vsel %vm1041_vm6, %v6177_v3, %v6115_v17 }
 0x41a   : > { %v1681_v36 = vpop.f32.mrf.mxu0  ;;  %v6182_v48 = vsel %vm1034_vm4, %v9469_v37, %v6118_v10 }
 0x41c   : > { %v6127_v40 = vpop.permute.xlu1 %6126  ;;  %v1683_v12 = vpop.f32.mrf.mxu0 }
 0x41d   : > { %v6136_v52 = vpop.permute.xlu0 %6135 }
 0x41e   : > { %6634 = vmatmul.mubr.msk.bf16.vlgmr.msra.gmra.mxu1 %vm1544_vm8, %v9769_v49  ;;  %6641 = vmatmul.mubr.msk.bf16.vlgmr.msra.gmra.mxu0 %vm1544_vm8, %v9817_v57  ;;  %v1685_v50 = vpop.f32.mrf.mxu0  ;;  %v6196_v6 = vsel %vm1034_vm4, %v9486_v0, %v6136_v52 }
 0x41f   : > { %5734 = vmatpush1.bf16.msra.mxu1 %v5592_v63  ;;  %5751 = vmatprep.mubr.bf16.mxu1 %v10102_v53 }
 0x420   : > { %6642 = vmatprep.subr.msk.bf16.mxu1 %vm1548_vm7, %v6179_v24  ;;  %v6145_v19 = vpop.permute.xlu1 %6144  ;;  %6343 = vmatprep.mubr.bf16.mxu0 %v10102_v53  ;;  %v1686_v46 = vpop.f32.mrf.mxu0 }
 0x421   : > { %v6121_v11 = vpop.permute.xlu0 %6120  ;;  %v6203_v13 = vsel %vm1034_vm4, %v9497_v5, %v6145_v19 }
 0x422   : > { %v1782_v58 = vpop.f32.mrf.mxu0  ;;  %v6184_v26 = vsel %vm1038_vm5, %v6182_v48, %v6121_v11 }
 0x423   : > { %v1783_v4 = vadd.f32 %v1782_v58, %v9591_v7 }
 0x424   : > { %v6130_v55 = vpop.permute.xlu1 %6129  ;;  %v1784_v31 = vpop.f32.mrf.mxu0 }
 0x425   : > { %v6139_v39 = vpop.permute.xlu0 %6138  ;;  %v1785_v35 = vadd.f32 %v1784_v31, %v9602_v20  ;;  %v6189_v20 = vsel %vm1034_vm4, %v9481_v62, %v6127_v40 }
 0x426   : > { %6638 = vmatmul.mubr.msk.bf16.vlgmr.msra.gmra.mxu1 %vm1544_vm8, %v9769_v49  ;;  %v1786_v22 = vpop.f32.mrf.mxu0  ;;  %v6191_v49 = vsel %vm1038_vm5, %v6189_v20, %v6130_v55  ;;  %v6198_v16 = vsel %vm1038_vm5, %v6196_v6, %v6139_v39 }
 0x427   : > { %6285 = vmatpush1.bf16.msra.mxu1 %v6217_v60  ;;  %6302 = vmatprep.mubr.bf16.mxu1 %v10102_v53 }
 0x428   : > { %v6148_v18 = vpop.permute.xlu1 %6147  ;;  %v1787_v9 = vpop.f32.mrf.mxu0 }
 0x429   : > { %v6124_v7 = vpop.permute.xlu0 %6123  ;;  %v6205_v0 = vsel %vm1038_vm5, %v6203_v13, %v6148_v18 }
 0x42a   : > { %v1864_v32 = vpop.f32.mrf.mxu0  ;;  %v6186_v29 = vsel %vm1041_vm6, %v6184_v26, %v6124_v7 }
 0x42b   : > { %v1865_v14 = vadd.f32 %v1864_v32, %v1681_v36  ;;  %v6221_v61 = vsel %vm1548_vm7, %v6186_v29, 0 }
 0x42c   : > { %v6133_v41 = vpop.permute.xlu1 %6132  ;;  %v1866_v8 = vpop.f32.mrf.mxu0 }
 0x42d   : > { %v6193_v21 = vsel %vm1041_vm6, %v6191_v49, %v6133_v41  ;;  %v6142_v37 = vpop.permute.xlu0 %6141  ;;  %v1867_v47 = vadd.f32 %v1866_v8, %v1683_v12 }
 0x42e   : > { %6643 = vmatmul.mubr.msk.bf16.vlgmr.msra.gmra.mxu1 %vm1544_vm8, %v9817_v57  ;;  %6644 = vmatprep.subr.msk.bf16.mxu0 %vm1548_vm7, %v6193_v21  ;;  %v1868_v62 = vpop.f32.mrf.mxu0  ;;  %v6200_v30 = vsel %vm1041_vm6, %v6198_v16, %v6142_v37 }
 0x42f   : > { %6326 = vmatpush1.bf16.msra.mxu0 %v6221_v61  ;;  %6384 = vmatprep.mubr.bf16.mxu1 %v10102_v53  ;;  %v6225_v15 = vsel %vm1548_vm7, %v6200_v30, 0 }
 0x430   : > { %v6151_v43 = vpop.permute.xlu1 %6150  ;;  %v1869_v25 = vpop.f32.mrf.mxu0 }
 0x431   : > { %v6207_v34 = vsel %vm1041_vm6, %v6205_v0, %v6151_v43 }
 0x432   : > { %6645 = vmatmul.mubr.msk.bf16.vlgmr.msra.gmra.mxu0 %vm1544_vm8, %v9817_v57  ;;  %6646 = vmatprep.subr.msk.bf16.mxu1 %vm1548_vm7, %v6207_v34  ;;  %v2407_v59 = vpop.f32.mrf.mxu0 }
 0x433   : > { %6367 = vmatpush1.bf16.msra.mxu1 %v6225_v15  ;;  %v2537_v5 = vadd.f32 %v2407_v59, %v1783_v4 }
 0x434   : > { %v2409_v28 = vpop.f32.mrf.mxu0 }
 0x435   : > { %v2538_v42 = vadd.f32 %v2409_v28, %v1785_v35 }
 0x436   : > { %6647 = vmatmul.mubr.msk.bf16.vlgmr.msra.gmra.mxu1 %vm1544_vm8, %v9817_v57  ;;  %v2411_v53 = vpop.f32.mrf.mxu0 }
 0x438   : > { %v2412_v38 = vpop.f32.mrf.mxu0 }
 0x43a   : > { %v1722_v56 = vpop.f32.mrf.mxu1 }
 0x43b   : > { %v2489_v17 = vpop.f32.mrf.mxu0 }
 0x43c   : > { %v1724_v44 = vpop.f32.mrf.mxu1  ;;  %v2541_v10 = vadd.f32 %v2489_v17, %v1865_v14 }
 0x43d   : > { %v2491_v51 = vpop.f32.mrf.mxu0 }
 0x43e   : > { %v1726_v36 = vpop.f32.mrf.mxu1  ;;  %v2542_v2 = vadd.f32 %v2491_v51, %v1867_v47 }
 0x43f   : > { %v2493_v40 = vpop.f32.mrf.mxu0 }
 0x440   : > { %v1727_v12 = vpop.f32.mrf.mxu1 }
 0x441   : > { %v2494_v33 = vpop.f32.mrf.mxu0 }
 0x442   : > { %v1823_v52 = vpop.f32.mrf.mxu1 }
 0x443   : > { %v1824_v63 = vadd.f32 %v1823_v52, %v9724_v1 }
 0x444   : > { %v1825_v3 = vpop.f32.mrf.mxu1  ;;  %v3089_v50 = vpop.f32.mrf.mxu0 }
 0x445   : > { %v1826_v24 = vadd.f32 %v1825_v3, %v9733_v54  ;;  %v3219_v57 = vadd.f32 %v3089_v50, %v2537_v5 }
 0x446   : > { %v1827_v19 = vpop.f32.mrf.mxu1  ;;  %v3091_v46 = vpop.f32.mrf.mxu0 }
 0x447   : > { %v3220_v27 = vadd.f32 %v3091_v46, %v2538_v42 }
 0x448   : > { %v1828_v11 = vpop.f32.mrf.mxu1  ;;  %v3093_v23 = vpop.f32.mrf.mxu0 }
 0x44a   : > { %v1905_v58 = vpop.f32.mrf.mxu1  ;;  %v3094_v45 = vpop.f32.mrf.mxu0 }
 0x44b   : > { %v1906_v4 = vadd.f32 %v1905_v58, %v1722_v56 }
 0x44c   : > { %v1907_v55 = vpop.f32.mrf.mxu1 }
 0x44d   : > { %v1908_v31 = vadd.f32 %v1907_v55, %v1724_v44  ;;  %v3171_v39 = vpop.f32.mrf.mxu0 }
 0x44e   : > { %v1909_v35 = vpop.f32.mrf.mxu1  ;;  %v3223_v60 = vadd.f32 %v3171_v39, %v2541_v10 }
 0x44f   : > { %v3173_v22 = vpop.f32.mrf.mxu0 }
 0x450   : > { %v1910_v1 = vpop.f32.mrf.mxu1  ;;  %v3224_v18 = vadd.f32 %v3173_v22, %v2542_v2 }
 0x451   : > { %v3175_v9 = vpop.f32.mrf.mxu0 }
 0x452   : > { %v2448_v48 = vpop.f32.mrf.mxu1 }
 0x453   : > { %v2539_v54 = vadd.f32 %v2448_v48, %v1824_v63  ;;  %v3176_v7 = vpop.f32.mrf.mxu0 }
 0x454   : > { %v2450_v26 = vpop.f32.mrf.mxu1 }
 0x455   : > { %v2540_v32 = vadd.f32 %v2450_v26, %v1826_v24 }
 0x456   : > { %v2452_v20 = vpop.f32.mrf.mxu1 }
 0x458   : > { %v2453_v29 = vpop.f32.mrf.mxu1 }
 0x45a   : > { %v2530_v14 = vpop.f32.mrf.mxu1 }
 0x45b   : > { %v2543_v49 = vadd.f32 %v2530_v14, %v1906_v4 }
 0x45c   : > { %v2532_v41 = vpop.f32.mrf.mxu1 }
 0x45d   : > { %v2544_v8 = vadd.f32 %v2532_v41, %v1908_v31 }
 0x45e   : > { %v2534_v6 = vpop.f32.mrf.mxu1 }
 0x460   : > { %v2535_v21 = vpop.f32.mrf.mxu1 }
 0x462   : > { %v3130_v37 = vpop.f32.mrf.mxu1 }
 0x463   : > { %v3221_v47 = vadd.f32 %v3130_v37, %v2539_v54 }
 0x464   : > { %v3132_v16 = vpop.f32.mrf.mxu1 }
 0x465   : > { %v3222_v61 = vadd.f32 %v3132_v16, %v2540_v32 }
 0x466   : > { %v3134_v62 = vpop.f32.mrf.mxu1 }
 0x468   : > { %v3722_v13 = vpop.f32.mrf.mxu0  ;;  %v3135_v30 = vpop.f32.mrf.mxu1 }
 0x469   : > { %v9871_v0 = vadd.f32 %v3722_v13, %v3219_v57 }
 0x46a   : > { %v3724_v43 = vpop.f32.mrf.mxu0  ;;  %v3212_v25 = vpop.f32.mrf.mxu1 }
 0x46b   : > { %v9873_v34 = vadd.f32 %v3724_v43, %v3220_v27  ;;  %v9875_v15 = vadd.f32 %v3212_v25, %v2543_v49 }
 0x46c   : > { %v3214_v59 = vpop.f32.mrf.mxu1  ;;  %v3726_v5 = vpop.f32.mrf.mxu0 }
 0x46d   : > { %v9877_v28 = vadd.f32 %v3214_v59, %v2544_v8 }
 0x46e   : > { %v3216_v42 = vpop.f32.mrf.mxu1  ;;  %v3727_v53 = vpop.f32.mrf.mxu0 }
 0x470   : > { %v3217_v38 = vpop.f32.mrf.mxu1 }
 0x482   : > { %v3763_v56 = vpop.f32.mrf.mxu1 }
 0x483   : > { %v9879_v17 = vadd.f32 %v3763_v56, %v3221_v47 }
 0x484   : > { %v3765_v44 = vpop.f32.mrf.mxu1 }
 0x485   : > { %v9881_v10 = vadd.f32 %v3765_v44, %v3222_v61  ;;  %v9915_v44 = vpop.permute.xlu0 %6404 }
 0x486   : > { %v3767_v51 = vpop.f32.mrf.mxu1 }
 0x488   : > { %v3768_v36 = vpop.f32.mrf.mxu1 }
 0x4a6   : > { %v3804_v2 = vpop.f32.mrf.mxu0 }
 0x4a7   : > { %v9883_v40 = vadd.f32 %v3804_v2, %v3223_v60 }
 0x4a8   : > { %v3806_v12 = vpop.f32.mrf.mxu0 }
 0x4a9   : > { %v9885_v33 = vadd.f32 %v3806_v12, %v3224_v18 }
 0x4aa   : > { %v3808_v52 = vpop.f32.mrf.mxu0 }
 0x4ab   : > { %v9917_v52 = vpop.permute.xlu1 %6418 }
 0x4ac   : > { %v3809_v63 = vpop.f32.mrf.mxu0 }
 0x4ae   : > { %v4355_v3 = vpop.f32.mrf.mxu0 }
 0x4af   : > { %v4485_v30 = vadd.f32 %v4355_v3, %v9871_v0 }
 0x4b0   : > { %v4357_v50 = vpop.f32.mrf.mxu0 }
 0x4b1   : > { %v4486_v59 = vadd.f32 %v4357_v50, %v9873_v34  ;;  %v9921_v50 = vstv %s6429_s24 }
 0x4b2   : > { %v4359_v24 = vpop.f32.mrf.mxu0 }
 0x4b4   : > { %v4360_v57 = vpop.f32.mrf.mxu0 }
 0x4b6   : > { %v9887_v19 = vpop.f32.mrf.mxu1  ;;  %v9889_v46 = vpop.f32.mrf.mxu0 }
 0x4b8   : > { %v9891_v27 = vpop.f32.mrf.mxu1  ;;  %v9893_v11 = vpop.f32.mrf.mxu0 }
 0x4ba   : > { %v3849_v23 = vpop.f32.mrf.mxu1  ;;  %v4441_v58 = vpop.f32.mrf.mxu0 }
 0x4bc   : > { %v3850_v45 = vpop.f32.mrf.mxu1  ;;  %v4442_v4 = vpop.f32.mrf.mxu0 }
 0x4be   : > { %v9895_v55 = vpop.f32.mrf.mxu1  ;;  %v4997_v31 = vpop.f32.mrf.mxu0 }
 0x4bf   : > { %v5127_v5 = vadd.f32 %v4997_v31, %v4485_v30 }
 0x4c0   : > { %v9897_v39 = vpop.f32.mrf.mxu1  ;;  %v4999_v35 = vpop.f32.mrf.mxu0 }
 0x4c1   : > { %v5128_v38 = vadd.f32 %v4999_v35, %v4486_v59 }
 0x4c2   : > { %v4400_v60 = vpop.f32.mrf.mxu1  ;;  %v5001_v22 = vpop.f32.mrf.mxu0 }
 0x4c4   : > { %v4401_v1 = vpop.f32.mrf.mxu1  ;;  %v5002_v18 = vpop.f32.mrf.mxu0 }
 0x4c6   : > { %v9899_v9 = vpop.f32.mrf.mxu1  ;;  %v9901_v48 = vpop.f32.mrf.mxu0 }
 0x4c8   : > { %v9903_v54 = vpop.f32.mrf.mxu1  ;;  %v9905_v7 = vpop.f32.mrf.mxu0 }
 0x4ca   : > { %v4482_v26 = vpop.f32.mrf.mxu1  ;;  %v5083_v32 = vpop.f32.mrf.mxu0 }
 0x4cb   : > { %v4487_v26 = vadd.f32 %v9895_v55, %v9879_v17  ;;  %v3858_v17 = vadd.f32 %v9887_v19, %v9875_v15  ;;  %v3859_v55 = vadd.f32 %v9891_v27, %v9877_v28 }
 0x4cc   : > { %v4483_v20 = vpop.f32.mrf.mxu1  ;;  %v5084_v29 = vpop.f32.mrf.mxu0 }
 0x4cd   : > { %v4488_v29 = vadd.f32 %v9897_v39, %v9881_v10  ;;  %v4490_v10 = vadd.f32 %v9893_v11, %v9885_v33 }
 0x4ce   : > { %v5038_v14 = vpop.f32.mrf.mxu1  ;;  %v5630_v49 = vpop.f32.mrf.mxu0 }
 0x4cf   : > { %v5760_v56 = vadd.f32 %v5630_v49, %v5127_v5  ;;  %v5129_v49 = vadd.f32 %v5038_v14, %v4487_v26  ;;  %v5132_v59 = vadd.f32 %v9905_v7, %v4490_v10 }
 0x4d0   : > { %v5040_v41 = vpop.f32.mrf.mxu1  ;;  %v5632_v8 = vpop.f32.mrf.mxu0 }
 0x4d1   : > { %v5761_v2 = vadd.f32 %v5632_v8, %v5128_v38 }
 0x4d2   : > { %v5042_v6 = vpop.f32.mrf.mxu1  ;;  %v5634_v21 = vpop.f32.mrf.mxu0 }
 0x4d3   : > { %v4489_v6 = vadd.f32 %v9889_v46, %v9883_v40  ;;  %v5130_v21 = vadd.f32 %v5040_v41, %v4488_v29  ;;  %v4491_v41 = vadd.f32 %v9899_v9, %v3858_v17 }
 0x4d4   : > { %v5043_v37 = vpop.f32.mrf.mxu1  ;;  %v5635_v47 = vpop.f32.mrf.mxu0 }
 0x4d5   : > { %v5131_v30 = vadd.f32 %v9901_v48, %v4489_v6  ;;  %v4492_v48 = vadd.f32 %v9903_v54, %v3859_v55 }
 0x4d6   : > { %v9907_v16 = vpop.f32.mrf.mxu1  ;;  %v5712_v61 = vpop.f32.mrf.mxu0 }
 0x4d7   : > { %v5764_v14 = vadd.f32 %v5712_v61, %v5131_v30  ;;  %v5133_v33 = vadd.f32 %v9907_v16, %v4491_v41 }
 0x4d8   : > { %v9909_v62 = vpop.f32.mrf.mxu1  ;;  %v9911_v13 = vpop.f32.mrf.mxu0 }
 0x4d9   : > { %v5134_v27 = vadd.f32 %v9909_v62, %v4492_v48  ;;  %v5765_v11 = vadd.f32 %v9911_v13, %v5132_v59 }
 0x4da   : > { %v5124_v43 = vpop.f32.mrf.mxu1  ;;  %v5716_v25 = vpop.f32.mrf.mxu0 }
 0x4dc   : > { %v5125_v42 = vpop.f32.mrf.mxu1  ;;  %v5717_v53 = vpop.f32.mrf.mxu0 }
 0x4de   : > { %v5671_v51 = vpop.f32.mrf.mxu1  ;;  %v6263_v36 = vpop.f32.mrf.mxu0 }
 0x4df   : > { %v6393_v12 = vadd.f32 %v6263_v36, %v5760_v56  ;;  %v5762_v37 = vadd.f32 %v5671_v51, %v5129_v49 }
 0x4e0   : > { %v6265_v0 = vpop.f32.mrf.mxu0  ;;  %v5673_v63 = vpop.f32.mrf.mxu1 }
 0x4e1   : > { %v6394_v3 = vadd.f32 %v6265_v0, %v5761_v2  ;;  %v6407_v34 = vmul.f32 %v9915_v44, %v6393_v12  ;;  %v5763_v43 = vadd.f32 %v5673_v63, %v5130_v21 }
 0x4e2   : > { %v5675_v24 = vpop.f32.mrf.mxu1  ;;  %v6267_v57 = vpop.f32.mrf.mxu0 }
 0x4e3   : > { %v6408_v23 = vmul.f32 %v9915_v44, %v6394_v3  ;;  %v6421_v58 = vadd.f32 %v9917_v52, %v6407_v34 }
 0x4e4   : > { %v5676_v45 = vpop.f32.mrf.mxu1  ;;  %v6268_v4 = vpop.f32.mrf.mxu0 }
 0x4e5   : > { %v6422_v31 = vadd.f32 %v9917_v52, %v6408_v23  ;;  %vm6430_vm9 = vcmp.ge.f32.partialorder %v6421_v58, 0.0  ;;  %v6439_v35 = vmul.f32 %v9921_v50, %v6421_v58 }
 0x4e6   : > { %v5753_v60 = vpop.f32.mrf.mxu1 }
 0x4e7   : > { %vm6431_vm10 = vcmp.ge.f32.partialorder %v6422_v31, 0.0  ;;  %v6440_v22 = vmul.f32 %v9921_v50, %v6422_v31  ;;  %v6447_v1 = vsel %vm6430_vm9, %v6421_v58, %v6439_v35  ;;  %v5766_v38 = vadd.f32 %v5753_v60, %v5133_v33 }
 0x4e8   : > { %6455 = vst [vmem:[%s9930_s9] sm:$0xff] %v6447_v1  ;;  %v5755_v18 = vpop.f32.mrf.mxu1 }
 0x4e9   : > { %v6448_v32 = vsel %vm6431_vm10, %v6422_v31, %v6440_v22  ;;  %v5767_v56 = vadd.f32 %v5755_v18, %v5134_v27 }
 0x4ea   : > { %6456 = vst [vmem:[%s9930_s9 + $0x8] sm:$0xff] %v6448_v32  ;;  %v5757_v20 = vpop.f32.mrf.mxu1 }
 0x4ec   : > { %v5758_v8 = vpop.f32.mrf.mxu1 }
 0x4ee   : > { %v6304_v47 = vpop.f32.mrf.mxu1 }
 0x4ef   : > { %v6395_v25 = vadd.f32 %v6304_v47, %v5762_v37 }
 0x4f0   : > { %v6306_v39 = vpop.f32.mrf.mxu1 }
 0x4f1   : > { %v6409_v40 = vmul.f32 %v9915_v44, %v6395_v25  ;;  %v6396_v46 = vadd.f32 %v6306_v39, %v5763_v43 }
 0x4f2   : > { %v6308_v5 = vpop.f32.mrf.mxu1  ;;  %v6345_v42 = vpop.f32.mrf.mxu0 }
 0x4f3   : > { %v6423_v15 = vadd.f32 %v9917_v52, %v6409_v40  ;;  %v6410_v28 = vmul.f32 %v9915_v44, %v6396_v46  ;;  %v6397_v19 = vadd.f32 %v6345_v42, %v5764_v14 }
 0x4f4   : > { %v6309_v61 = vpop.f32.mrf.mxu1  ;;  %v6347_v9 = vpop.f32.mrf.mxu0 }
 0x4f5   : > { %vm6432_vm11 = vcmp.ge.f32.partialorder %v6423_v15, 0.0  ;;  %v6441_v54 = vmul.f32 %v9921_v50, %v6423_v15  ;;  %v6424_v7 = vadd.f32 %v9917_v52, %v6410_v28  ;;  %v6411_v53 = vmul.f32 %v9915_v44, %v6397_v19 }
 0x4f6   : > { %v6398_v51 = vadd.f32 %v6347_v9, %v5765_v11  ;;  %v6386_v36 = vpop.f32.mrf.mxu1  ;;  %v6349_v16 = vpop.f32.mrf.mxu0 }
 0x4f7   : > { %v6449_v2 = vsel %vm6432_vm11, %v6423_v15, %v6441_v54  ;;  %vm6433_vm12 = vcmp.ge.f32.partialorder %v6424_v7, 0.0  ;;  %v6442_v62 = vmul.f32 %v9921_v50, %v6424_v7  ;;  %v6425_v13 = vadd.f32 %v9917_v52, %v6411_v53 }
 0x4f8   : > { %6457 = vst [vmem:[%s9930_s9 + $0x10] sm:$0xff] %v6449_v2  ;;  %v6412_v12 = vmul.f32 %v9915_v44, %v6398_v51  ;;  %v6399_v0 = vadd.f32 %v6386_v36, %v5766_v38  ;;  %v6388_v63 = vpop.f32.mrf.mxu1  ;;  %v6350_v3 = vpop.f32.mrf.mxu0 }
 0x4f9   : > { %v6450_v34 = vsel %vm6433_vm12, %v6424_v7, %v6442_v62  ;;  %vm6434_vm13 = vcmp.ge.f32.partialorder %v6425_v13, 0.0  ;;  %v6443_v24 = vmul.f32 %v9921_v50, %v6425_v13  ;;  %v6400_v57 = vadd.f32 %v6388_v63, %v5767_v56 }
 0x4fa   : > { %6458 = vst [vmem:[%s9930_s9 + $0x18] sm:$0xff] %v6450_v34  ;;  %v6426_v23 = vadd.f32 %v9917_v52, %v6412_v12  ;;  %v6413_v58 = vmul.f32 %v9915_v44, %v6399_v0  ;;  %v6390_v45 = vpop.f32.mrf.mxu1 }
 0x4fb   : > { %v6451_v4 = vsel %vm6434_vm13, %v6425_v13, %v6443_v24  ;;  %v6414_v31 = vmul.f32 %v9915_v44, %v6400_v57 }
 0x4fc   : > { %6459 = vst [vmem:[%s9930_s9 + $0x20] sm:$0xff] %v6451_v4  ;;  %vm6435_vm14 = vcmp.ge.f32.partialorder %v6426_v23, 0.0  ;;  %v6444_v35 = vmul.f32 %v9921_v50, %v6426_v23  ;;  %v6427_v60 = vadd.f32 %v9917_v52, %v6413_v58  ;;  %v6391_v22 = vpop.f32.mrf.mxu1 }
 0x4fd   : > { %v6428_v1 = vadd.f32 %v9917_v52, %v6414_v31 }
 0x4fe   : > { %v6452_v18 = vsel %vm6435_vm14, %v6426_v23, %v6444_v35  ;;  %vm6436_vm15 = vcmp.ge.f32.partialorder %v6427_v60, 0.0  ;;  %v6445_v26 = vmul.f32 %v9921_v50, %v6427_v60 }
 0x4ff   : > { %6460 = vst [vmem:[%s9930_s9 + $0x28] sm:$0xff] %v6452_v18  ;;  %vm6437_vm0 = vcmp.ge.f32.partialorder %v6428_v1, 0.0  ;;  %v6446_v44 = vmul.f32 %v9921_v50, %v6428_v1 }
 0x500   : > { %v6453_v32 = vsel %vm6436_vm15, %v6427_v60, %v6445_v26 }
 0x501   : > { %6461 = vst [vmem:[%s9930_s9 + $0x30] sm:$0xff] %v6453_v32  ;;  %v6454_v52 = vsel %vm6437_vm0, %v6428_v1, %v6446_v44 }
 0x502   : > { %6462 = vst [vmem:[%s9930_s9 + $0x38] sm:$0xff] %v6454_v52 }
 0x503   : > { %6814 = shalt.err (!%p6811_p3)
}
 0x504   : > { %s6815_s22 = scalar_lea.hbm %s9980_s17, 1024  ;;  %s6819_s25 = scalar_lea.hbm %s10032_s7, 2048 }
 0x505   : > { %p6816_p4 = scmp.ne.s32.totalorder %s9980_s17, %s6815_s22  ;;  %p6820_p9 = scmp.lt.s32.totalorder %s9980_s17, %s10032_s7 }
 0x506   : > { %p6821_p10 = scmp.lt.s32.totalorder %s6819_s25, %s6815_s22 }
 0x507   : > { %p6817_p7 = pnand %p6816_p4, %p6955_p5 }
 0x508   : > { %p6822_p11 = por %p6821_p10, %p6820_p9 }
 0x509   : > { %p6818_p8 = pneg %p6817_p7 }
 0x50b   : > { %p6823_p12 = pnand %p6822_p11, %p6818_p8 }
 0x50d   : > { %6826 = shalt.err (!%p6823_p12)
}
 0x50e   : > { %6742 = dma.vmem_to_hbm [thread:$0]  (%p6955_p5), %s9982_s14, 1024, %s9980_s17, %s6464_s6  }
 0x50f PF: > { %p6748_p13 = scmp.ge.s32.totalorder %s6861_s29, 2  ;;  %s6490_s10 = sand.u32 1, %s6849_s26  }
 0x510   : > { %s6491_s15 = scalar_lea.sflag [#allocation4], %s6490_s10 }
 0x511   : > { %p6745_p0 = pnand %p6748_p13, %p6959_p6 }
 0x513   : > { %p6746_p1 = pneg %p6745_p0 }
 0x515   : > { %6844 = dma.done.wait (%p6746_p1), %s6491_s15, 1024  }
 0x516   : > { %6846 = vsyncadd (%p6746_p1), %s6491_s15, 4294966272  ;;  %p18_p2 = scmp.ge.s32.totalorder %s6942_s8, 4   ;;  %s10369_s26 = smov %s6853_s27 }
 0x517   : > { %s10370_s27 = smov %s6857_s28  ;;  %s10371_s28 = smov %s6953_s11 }
 0x518   : > { %s10372_s29 = smov %s6942_s8  ;;  %20 = sbr.rel (!%p18_p2) target bundleno = 5 (0x5), region = 91 }
 0x51d   :  { %6496 = vsyncpa [#allocation4], 1 }
 0x51e   :  { %6498 = vsyncpa [#allocation4 + $0x1], 1 }

</bundles_post_ra>
